<compile_context>
chip_gen: v7x
topology: tpu7x:2x2x1
jax: 0.10.0
libtpu: 0.0.40
codegen_flags: <defaults>
</compile_context>

<pallas_src>
import jax
import jax.numpy as jnp
import numpy as np
from jax.experimental import pallas as pl
from jax.experimental.pallas import tpu as pltpu

# ---- TensoRF / module constants (from MLP.__init__) -------------------------
matMode = [[0, 1], [0, 2], [1, 2]]
vecMode = [2, 1, 0]
gridSize = [141, 157, 94]
density_n_comp = [16, 4, 4]      # sum = 24
app_n_comp = [48, 12, 12]        # sum = 72
app_dim = 27
featureC = 128

ND = sum(density_n_comp)         # 24
NA = sum(app_n_comp)             # 72
PACK_W = NA + 3 + ND             # 99 packed feature lanes: [app | viewdir | density]
OUT_W = 8                        # packed output lanes: [sigma | rgb(3) | vis | pad(3)]

TN = 512                         # points per grid step (amortizes ~0.35us/step overhead,
                                 # fills the 256-wide MXU on v6e/v7x)
FEAT_DTYPE = jnp.bfloat16        # HBM transport dtype for per-point features


# =============================== Pallas kernel ===============================
def _vipnerf_head_kernel(fa_ref, fb_ref, w1_ref, b1_ref, w2_ref, b2_ref,
                         w3_ref, b3_ref, out_ref):
    f32 = jnp.float32
    # Upcast once; all elementwise math runs in f32 (v5e-safe).
    a = fa_ref[...].astype(f32)                     # (TN, 99) = [apl | vdir | dpl]
    b = fb_ref[...].astype(f32)                     # (TN, 99) = [aln |  1   | dln]
    prod = a * b                                    # cols 0:72 apl*aln, 72:75 vdir, 75:99 dpl*dln

    # ---- density branch: sigma = relu(sum_c plane*line) ----
    sigma = jnp.maximum(
        jnp.sum(prod[:, NA + 3:], axis=-1, keepdims=True), 0.0)      # (TN, 1)

    # ---- render MLP with folded first layer:
    #      W1 = [basis_mat @ layer1_feat_rows ; layer1_view_rows ; zeros(24)]
    h = jnp.dot(prod, w1_ref[...], preferred_element_type=f32) + b1_ref[...]
    h = jnp.maximum(h, 0.0)
    h = jnp.maximum(jnp.dot(h, w2_ref[...], preferred_element_type=f32)
                    + b2_ref[...], 0.0)
    out4 = jnp.dot(h, w3_ref[...], preferred_element_type=f32) + b3_ref[...]  # (TN,4)

    # ---- single lane-packed output stream: [sigma | rgb | vis | pad] ----
    out_ref[...] = jnp.concatenate(
        [sigma, jax.nn.sigmoid(out4), jnp.zeros((sigma.shape[0], 3), f32)],
        axis=-1)


def vipnerf_heads(feat_a, feat_b, folded_params):
    """Fused density / render-MLP head over N points (padded to multiple of TN)."""
    N = feat_a.shape[0]
    n_tiles = pl.cdiv(N, TN)
    Np = n_tiles * TN
    if Np != N:
        pad = Np - N
        feat_a = jnp.pad(feat_a, ((0, pad), (0, 0)))
        feat_b = jnp.pad(feat_b, ((0, pad), (0, 0)))
    w1, b1, w2, b2, w3, b3 = folded_params

    def feat_spec(width):
        return pl.BlockSpec((TN, width), lambda i: (i, 0))

    def wspec(a):                      # whole weight resident (same block every step)
        return pl.BlockSpec(a.shape, lambda i: (0, 0))

    out8 = pl.pallas_call(
        _vipnerf_head_kernel,
        out_shape=jax.ShapeDtypeStruct((Np, OUT_W), jnp.float32),
        grid_spec=pltpu.PrefetchScalarGridSpec(
            num_scalar_prefetch=0,
            grid=(n_tiles,),
            in_specs=[feat_spec(PACK_W), feat_spec(PACK_W),
                      wspec(w1), wspec(b1), wspec(w2), wspec(b2),
                      wspec(w3), wspec(b3)],
            out_specs=pl.BlockSpec((TN, OUT_W), lambda i: (i, 0)),
        ),
        compiler_params=pltpu.CompilerParams(dimension_semantics=("parallel",)),
    )(feat_a, feat_b, w1, b1, w2, b2, w3, b3)

    out8 = out8[:N]
    return out8[:, 0:1], out8[:, 1:4], out8[:, 4:5]     # sigma, rgb, visibility


# ====================== F.grid_sample glue (plain JAX) =======================
# TODO(synk): bilinear grid_sample is a data-dependent gather with no clean
# BlockSpec expression; it stays in plain JAX, the arithmetic hot path is Pallas.
# TODO(synk): indices are clamped (border semantics); PyTorch default is
# padding_mode='zeros' — identical for in-range sample points used here.
def grid_sample_plane(plane, gx, gy):
    # plane: (H, W, C); bilinear, align_corners=True; gx -> W, gy -> H
    H, W, _ = plane.shape
    x = (gx + 1.0) * 0.5 * (W - 1)
    y = (gy + 1.0) * 0.5 * (H - 1)
    x0 = jnp.floor(x)
    y0 = jnp.floor(y)
    wx1, wy1 = x - x0, y - y0
    wx0, wy0 = 1.0 - wx1, 1.0 - wy1
    x0i = jnp.clip(x0, 0, W - 1).astype(jnp.int32)
    x1i = jnp.clip(x0 + 1, 0, W - 1).astype(jnp.int32)
    y0i = jnp.clip(y0, 0, H - 1).astype(jnp.int32)
    y1i = jnp.clip(y0 + 1, 0, H - 1).astype(jnp.int32)
    v00 = plane[y0i, x0i]      # (N, C) — points-major, no transpose needed
    v01 = plane[y0i, x1i]
    v10 = plane[y1i, x0i]
    v11 = plane[y1i, x1i]
    return (v00 * (wy0 * wx0)[:, None] + v01 * (wy0 * wx1)[:, None]
            + v10 * (wy1 * wx0)[:, None] + v11 * (wy1 * wx1)[:, None])


def grid_sample_line(line, gy):
    # line: (L, C); x grid coord is 0 (width 1 -> index 0), bilinear along L
    L, _ = line.shape
    y = (gy + 1.0) * 0.5 * (L - 1)
    y0 = jnp.floor(y)
    wy1 = y - y0
    wy0 = 1.0 - wy1
    y0i = jnp.clip(y0, 0, L - 1).astype(jnp.int32)
    y1i = jnp.clip(y0 + 1, 0, L - 1).astype(jnp.int32)
    return line[y0i] * wy0[:, None] + line[y1i] * wy1[:, None]


def sample_vm(planes, lines, pts):
    pvals, lvals = [], []
    for i in range(3):
        gx = pts[:, matMode[i][0]]
        gy = pts[:, matMode[i][1]]
        pvals.append(grid_sample_plane(planes[i], gx, gy))
        lvals.append(grid_sample_line(lines[i], pts[:, vecMode[i]]))
    return jnp.concatenate(pvals, -1), jnp.concatenate(lvals, -1)   # (N, sumC) each


def pack_features(d_planes, d_lines, a_planes, a_lines, pts, view_dirs):
    """Two lane-dense (N, 99) bf16 arrays feeding the Pallas kernel."""
    dpl, dln = sample_vm(d_planes, d_lines, pts)     # (N, 24)
    apl, aln = sample_vm(a_planes, a_lines, pts)     # (N, 72)
    feat_a = jnp.concatenate([apl, view_dirs, dpl], axis=-1).astype(FEAT_DTYPE)
    feat_b = jnp.concatenate([aln, jnp.ones_like(view_dirs), dln],
                             axis=-1).astype(FEAT_DTYPE)
    return feat_a, feat_b


# ========================= deterministic parameter init ======================
def _linear_w(key, fan_in, shape):
    bound = 1.0 / float(np.sqrt(fan_in))
    return jax.random.uniform(key, shape, minval=-bound, maxval=bound,
                              dtype=jnp.float32)


def init_vm(key, n_comp):
    planes, lines = [], []
    ks = jax.random.split(key, 6)
    for i in range(3):
        m0, m1 = matMode[i]
        v = vecMode[i]
        planes.append(0.1 * jax.random.normal(
            ks[2 * i], (gridSize[m1], gridSize[m0], n_comp[i]), jnp.float32))
        lines.append(0.1 * jax.random.normal(
            ks[2 * i + 1], (gridSize[v], n_comp[i]), jnp.float32))
    return planes, lines


def init_params(key):
    ks = jax.random.split(key, 8)
    in_mlpC = 3 + app_dim                                   # viewpe=0, feape=0 -> 30
    wb = _linear_w(ks[0], NA, (NA, app_dim))                # basis_mat (no bias)
    w1f = _linear_w(ks[1], in_mlpC, (app_dim, featureC))    # layer1 feature rows
    w1v = _linear_w(ks[2], in_mlpC, (3, featureC))          # layer1 viewdir rows
    b1 = _linear_w(ks[3], in_mlpC, (1, featureC))
    w2 = _linear_w(ks[4], featureC, (featureC, featureC))
    b2 = _linear_w(ks[5], featureC, (1, featureC))
    w3 = _linear_w(ks[6], featureC, (featureC, 4))
    b3 = jnp.zeros((1, 4), jnp.float32)                     # constant_(bias, 0)
    return (wb, w1f, w1v, b1, w2, b2, w3, b3)


def fold_params(params):
    """Fold basis_mat and the viewdir rows of layer1 into one (99,128) weight."""
    wb, w1f, w1v, b1, w2, b2, w3, b3 = params
    w1 = jnp.concatenate([wb @ w1f,                         # rows for apl*aln (72)
                          w1v,                              # rows for viewdirs (3)
                          jnp.zeros((ND, featureC), jnp.float32)],  # density cols ignored
                         axis=0)                            # (99, 128)
    return (w1, b1, w2, b2, w3, b3)


# ============================ full forward wrappers ==========================
def mlp_forward(input_batch, d_planes, d_lines, a_planes, a_lines, folded_params):
    feat_a, feat_b = pack_features(d_planes, d_lines, a_planes, a_lines,
                                   input_batch["pts"], input_batch["view_dirs"])
    sigma, rgb, vis = vipnerf_heads(feat_a, feat_b, folded_params)
    return {"sigma": sigma, "rgb_view_dependent": rgb, "visibility": vis, "rgb": rgb}


def mlp_forward_reference(input_batch, d_planes, d_lines, a_planes, a_lines,
                          folded_params):
    feat_a, feat_b = pack_features(d_planes, d_lines, a_planes, a_lines,
                                   input_batch["pts"], input_batch["view_dirs"])
    w1, b1, w2, b2, w3, b3 = folded_params
    a = feat_a.astype(jnp.float32)
    b = feat_b.astype(jnp.float32)
    prod = a * b
    sigma = jnp.maximum(jnp.sum(prod[:, NA + 3:], -1, keepdims=True), 0.0)
    h = jnp.maximum(prod @ w1 + b1, 0.0)
    h = jnp.maximum(h @ w2 + b2, 0.0)
    out = h @ w3 + b3
    rgb = jax.nn.sigmoid(out[:, 0:3])
    vis = jax.nn.sigmoid(out[:, 3:4])
    return {"sigma": sigma, "rgb_view_dependent": rgb, "visibility": vis, "rgb": rgb}


if __name__ == "__main__":
    key = jax.random.PRNGKey(0)
    k_pts, k_view, k_dvm, k_avm, k_par = jax.random.split(key, 5)

    N = 2000   # deliberately not a multiple of TN to exercise the padding path
    pts = jax.random.uniform(k_pts, (N, 3), minval=-0.98, maxval=0.98,
                             dtype=jnp.float32)
    view_dirs = jax.random.normal(k_view, (N, 3), dtype=jnp.float32)
    view_dirs = view_dirs / jnp.linalg.norm(view_dirs, axis=-1, keepdims=True)

    d_planes, d_lines = init_vm(k_dvm, density_n_comp)
    a_planes, a_lines = init_vm(k_avm, app_n_comp)
    params = init_params(k_par)
    folded_params = fold_params(params)

    batch = {"pts": pts, "view_dirs": view_dirs}
    out = mlp_forward(batch, d_planes, d_lines, a_planes, a_lines, folded_params)
    jax.block_until_ready(out)

    ref = mlp_forward_reference(batch, d_planes, d_lines, a_planes, a_lines,
                                folded_params)
    for k in ("sigma", "rgb_view_dependent", "visibility", "rgb"):
        np.testing.assert_allclose(np.asarray(out[k]), np.asarray(ref[k]),
                                   rtol=2e-4, atol=2e-4)

    print("KERNEL_OK")
</pallas_src>

<mosaic_0001>
module attributes {stable_mosaic.version = 11 : i64} {
  func.func @_vipnerf_head_kernel(%arg0: i32, %arg1: memref<512x99xbf16, #tpu.memory_space<vmem>>, %arg2: memref<512x99xbf16, #tpu.memory_space<vmem>>, %arg3: memref<99x128xf32, #tpu.memory_space<vmem>>, %arg4: memref<1x128xf32, #tpu.memory_space<vmem>>, %arg5: memref<128x128xf32, #tpu.memory_space<vmem>>, %arg6: memref<1x128xf32, #tpu.memory_space<vmem>>, %arg7: memref<128x4xf32, #tpu.memory_space<vmem>>, %arg8: memref<1x4xf32, #tpu.memory_space<vmem>>, %arg9: memref<512x8xf32, #tpu.memory_space<vmem>>) attributes {dimension_semantics = [#tpu.dimension_semantics<parallel>], iteration_bounds = array<i64: 4>, scalar_prefetch = 0 : i64, scratch_operands = 0 : i64, tpu.core_type = #tpu.core_type<tc>, window_params = [{transform_indices = @transform_0, window_bounds = array<i64: 512, 99>}, {transform_indices = @transform_1, window_bounds = array<i64: 512, 99>}, {pipeline_mode = #tpu.pipeline_mode<synchronous>, transform_indices = @transform_2, window_bounds = array<i64: 99, 128>}, {pipeline_mode = #tpu.pipeline_mode<synchronous>, transform_indices = @transform_3, window_bounds = array<i64: 1, 128>}, {pipeline_mode = #tpu.pipeline_mode<synchronous>, transform_indices = @transform_4, window_bounds = array<i64: 128, 128>}, {pipeline_mode = #tpu.pipeline_mode<synchronous>, transform_indices = @transform_5, window_bounds = array<i64: 1, 128>}, {pipeline_mode = #tpu.pipeline_mode<synchronous>, transform_indices = @transform_6, window_bounds = array<i64: 128, 4>}, {pipeline_mode = #tpu.pipeline_mode<synchronous>, transform_indices = @transform_7, window_bounds = array<i64: 1, 4>}, {transform_indices = @transform_8, window_bounds = array<i64: 512, 8>}]} {
    %c0 = arith.constant 0 : index
    %c0_0 = arith.constant 0 : index
    %0 = vector.load %arg1[%c0, %c0_0] : memref<512x99xbf16, #tpu.memory_space<vmem>>, vector<512x99xbf16>
    %1 = arith.extf %0 : vector<512x99xbf16> to vector<512x99xf32>
    %c0_1 = arith.constant 0 : index
    %c0_2 = arith.constant 0 : index
    %2 = vector.load %arg2[%c0_1, %c0_2] : memref<512x99xbf16, #tpu.memory_space<vmem>>, vector<512x99xbf16>
    %3 = arith.extf %2 : vector<512x99xbf16> to vector<512x99xf32>
    %4 = arith.mulf %1, %3 : vector<512x99xf32>
    %5 = vector.extract_strided_slice %4 {offsets = [0, 75], sizes = [512, 24], strides = [1, 1]} : vector<512x99xf32> to vector<512x24xf32>
    %cst = arith.constant dense<0.000000e+00> : vector<512xf32>
    %6 = vector.multi_reduction <add>, %5, %cst [1] : vector<512x24xf32> to vector<512xf32>
    %7 = vector.shape_cast %6 : vector<512xf32> to vector<512x1xf32>
    %cst_3 = arith.constant 0.000000e+00 : f32
    %8 = vector.broadcast %cst_3 : f32 to vector<512x1xf32>
    %9 = arith.maximumf %7, %8 : vector<512x1xf32>
    %c0_4 = arith.constant 0 : index
    %c0_5 = arith.constant 0 : index
    %10 = vector.load %arg3[%c0_4, %c0_5] : memref<99x128xf32, #tpu.memory_space<vmem>>, vector<99x128xf32>
    %cst_6 = arith.constant dense<0.000000e+00> : vector<512x128xf32>
    %11 = tpu.matmul %4, %10, %cst_6 {dimension_numbers = #tpu.dot_dimension_numbers<[1], [0], [0], [1], [0, 0, 1, 1], [], []>} : vector<512x99xf32>, vector<99x128xf32>, vector<512x128xf32> -> vector<512x128xf32>
    %c0_7 = arith.constant 0 : index
    %c0_8 = arith.constant 0 : index
    %12 = vector.load %arg4[%c0_7, %c0_8] : memref<1x128xf32, #tpu.memory_space<vmem>>, vector<1x128xf32>
    %13 = vector.broadcast %12 : vector<1x128xf32> to vector<512x128xf32>
    %14 = arith.addf %11, %13 : vector<512x128xf32>
    %cst_9 = arith.constant 0.000000e+00 : f32
    %15 = vector.broadcast %cst_9 : f32 to vector<512x128xf32>
    %16 = arith.maximumf %14, %15 : vector<512x128xf32>
    %c0_10 = arith.constant 0 : index
    %c0_11 = arith.constant 0 : index
    %17 = vector.load %arg5[%c0_10, %c0_11] : memref<128x128xf32, #tpu.memory_space<vmem>>, vector<128x128xf32>
    %cst_12 = arith.constant dense<0.000000e+00> : vector<512x128xf32>
    %18 = tpu.matmul %16, %17, %cst_12 {dimension_numbers = #tpu.dot_dimension_numbers<[1], [0], [0], [1], [0, 0, 1, 1], [], []>} : vector<512x128xf32>, vector<128x128xf32>, vector<512x128xf32> -> vector<512x128xf32>
    %c0_13 = arith.constant 0 : index
    %c0_14 = arith.constant 0 : index
    %19 = vector.load %arg6[%c0_13, %c0_14] : memref<1x128xf32, #tpu.memory_space<vmem>>, vector<1x128xf32>
    %20 = vector.broadcast %19 : vector<1x128xf32> to vector<512x128xf32>
    %21 = arith.addf %18, %20 : vector<512x128xf32>
    %cst_15 = arith.constant 0.000000e+00 : f32
    %22 = vector.broadcast %cst_15 : f32 to vector<512x128xf32>
    %23 = arith.maximumf %21, %22 : vector<512x128xf32>
    %c0_16 = arith.constant 0 : index
    %c0_17 = arith.constant 0 : index
    %24 = vector.load %arg7[%c0_16, %c0_17] : memref<128x4xf32, #tpu.memory_space<vmem>>, vector<128x4xf32>
    %cst_18 = arith.constant dense<0.000000e+00> : vector<512x4xf32>
    %25 = tpu.matmul %23, %24, %cst_18 {dimension_numbers = #tpu.dot_dimension_numbers<[1], [0], [0], [1], [0, 0, 1, 1], [], []>} : vector<512x128xf32>, vector<128x4xf32>, vector<512x4xf32> -> vector<512x4xf32>
    %c0_19 = arith.constant 0 : index
    %c0_20 = arith.constant 0 : index
    %26 = vector.load %arg8[%c0_19, %c0_20] : memref<1x4xf32, #tpu.memory_space<vmem>>, vector<1x4xf32>
    %27 = vector.broadcast %26 : vector<1x4xf32> to vector<512x4xf32>
    %28 = arith.addf %25, %27 : vector<512x4xf32>
    %29 = arith.negf %28 : vector<512x4xf32>
    %30 = math.exp %29 : vector<512x4xf32>
    %cst_21 = arith.constant 1.000000e+00 : f32
    %31 = vector.broadcast %cst_21 : f32 to vector<512x4xf32>
    %32 = arith.addf %31, %30 : vector<512x4xf32>
    %33 = arith.divf %31, %32 : vector<512x4xf32>
    %cst_22 = arith.constant 0.000000e+00 : f32
    %34 = vector.broadcast %cst_22 : f32 to vector<512x3xf32>
    %35 = tpu.concatenate %9, %33, %34 in 1 : vector<512x1xf32>, vector<512x4xf32>, vector<512x3xf32> -> vector<512x8xf32>
    %c0_23 = arith.constant 0 : index
    %c0_24 = arith.constant 0 : index
    %36 = vector.load %arg9[%c0_23, %c0_24] : memref<512x8xf32, #tpu.memory_space<vmem>>, vector<512x8xf32>
    tpu.vector_store %arg9[%c0_23, %c0_24], %35 {strides = array<i32>} : memref<512x8xf32, #tpu.memory_space<vmem>>, vector<512x8xf32>,
    return
  }
  func.func @transform_0(%arg0: i32) -> (i32, i32) {
    %c0_i32 = arith.constant 0 : i32
    %c0_i32_0 = arith.constant 0 : i32
    return %arg0, %c0_i32 : i32, i32
  }
  func.func @transform_1(%arg0: i32) -> (i32, i32) {
    %c0_i32 = arith.constant 0 : i32
    %c0_i32_0 = arith.constant 0 : i32
    return %arg0, %c0_i32 : i32, i32
  }
  func.func @transform_2(%arg0: i32) -> (i32, i32) {
    %c0_i32 = arith.constant 0 : i32
    %c0_i32_0 = arith.constant 0 : i32
    %c0_i32_1 = arith.constant 0 : i32
    return %c0_i32, %c0_i32_0 : i32, i32
  }
  func.func @transform_3(%arg0: i32) -> (i32, i32) {
    %c0_i32 = arith.constant 0 : i32
    %c0_i32_0 = arith.constant 0 : i32
    %c0_i32_1 = arith.constant 0 : i32
    return %c0_i32, %c0_i32_0 : i32, i32
  }
  func.func @transform_4(%arg0: i32) -> (i32, i32) {
    %c0_i32 = arith.constant 0 : i32
    %c0_i32_0 = arith.constant 0 : i32
    %c0_i32_1 = arith.constant 0 : i32
    return %c0_i32, %c0_i32_0 : i32, i32
  }
  func.func @transform_5(%arg0: i32) -> (i32, i32) {
    %c0_i32 = arith.constant 0 : i32
    %c0_i32_0 = arith.constant 0 : i32
    %c0_i32_1 = arith.constant 0 : i32
    return %c0_i32, %c0_i32_0 : i32, i32
  }
  func.func @transform_6(%arg0: i32) -> (i32, i32) {
    %c0_i32 = arith.constant 0 : i32
    %c0_i32_0 = arith.constant 0 : i32
    %c0_i32_1 = arith.constant 0 : i32
    return %c0_i32, %c0_i32_0 : i32, i32
  }
  func.func @transform_7(%arg0: i32) -> (i32, i32) {
    %c0_i32 = arith.constant 0 : i32
    %c0_i32_0 = arith.constant 0 : i32
    %c0_i32_1 = arith.constant 0 : i32
    return %c0_i32, %c0_i32_0 : i32, i32
  }
  func.func @transform_8(%arg0: i32) -> (i32, i32) {
    %c0_i32 = arith.constant 0 : i32
    %c0_i32_0 = arith.constant 0 : i32
    return %arg0, %c0_i32 : i32, i32
  }
}

</mosaic_0001>

<bundles_post_ra>
// kernel: tpu_custom_call.1
= control target key start
LH: loop header
LB: loop body
LE: loop exit
PB: predicated region body
PF: predicated region fallthrough
CT: control target
= control target key end

     0   :  { %s5051_s27 = smov 0   ;;  %s6705_s0 = inlined_call_operand.vmem [shape: bf16[2048,99], index: 0, kind: input, shape index: {}]   ;;  %s6706_s1 = inlined_call_operand.vmem [shape: bf16[2048,99], index: 1, kind: input, shape index: {}]   ;;  %s6707_s2 = inlined_call_operand.vmem [shape: f32[99,128], index: 2, kind: input, shape index: {}]   ;;  %s6708_s3 = inlined_call_operand.vmem [shape: f32[1,128], index: 3, kind: input, shape index: {}]   ;;  %s6709_s4 = inlined_call_operand.vmem [shape: f32[128,128], index: 4, kind: input, shape index: {}]   ;;  %s6710_s5 = inlined_call_operand.vmem [shape: f32[1,128], index: 5, kind: input, shape index: {}]   ;;  %s6711_s6 = inlined_call_operand.vmem [shape: f32[128,4], index: 6, kind: input, shape index: {}]   ;;  %s6712_s7 = inlined_call_operand.vmem [shape: f32[1,4], index: 7, kind: input, shape index: {}]   ;;  %s6713_s8 = inlined_call_operand.vmem [shape: f32[2048,8], index: 8, kind: output, shape index: {}]  }
   0x1 LB: > { %s3549_s28 = sadd.s32 4294967295, %s5002_s27   ;;  %p3553_p0 = scmp.ge.s32.totalorder %s5002_s27, 1  ;;  %s5002_s27 = sphi %s5051_s27, %s18_s27  }
   0x2   : > { %p274_p1 = scmp.lt.s32.totalorder %s5002_s27, 5 }
   0x4   : > { %p275_p2 = pnand %p3553_p0, %p274_p1 }
   0x6   : > { %278 = sbr.rel (%p275_p2) target bundleno = 965 (0x3c5), region = 52 }
   0xd   : > { %v1164_v0 = vld [vmem:[%s6707_s2] sm:$0xff]  ;;  %v1165_v1 = vld [vmem:[%s6707_s2 + $0x8] sm:$0xff]  ;;  %v1166_v2 = vld [vmem:[%s6707_s2 + $0x10] sm:$0xff]  ;;  %s3554_s13 = sshll.u32 %s3549_s28, 6  ;;  %vm1184_vm0 = vcmask 809984   ;;  %vm1313_vm1 = vcmask 1042432  }
   0xe   : > { %v4627_v3 = vpack.c.bf16 %v1165_v1, %v1164_v0  ;;  %v1167_v4 = vld [vmem:[%s6707_s2 + $0x18] sm:$0xff]  ;;  %p314_p3 = scmp.lt.s32.totalorder %s3554_s13, 255  ;;  %v1168_v6 = vld [vmem:[%s6707_s2 + $0x20] sm:$0xff]  ;;  %v1169_v7 = vld [vmem:[%s6707_s2 + $0x28] sm:$0xff]  ;;  %vm907_vm2 = vcmask 195584   ;;  %s5005_s16 = smov 1  }
   0xf   : > { %v4631_v5 = vpack.c.bf16 %v1167_v4, %v1166_v2  ;;  %v4635_v8 = vpack.c.bf16 %v1169_v7, %v1168_v6  ;;  %v1170_v9 = vld [vmem:[%s6707_s2 + $0x30] sm:$0xff]  ;;  %v1171_v10 = vld [vmem:[%s6707_s2 + $0x38] sm:$0xff]  ;;  %v1172_v16 = vld [vmem:[%s6707_s2 + $0x40] sm:$0xff]  ;;  %vm3286_vm3 = vcmask 7168   ;;  %vm3351_vm4 = vcmask 39936  }
  0x10   : > { %4628 = vmatprep.subr.bf16.mxu0 %v4627_v3  ;;  %s6813_s13 = smov (!%p314_p3, %s3554_s13), 255  ;;  %4715 = vmatprep.subr.bf16.mxu1 %v4627_v3  ;;  %v4639_v15 = vpack.c.bf16 %v1171_v10, %v1170_v9  ;;  %v1173_v17 = vld [vmem:[%s6707_s2 + $0x48] sm:$0xff]  ;;  %v1174_v20 = vld [vmem:[%s6707_s2 + $0x50] sm:$0xff]  ;;  %v1175_v21 = vld [vmem:[%s6707_s2 + $0x58] sm:$0xff]  ;;  %vm3416_vm5 = vcmask 64512  }
  0x11   : > { %4630 = vmatpush3.bf16.msra.mxu0 %v4627_v3  ;;  %4722 = vmatpush3.bf16.msra.mxu1 %v4627_v3  ;;  %s3555_s20 = sshll.u32 %s6813_s13, 2  ;;  %v4643_v19 = vpack.c.bf16 %v1173_v17, %v1172_v16  ;;  %v4647_v26 = vpack.c.bf16 %v1175_v21, %v1174_v20  ;;  %v1766_v27 = vld [vmem:[%s6709_s4] sm:$0xff]  ;;  %v1767_v28 = vld [vmem:[%s6709_s4 + $0x8] sm:$0xff]  ;;  %v1768_v29 = vld [vmem:[%s6709_s4 + $0x10] sm:$0xff]  ;;  %s3559_s18 = sshll.u32 %s6813_s13, 3 }
  0x12   : > { %4632 = vmatprep.subr.bf16.mxu0 %v4631_v5  ;;  %4716 = vmatprep.subr.bf16.mxu1 %v4631_v5  ;;  %s5089_s28 = scalar_lea.vmem %s6705_s0, %s3555_s20  ;;  %s5094_s9 = scalar_lea.vmem %s6706_s1, %s3555_s20  ;;  %v1769_v30 = vld [vmem:[%s6709_s4 + $0x18] sm:$0xff]  ;;  %v1770_v37 = vld [vmem:[%s6709_s4 + $0x20] sm:$0xff]  ;;  %v1771_v42 = vld [vmem:[%s6709_s4 + $0x28] sm:$0xff]  ;;  %v5167_v52 = vpack.c.bf16 %v1767_v28, %v1766_v27 }
  0x13   : > { %v5097_v11 = vld [vmem:[%s5089_s28] sm:$0xff]   ;;  %v3950_v22 = vld [vmem:[%s5089_s28 + $0x8] sm:$0xff]   ;;  %v3951_v24 = vld [vmem:[%s5089_s28 + $0x10] sm:$0xff]   ;;  %v5169_v53 = vpack.c.bf16 %v1769_v30, %v1768_v29  ;;  %v5171_v54 = vpack.c.bf16 %v1771_v42, %v1770_v37  ;;  %s6374_s21 = scalar_lea.vmem %s6713_s8, %s3559_s18 }
  0x14   : > { %v5100_v12 = vld [vmem:[%s5094_s9] sm:$0xff]   ;;  %v3696_v13 = vunpack.c.l.bf16 %v5097_v11  ;;  %v3981_v23 = vld [vmem:[%s5094_s9 + $0x8] sm:$0xff]   ;;  %v3982_v25 = vld [vmem:[%s5094_s9 + $0x10] sm:$0xff]   ;;  %v3697_v31 = vunpack.c.h.bf16 %v5097_v11  ;;  %v3700_v33 = vunpack.c.l.bf16 %v3950_v22  ;;  %v3701_v38 = vunpack.c.h.bf16 %v3950_v22 }
  0x15   : > { %4634 = vmatpush3.bf16.msra.mxu0 %v4631_v5  ;;  %v3824_v14 = vunpack.c.l.bf16 %v5100_v12  ;;  %4723 = vmatpush3.bf16.msra.mxu1 %v4631_v5  ;;  %v3825_v32 = vunpack.c.h.bf16 %v5100_v12  ;;  %v3828_v34 = vunpack.c.l.bf16 %v3981_v23  ;;  %v5139_v35 = vld [vmem:[%s5089_s28 + $0x18] sm:$0xff]   ;;  %v3829_v39 = vunpack.c.h.bf16 %v3981_v23  ;;  %v1772_v43 = vld [vmem:[%s6709_s4 + $0x30] sm:$0xff]  ;;  %v5159_v49 = vld [vmem:[%s5089_s28 + $0x20] sm:$0xff]  }
  0x16   : > { %4636 = vmatprep.subr.bf16.mxu0 %v4635_v8  ;;  %4717 = vmatprep.subr.bf16.mxu1 %v4635_v8  ;;  %v5142_v36 = vld [vmem:[%s5094_s9 + $0x18] sm:$0xff]   ;;  %v3704_v40 = vunpack.c.l.bf16 %v3951_v24  ;;  %v3832_v41 = vunpack.c.l.bf16 %v3982_v25  ;;  %v3705_v45 = vunpack.c.h.bf16 %v3951_v24  ;;  %v3833_v46 = vunpack.c.h.bf16 %v3982_v25  ;;  %v1176_v50 = vld [vmem:[%s6707_s2 + $0x60] sm:$0x7]  ;;  %v5184_v60 = vld [vmem:[%s5089_s28 + $0x28] sm:$0xff]  }
  0x17   : > { %v5110_v18 = vmul.f32 %v3824_v14, %v3696_v13  ;;  %v1773_v44 = vld [vmem:[%s6709_s4 + $0x38] sm:$0xff]  ;;  %v3708_v47 = vunpack.c.l.bf16 %v5139_v35  ;;  %v3836_v48 = vunpack.c.l.bf16 %v5142_v36  ;;  %v5165_v51 = vld [vmem:[%s5094_s9 + $0x20] sm:$0xff]   ;;  %v5175_v56 = vmul.f32 %v3825_v32, %v3697_v31  ;;  %v5187_v61 = vld [vmem:[%s5094_s9 + $0x28] sm:$0xff]  }
  0x18   : > { %v5173_v55 = vpack.c.bf16 %v1773_v44, %v1772_v43  ;;  %v5177_v57 = vmul.f32 %v3828_v34, %v3700_v33  ;;  %v5179_v58 = vmul.f32 %v3829_v39, %v3701_v38  ;;  %v5181_v59 = vmul.f32 %v3832_v41, %v3704_v40  ;;  %v3962_v62 = vld [vmem:[%s5089_s28 + $0x68] sm:$0xff]   ;;  %v5196_v3 = vld [vmem:[%s5089_s28 + $0x30] sm:$0xff]   ;;  %v3964_v16 = vld [vmem:[%s5089_s28 + $0x78] sm:$0xff]  }
  0x19   : > { %4638 = vmatpush3.bf16.msra.mxu0 %v4635_v8  ;;  %4275 = vmatprep.mubr.msk.f32.mxu0 %vm1184_vm0, %v5110_v18  ;;  %v5190_v63 = vmul.f32 %v3833_v46, %v3705_v45  ;;  %v3709_v0 = vunpack.c.h.bf16 %v5139_v35  ;;  %v3837_v1 = vunpack.c.h.bf16 %v5142_v36  ;;  %v3712_v2 = vunpack.c.l.bf16 %v5159_v49  ;;  %v3993_v4 = vld [vmem:[%s5094_s9 + $0x68] sm:$0xff]   ;;  %v5206_v9 = vld [vmem:[%s5094_s9 + $0x30] sm:$0xff]   ;;  %v3995_v22 = vld [vmem:[%s5094_s9 + $0x78] sm:$0xff]  }
  0x1a   : > { %4640 = vmatprep.subr.bf16.mxu0 %v4639_v15  ;;  %4724 = vmatpush3.bf16.msra.mxu1 %v4635_v8  ;;  %v5200_v5 = vmul.f32 %v3836_v48, %v3708_v47  ;;  %v3840_v6 = vunpack.c.l.bf16 %v5165_v51  ;;  %v3713_v7 = vunpack.c.h.bf16 %v5159_v49  ;;  %v3841_v8 = vunpack.c.h.bf16 %v5165_v51  ;;  %v3963_v10 = vld [vmem:[%s5089_s28 + $0x70] sm:$0xff]   ;;  %v3965_v27 = vld [vmem:[%s5089_s28 + $0x80] sm:$0xff]   ;;  %v3966_v33 = vld [vmem:[%s5089_s28 + $0x88] sm:$0xff]  }
  0x1b   : > { %4718 = vmatprep.subr.bf16.mxu1 %v4639_v15  ;;  %v3994_v11 = vld [vmem:[%s5094_s9 + $0x70] sm:$0xff]   ;;  %v3716_v12 = vunpack.c.l.bf16 %v5184_v60  ;;  %v3844_v13 = vunpack.c.l.bf16 %v5187_v61  ;;  %v3717_v14 = vunpack.c.h.bf16 %v5184_v60  ;;  %v3845_v17 = vunpack.c.h.bf16 %v5187_v61  ;;  %v3996_v32 = vld [vmem:[%s5094_s9 + $0x80] sm:$0xff]   ;;  %v3997_v40 = vld [vmem:[%s5094_s9 + $0x88] sm:$0xff]  }
  0x1c   : > { %v3876_v20 = vunpack.c.l.bf16 %v3993_v4  ;;  %v3749_v21 = vunpack.c.h.bf16 %v3962_v62  ;;  %v3848_v23 = vunpack.c.l.bf16 %v5206_v9  ;;  %v3877_v24 = vunpack.c.h.bf16 %v3993_v4  ;;  %v3967_v45 = vld [vmem:[%s5089_s28 + $0x90] sm:$0xff]   ;;  %v3987_v36 = vld [vmem:[%s5094_s9 + $0x38] sm:$0xff]   ;;  %v5295_v51 = vld [vmem:[%s5089_s28 + $0x40] sm:$0xff]  }
  0x1d   : > { %4642 = vmatpush3.bf16.msra.mxu0 %v4639_v15  ;;  %v3752_v25 = vunpack.c.l.bf16 %v3963_v10  ;;  %v3753_v29 = vunpack.c.h.bf16 %v3963_v10  ;;  %v3881_v30 = vunpack.c.h.bf16 %v3994_v11  ;;  %v3756_v31 = vunpack.c.l.bf16 %v3964_v16  ;;  %v3998_v46 = vld [vmem:[%s5094_s9 + $0x90] sm:$0xff]   ;;  %v4000_v60 = vld [vmem:[%s5094_s9 + $0xa0] sm:$0xff]  }
  0x1e   : > { %4644 = vmatprep.subr.bf16.mxu0 %v4643_v19  ;;  %4725 = vmatpush3.bf16.msra.mxu1 %v4639_v15  ;;  %v3748_v15 = vunpack.c.l.bf16 %v3962_v62  ;;  %v5230_v34 = vmul.f32 %v3877_v24, %v3749_v21  ;;  %v3884_v38 = vunpack.c.l.bf16 %v3995_v22  ;;  %v3757_v39 = vunpack.c.h.bf16 %v3964_v16  ;;  %v5253_v24 = vld [vmem:[%s5089_s28 + $0x98] sm:$0xff]  }
  0x1f   : > { %4719 = vmatprep.subr.bf16.mxu1 %v4643_v19  ;;  %v5236_v41 = vmul.f32 %v3881_v30, %v3753_v29  ;;  %v3885_v42 = vunpack.c.h.bf16 %v3995_v22  ;;  %v3760_v43 = vunpack.c.l.bf16 %v3965_v27  ;;  %v3761_v44 = vunpack.c.h.bf16 %v3965_v27  ;;  %v5267_v30 = vld [vmem:[%s5089_s28 + $0x38] sm:$0xff]  }
  0x20   : > { %v5223_v28 = vmul.f32 %v3876_v20, %v3748_v15  ;;  %v5240_v47 = vmul.f32 %v3884_v38, %v3756_v31  ;;  %v3888_v48 = vunpack.c.l.bf16 %v3996_v32  ;;  %v3764_v62 = vunpack.c.l.bf16 %v3966_v33 }
  0x21   : > { %4646 = vmatpush3.bf16.msra.mxu0 %v4643_v19  ;;  %v5244_v4 = vmul.f32 %v3885_v42, %v3757_v39  ;;  %v3892_v10 = vunpack.c.l.bf16 %v3997_v40  ;;  %v3893_v15 = vunpack.c.h.bf16 %v3997_v40  ;;  %v3768_v21 = vunpack.c.l.bf16 %v3967_v45  ;;  %v3969_v39 = vld [vmem:[%s5089_s28 + $0xa0] sm:$0xff]   ;;  %v5336_v42 = vld [vmem:[%s5089_s28 + $0x48] sm:$0xff]  }
  0x22   : > { %4648 = vmatprep.subr.bf16.mxu0 %v4647_v26  ;;  %4726 = vmatpush3.bf16.msra.mxu1 %v4643_v19  ;;  %v3720_v19 = vunpack.c.l.bf16 %v5196_v3  ;;  %v5248_v16 = vmul.f32 %v3888_v48, %v3760_v43  ;;  %v3896_v22 = vunpack.c.l.bf16 %v3998_v46  ;;  %v3721_v27 = vunpack.c.h.bf16 %v5196_v3 }
  0x23   : > { %4720 = vmatprep.subr.bf16.mxu1 %v4647_v26  ;;  %v3849_v29 = vunpack.c.h.bf16 %v5206_v9  ;;  %v5269_v31 = vmul.f32 %v3892_v10, %v3764_v62  ;;  %v5281_v35 = vmul.f32 %v3841_v8, %v3713_v7  ;;  %v5292_v49 = vmul.f32 %v3844_v13, %v3716_v12  ;;  %v3970_v9 = vld [vmem:[%s5089_s28 + $0xa8] sm:$0xff]   ;;  %v5353_v62 = vld [vmem:[%s5094_s9 + $0xb0] sm:$0xff]  }
  0x24   : > { %6734 = vst [vmem:[#allocation2_spill] sm:$0xff] %v5248_v16  ;;  %4323 = vmatprep.mubr.msk.f32.mxu1 %vm1184_vm0, %v5248_v16  ;;  %v3772_v7 = vunpack.c.l.bf16 %v5253_v24  ;;  %v5312_v12 = vmul.f32 %v3845_v17, %v3717_v14  ;;  %v5318_v13 = vmul.f32 %v3848_v23, %v3720_v19  ;;  %v5323_v38 = vmul.f32 %v3896_v22, %v3768_v21  ;;  %v4001_v17 = vld [vmem:[%s5094_s9 + $0xa8] sm:$0xff]  }
  0x25   : > { %4650 = vmatpush3.bf16.msra.mxu0 %v4647_v26  ;;  %6736 = vst [vmem:[#allocation4_spill] sm:$0xff] %v5269_v31  ;;  %v5327_v40 = vmul.f32 %v3849_v29, %v3721_v27  ;;  %v3852_v61 = vunpack.c.l.bf16 %v3987_v36  ;;  %v3725_v14 = vunpack.c.h.bf16 %v5267_v30  ;;  %v3853_v3 = vunpack.c.h.bf16 %v3987_v36  ;;  %v5358_v10 = vld [vmem:[%s5094_s9 + $0x48] sm:$0xff]  }
  0x26   : > { %4273 = vmatprep.subr.msk.mxu0 %vm1313_vm1, %v1176_v50  ;;  %4727 = vmatpush3.bf16.msra.mxu1 %v4647_v26  ;;  %v3880_v26 = vunpack.c.l.bf16 %v3994_v11  ;;  %v3765_v11 = vunpack.c.h.bf16 %v3966_v33  ;;  %v3724_v33 = vunpack.c.l.bf16 %v5267_v30  ;;  %6738 = vst [vmem:[#allocation6_spill] sm:$0xff] %v5323_v38  ;;  %v3728_v19 = vunpack.c.l.bf16 %v5295_v51 }
  0x27   : > { %4721 = vmatprep.subr.msk.mxu1 %vm1313_vm1, %v1176_v50  ;;  %v3904_v48 = vunpack.c.l.bf16 %v4000_v60  ;;  %v3780_v21 = vunpack.c.l.bf16 %v3970_v9  ;;  %v3908_v22 = vunpack.c.l.bf16 %v4001_v17  ;;  %v3781_v30 = vunpack.c.h.bf16 %v3970_v9 }
  0x28   : > { %v5232_v37 = vmul.f32 %v3880_v26, %v3752_v25  ;;  %v5256_v25 = vld [vmem:[%s5094_s9 + $0x98] sm:$0xff]   ;;  %v5262_v26 = vmul.f32 %v3837_v1, %v3709_v0  ;;  %v3769_v0 = vunpack.c.h.bf16 %v3967_v45  ;;  %v3897_v1 = vunpack.c.h.bf16 %v3998_v46 }
  0x29   : > { %4274 = vmatpush3.msk.msra.mxu0 %vm1313_vm1, %v1176_v50  ;;  %v3900_v8 = vunpack.c.l.bf16 %v5256_v25  ;;  %v3901_v45 = vunpack.c.h.bf16 %v5256_v25  ;;  %v3776_v46 = vunpack.c.l.bf16 %v3969_v39  ;;  %v3909_v36 = vunpack.c.h.bf16 %v4001_v17  ;;  %v3980_v25 = vld [vmem:[%s5089_s28 + $0xf8] sm:$0xff]  }
  0x2a   : > { %4276 = vmatmul.mubr.msk.f32.vlgmr.msra.gmra.mrb[0].mxu0 %vm1184_vm0, %v5175_v56  ;;  %4728 = vmatpush3.msk.msra.mxu1 %vm1313_vm1, %v1176_v50  ;;  %v3889_v50 = vunpack.c.h.bf16 %v3996_v32  ;;  %v5275_v32 = vmul.f32 %v3840_v6, %v3712_v2  ;;  %v5298_v2 = vld [vmem:[%s5094_s9 + $0x40] sm:$0xff]   ;;  %v5302_v6 = vmul.f32 %v3893_v15, %v3765_v11  ;;  %v5338_v43 = vmul.f32 %v3897_v1, %v3769_v0 }
  0x2b   : > { %4278 = vmatprep.mubr.msk.f32.mxu0 %vm1184_vm0, %v5177_v57  ;;  %4652 = vmatprep.subr.bf16.mxu1 %v5167_v52  ;;  %v3856_v23 = vunpack.c.l.bf16 %v5298_v2  ;;  %v3777_v11 = vunpack.c.h.bf16 %v3969_v39  ;;  %v3905_v15 = vunpack.c.h.bf16 %v4000_v60  ;;  %v3912_v1 = vunpack.c.l.bf16 %v5353_v62 }
  0x2c   : > { %v5250_v20 = vmul.f32 %v3889_v50, %v3761_v44  ;;  %6737 = vst [vmem:[#allocation5_spill] sm:$0xff] %v5302_v6  ;;  %6739 = vst [vmem:[#allocation7_spill] sm:$0xff] %v5338_v43  ;;  %v3773_v44 = vunpack.c.h.bf16 %v5253_v24  ;;  %v5350_v50 = vld [vmem:[%s5089_s28 + $0xb0] sm:$0xff]   ;;  %v5362_v24 = vmul.f32 %v3852_v61, %v3724_v33  ;;  %v5377_v33 = vmul.f32 %v3853_v3, %v3725_v14  ;;  %v4007_v61 = vld [vmem:[%s5094_s9 + $0xd8] sm:$0xff]  }
  0x2d   : > { %v3784_v0 = vunpack.c.l.bf16 %v5350_v50  ;;  %v5392_v14 = vmul.f32 %v3904_v48, %v3776_v46  ;;  %v5394_v3 = vmul.f32 %v3905_v15, %v3777_v11  ;;  %v5396_v17 = vmul.f32 %v3908_v22, %v3780_v21  ;;  %v3978_v46 = vld [vmem:[%s5089_s28 + $0xe8] sm:$0xff]  }
  0x2e   : > { %4279 = vmatmul.mubr.msk.f32.gmra.mrb[2].mxu0 %vm1184_vm0, %v5179_v58  ;;  %6735 = vst [vmem:[#allocation3_spill] sm:$0xff] %v5250_v20  ;;  %4324 = vmatmul.mubr.msk.f32.vlgmr.msra.gmra.mrb[0].mxu1 %vm1184_vm0, %v5250_v20  ;;  %v5384_v60 = vmul.f32 %v3901_v45, %v3773_v44  ;;  %v4008_v44 = vld [vmem:[%s5094_s9 + $0xe0] sm:$0xff]   ;;  %v5408_v48 = vmul.f32 %v3909_v36, %v3781_v30  ;;  %v3932_v15 = vunpack.c.l.bf16 %v4007_v61  ;;  %v4009_v22 = vld [vmem:[%s5094_s9 + $0xe8] sm:$0xff]   ;;  %v3933_v39 = vunpack.c.h.bf16 %v4007_v61  ;;  %v3979_v36 = vld [vmem:[%s5089_s28 + $0xf0] sm:$0xff]  }
  0x2f   : > { %4281 = vmatprep.mubr.msk.f32.mxu0 %vm1184_vm0, %v5181_v59  ;;  %4326 = vmatprep.mubr.msk.f32.mxu1 %vm1184_vm0, %v5269_v31  ;;  %6743 = vst [vmem:[#allocation11_spill] sm:$0xff] %v5392_v14  ;;  %6744 = vst [vmem:[#allocation12_spill] sm:$0xff] %v5394_v3  ;;  %v5410_v11 = vmul.f32 %v3912_v1, %v3784_v0  ;;  %v3936_v30 = vunpack.c.l.bf16 %v4008_v44  ;;  %v4010_v0 = vld [vmem:[%s5094_s9 + $0xf0] sm:$0xff]   ;;  %v3937_v45 = vunpack.c.h.bf16 %v4008_v44  ;;  %v3812_v27 = vunpack.c.l.bf16 %v3978_v46 }
  0x30   : > { %4654 = vmatpush3.bf16.msra.mxu1 %v5167_v52  ;;  %v5346_v52 = vmul.f32 %v3900_v8, %v3772_v7  ;;  %v5371_v7 = vld [vmem:[%s5089_s28 + $0xb8] sm:$0xff]   ;;  %6742 = vst [vmem:[#allocation10_spill] sm:$0xff] %v5384_v60  ;;  %6745 = vst [vmem:[#allocation13_spill] sm:$0xff] %v5396_v17  ;;  %v5445_v44 = vld [vmem:[%s5089_s28 + $0x50] sm:$0xff]   ;;  %v3821_v31 = vunpack.c.h.bf16 %v3980_v25 }
  0x31   : > { %4656 = vmatprep.subr.bf16.mxu1 %v5169_v53  ;;  %v3976_v8 = vld [vmem:[%s5089_s28 + $0xd8] sm:$0xff]   ;;  %6746 = vst [vmem:[#allocation14_spill] sm:$0xff] %v5408_v48  ;;  %6747 = vst [vmem:[#allocation15_spill] sm:$0xff] %v5410_v11 }
  0x32   : > { %4282 = vmatmul.mubr.msk.f32.gmra.mrb[4].mxu0 %vm1184_vm0, %v5190_v63  ;;  %4327 = vmatmul.mubr.msk.f32.gmra.mrb[2].mxu1 %vm1184_vm0, %v5302_v6  ;;  %6740 = vst [vmem:[#allocation8_spill] sm:$0xff] %v5346_v52  ;;  %v3804_v29 = vunpack.c.l.bf16 %v3976_v8  ;;  %v3805_v21 = vunpack.c.h.bf16 %v3976_v8 }
  0x33   : > { %4284 = vmatprep.mubr.msk.f32.mxu0 %vm1184_vm0, %v5200_v5  ;;  %4329 = vmatprep.mubr.msk.f32.mxu1 %vm1184_vm0, %v5323_v38  ;;  %v4011_v38 = vld [vmem:[%s5094_s9 + $0xf8] sm:$0xff]  }
  0x34   : > { %4658 = vmatpush3.bf16.msra.mxu1 %v5169_v53  ;;  %v5379_v53 = vmul.f32 %v3856_v23, %v3728_v19  ;;  %v5399_v19 = vld [vmem:[%s5094_s9 + $0xb8] sm:$0xff]   ;;  %v3977_v23 = vld [vmem:[%s5089_s28 + $0xe0] sm:$0xff]   ;;  %v5425_v1 = vmul.f32 %v3932_v15, %v3804_v29  ;;  %v5428_v61 = vmul.f32 %v3933_v39, %v3805_v21  ;;  %v3816_v29 = vunpack.c.l.bf16 %v3979_v36  ;;  %v1775_v39 = vld [vmem:[%s6709_s4 + $0x48] sm:$0xff] }
  0x35   : > { %4660 = vmatprep.subr.bf16.mxu1 %v5171_v54  ;;  %v3916_v9 = vunpack.c.l.bf16 %v5399_v19  ;;  %v3809_v8 = vunpack.c.h.bf16 %v3977_v23  ;;  %v3944_v15 = vunpack.c.l.bf16 %v4010_v0  ;;  %v3945_v21 = vunpack.c.h.bf16 %v4010_v0  ;;  %v5472_v0 = vld [vmem:[%s5094_s9 + $0xc0] sm:$0xff]  }
  0x36   : > { %4285 = vmatmul.mubr.msk.f32.gmra.mrb[6].mxu0 %vm1184_vm0, %v5262_v26  ;;  %6741 = vst [vmem:[#allocation9_spill] sm:$0xff] %v5379_v53  ;;  %4330 = vmatmul.mubr.msk.f32.gmra.mrb[4].mxu1 %vm1184_vm0, %v5338_v43  ;;  %v3813_v43 = vunpack.c.h.bf16 %v3978_v46  ;;  %v3817_v46 = vunpack.c.h.bf16 %v3979_v36  ;;  %v5469_v36 = vld [vmem:[%s5089_s28 + $0xc0] sm:$0xff]  }
  0x37   : > { %4287 = vmatprep.mubr.msk.f32.mxu0 %vm1184_vm0, %v5275_v32  ;;  %4332 = vmatprep.mubr.msk.f32.mxu1 %vm1184_vm0, %v5346_v52  ;;  %v3940_v52 = vunpack.c.l.bf16 %v4009_v22  ;;  %v5434_v6 = vmul.f32 %v3937_v45, %v3809_v8  ;;  %v3948_v8 = vunpack.c.l.bf16 %v4011_v38 }
  0x38   : > { %4662 = vmatpush3.bf16.msra.mxu1 %v5171_v54  ;;  %v3808_v54 = vunpack.c.l.bf16 %v3977_v23  ;;  %v1774_v23 = vld [vmem:[%s6709_s4 + $0x40] sm:$0xff]  ;;  %v5474_v20 = vmul.f32 %v3945_v21, %v3817_v46  ;;  %v3789_v46 = vunpack.c.h.bf16 %v5371_v7  ;;  %v3917_v21 = vunpack.c.h.bf16 %v5399_v19 }
  0x39   : > { %4664 = vmatprep.subr.bf16.mxu1 %v5173_v55  ;;  %v5452_v45 = vmul.f32 %v3940_v52, %v3812_v27  ;;  %v6749_v52 = vunpack.c.h.bf16 %v5298_v2  ;;  %v1777_v2 = vld [vmem:[%s6709_s4 + $0x58] sm:$0xff]  ;;  %v3792_v19 = vunpack.c.l.bf16 %v5469_v36 }
  0x3a   : > { %4288 = vmatmul.mubr.msk.f32.gmra.mrb[8].mxu0 %vm1184_vm0, %v5281_v35  ;;  %4333 = vmatmul.mubr.msk.f32.gmra.mrb[6].mxu1 %vm1184_vm0, %v5384_v60  ;;  %v5430_v60 = vmul.f32 %v3936_v30, %v3808_v54  ;;  %v5460_v30 = vmul.f32 %v3944_v15, %v3816_v29  ;;  %v3736_v29 = vunpack.c.l.bf16 %v5445_v44 }
  0x3b   : > { %4290 = vmatprep.mubr.msk.f32.mxu0 %vm1184_vm0, %v5292_v49  ;;  %4335 = vmatprep.mubr.msk.f32.mxu1 %vm1184_vm0, %v5392_v14  ;;  %v3941_v14 = vunpack.c.h.bf16 %v4009_v22  ;;  %v3820_v22 = vunpack.c.l.bf16 %v3980_v25 }
  0x3c   : > { %4666 = vmatpush3.bf16.msra.mxu1 %v5173_v55  ;;  %v5448_v55 = vld [vmem:[%s5094_s9 + $0x50] sm:$0xff]  }
  0x3d   : > { %v5458_v54 = vmul.f32 %v3941_v14, %v3813_v43  ;;  %v4667_v43 = vpack.c.bf16 %v1775_v39, %v1774_v23  ;;  %v3861_v14 = vunpack.c.h.bf16 %v5358_v10  ;;  %v3864_v25 = vunpack.c.l.bf16 %v5448_v55 }
  0x3e   : > { %4291 = vmatmul.mubr.msk.f32.gmra.mrb[10].mxu0 %vm1184_vm0, %v5312_v12  ;;  %4336 = vmatmul.mubr.msk.f32.gmra.mrb[8].mxu1 %vm1184_vm0, %v5394_v3  ;;  %v6748_v3 = vunpack.c.h.bf16 %v5295_v51  ;;  %v5479_v15 = vmul.f32 %v3948_v8, %v3820_v22  ;;  %v1776_v51 = vld [vmem:[%s6709_s4 + $0x50] sm:$0xff]  ;;  %v6752_v23 = vunpack.c.h.bf16 %v5353_v62  ;;  %v6754_v8 = vunpack.c.l.bf16 %v5336_v42 }
  0x3f   : > { %4293 = vmatprep.mubr.msk.f32.mxu0 %vm1184_vm0, %v5318_v13  ;;  %4338 = vmatprep.mubr.msk.f32.mxu1 %vm1184_vm0, %v5396_v17  ;;  %v3949_v17 = vunpack.c.h.bf16 %v4011_v38  ;;  %v5490_v38 = vld [vmem:[%s5089_s28 + $0x58] sm:$0xff]   ;;  %v4671_v16 = vpack.c.bf16 %v1777_v2, %v1776_v51  ;;  %v1779_v51 = vld [vmem:[%s6709_s4 + $0x68] sm:$0xff] }
  0x40   : > { %v5466_v27 = vmul.f32 %v6749_v52, %v6748_v3  ;;  %v6751_v3 = vunpack.c.h.bf16 %v5350_v50  ;;  %v6755_v52 = vunpack.c.l.bf16 %v5358_v10  ;;  %v6757_v50 = vunpack.c.l.bf16 %v5371_v7  ;;  %4668 = vmatprep.subr.bf16.mxu1 %v4667_v43 }
  0x41   : > { %v5502_v22 = vmul.f32 %v3949_v17, %v3821_v31  ;;  %v3920_v31 = vunpack.c.l.bf16 %v5472_v0  ;;  %v3991_v17 = vld [vmem:[%s5094_s9 + $0x58] sm:$0xff]   ;;  %v6759_v10 = vunpack.c.h.bf16 %v5336_v42  ;;  %v3865_v7 = vunpack.c.h.bf16 %v5448_v55  ;;  %4670 = vmatpush3.bf16.msra.mxu1 %v4667_v43 }
  0x42   : > { %4294 = vmatmul.mubr.msk.f32.gmra.mrb[12].mxu0 %vm1184_vm0, %v5327_v40  ;;  %6750 = vst [vmem:[#allocation16_spill] sm:$0xff] %v5466_v27  ;;  %4339 = vmatmul.mubr.msk.f32.gmra.mrb[10].mxu1 %vm1184_vm0, %v5408_v48  ;;  %v5498_v39 = vmul.f32 %v6752_v23, %v6751_v3  ;;  %v5510_v48 = vmul.f32 %v6755_v52, %v6754_v8  ;;  %v3974_v3 = vld [vmem:[%s5089_s28 + $0xc8] sm:$0xff]   ;;  %v3737_v52 = vunpack.c.h.bf16 %v5445_v44  ;;  %v3961_v44 = vld [vmem:[%s5089_s28 + $0x60] sm:$0xff]   ;;  %v3793_v43 = vunpack.c.h.bf16 %v5469_v36 }
  0x43   : > { %4296 = vmatprep.mubr.msk.f32.mxu0 %vm1184_vm0, %v5362_v24  ;;  %4341 = vmatprep.mubr.msk.f32.mxu1 %vm1184_vm0, %v5410_v11  ;;  %v5516_v62 = vmul.f32 %v3916_v9, %v6757_v50  ;;  %v4005_v23 = vld [vmem:[%s5094_s9 + $0xc8] sm:$0xff]   ;;  %v5525_v8 = vmul.f32 %v3861_v14, %v6759_v10  ;;  %v3740_v9 = vunpack.c.l.bf16 %v5490_v38  ;;  %v1778_v50 = vld [vmem:[%s6709_s4 + $0x60] sm:$0xff]  ;;  %v5538_v42 = vmul.f32 %v3864_v25, %v3736_v29 }
  0x44   : > { %6753 = vst [vmem:[#allocation17_spill] sm:$0xff] %v5498_v39  ;;  %6756 = vst [vmem:[#allocation18_spill] sm:$0xff] %v5510_v48  ;;  %v5543_v55 = vmul.f32 %v3917_v21, %v3789_v46  ;;  %v3921_v14 = vunpack.c.h.bf16 %v5472_v0  ;;  %v3868_v2 = vunpack.c.l.bf16 %v3991_v17  ;;  %v3992_v10 = vld [vmem:[%s5094_s9 + $0x60] sm:$0xff]   ;;  %v5552_v29 = vmul.f32 %v3920_v31, %v3792_v19  ;;  %4672 = vmatprep.subr.bf16.mxu1 %v4671_v16  ;;  %v1781_v19 = vld [vmem:[%s6709_s4 + $0x78] sm:$0xff] }
  0x45   : > { %6758 = vst [vmem:[#allocation19_spill] sm:$0xff] %v5516_v62  ;;  %6760 = vst [vmem:[#allocation20_spill] sm:$0xff] %v5525_v8  ;;  %v3796_v25 = vunpack.c.l.bf16 %v3974_v3  ;;  %v3924_v11 = vunpack.c.l.bf16 %v4005_v23  ;;  %v4675_v46 = vpack.c.bf16 %v1779_v51, %v1778_v50  ;;  %v5556_v21 = vmul.f32 %v3865_v7, %v3737_v52  ;;  %4674 = vmatpush3.bf16.msra.mxu1 %v4671_v16 }
  0x46   : > { %4297 = vmatmul.mubr.msk.f32.gmra.mrb[14].mxu0 %vm1184_vm0, %v5377_v33  ;;  %4342 = vmatmul.mubr.msk.f32.gmra.mrb[12].mxu1 %vm1184_vm0, %v5498_v39  ;;  %6761 = vst [vmem:[#allocation21_spill] sm:$0xff] %v5543_v55  ;;  %v4006_v39 = vld [vmem:[%s5094_s9 + $0xd0] sm:$0xff]   ;;  %v3741_v36 = vunpack.c.h.bf16 %v5490_v38  ;;  %v3869_v0 = vunpack.c.h.bf16 %v3991_v17  ;;  %v3872_v31 = vunpack.c.l.bf16 %v3992_v10  ;;  %v5569_v52 = vmul.f32 %v3921_v14, %v3793_v43 }
  0x47   : > { %4299 = vmatprep.mubr.msk.f32.mxu0 %vm1184_vm0, %v5379_v53  ;;  %4344 = vmatprep.mubr.msk.f32.mxu1 %vm1184_vm0, %v5516_v62  ;;  %v3744_v53 = vunpack.c.l.bf16 %v3961_v44  ;;  %v3797_v38 = vunpack.c.h.bf16 %v3974_v3  ;;  %v3925_v17 = vunpack.c.h.bf16 %v4005_v23  ;;  %v5573_v16 = vmul.f32 %v3868_v2, %v3740_v9 }
  0x48   : > { %v5577_v7 = vmul.f32 %v3924_v11, %v3796_v25  ;;  %v3928_v51 = vunpack.c.l.bf16 %v4006_v39  ;;  %4676 = vmatprep.subr.bf16.mxu1 %v4675_v46  ;;  %v5581_v3 = vmul.f32 %v3869_v0, %v3741_v36  ;;  %v3929_v11 = vunpack.c.h.bf16 %v4006_v39  ;;  %v2241_v39 = vld [vmem:[%s6711_s6 + $0x18] sm:$0xff] }
  0x49   : > { %4678 = vmatpush3.bf16.msra.mxu1 %v4675_v46  ;;  %v5585_v23 = vmul.f32 %v3925_v17, %v3797_v38  ;;  %v5589_v43 = vmul.f32 %v3872_v31, %v3744_v53 }
  0x4a   : > { %4300 = vmatmul.mubr.msk.f32.gmra.mrb[16].mxu0 %vm1184_vm0, %v5466_v27  ;;  %v3975_v27 = vld [vmem:[%s5089_s28 + $0xd0] sm:$0xff]   ;;  %4345 = vmatmul.mubr.msk.f32.gmra.mrb[14].mxu1 %vm1184_vm0, %v5543_v55  ;;  %v3873_v55 = vunpack.c.h.bf16 %v3992_v10  ;;  %s5004_s28 = smov 53  }
  0x4b   : > { %4302 = vmatprep.mubr.msk.f32.mxu0 %vm1184_vm0, %v5510_v48  ;;  %v1780_v48 = vld [vmem:[%s6709_s4 + $0x70] sm:$0xff]  ;;  %4347 = vmatprep.mubr.msk.f32.mxu1 %vm1184_vm0, %v5552_v29  ;;  %v3800_v50 = vunpack.c.l.bf16 %v3975_v27  ;;  %v3801_v9 = vunpack.c.h.bf16 %v3975_v27 }
  0x4c   : > { %v4679_v62 = vpack.c.bf16 %v1781_v19, %v1780_v48  ;;  %715 = vrot.lane.b32.xlu0 %v5110_v18, %s5004_s28  ;;  %719 = vrot.lane.b32.xlu1 %v5177_v57, %s5004_s28  ;;  %v5662_v18 = vld [vmem:[%s6708_s3] ss:$0 sm:$0xff] }
  0x4d   : > { %v5593_v48 = vmul.f32 %v3928_v51, %v3800_v50  ;;  %v5601_v27 = vmul.f32 %v3929_v11, %v3801_v9  ;;  %v2244_v50 = vld [vmem:[%s6711_s6 + $0x30] sm:$0xff] }
  0x4e   : > { %4303 = vmatmul.mubr.msk.f32.gmra.mrb[18].mxu0 %vm1184_vm0, %v5525_v8  ;;  %v3745_v8 = vunpack.c.h.bf16 %v3961_v44  ;;  %4348 = vmatmul.mubr.msk.f32.gmra.mrb[16].mxu1 %vm1184_vm0, %v5569_v52 }
  0x4f   : > { %4305 = vmatprep.mubr.msk.f32.mxu0 %vm1184_vm0, %v5538_v42  ;;  %4350 = vmatprep.mubr.msk.f32.mxu1 %vm1184_vm0, %v5577_v7 }
  0x50   : > { %4680 = vmatprep.subr.bf16.mxu1 %v4679_v62  ;;  %v5597_v44 = vmul.f32 %v3873_v55, %v3745_v8  ;;  %717 = vrot.lane.b32.xlu0 %v5175_v56, %s5004_s28 }
  0x51   : > { %4682 = vmatpush3.bf16.msra.mxu1 %v4679_v62  ;;  %721 = vrot.lane.b32.xlu1 %v5179_v58, %s5004_s28 }
  0x52   : > { %4306 = vmatmul.mubr.msk.f32.gmra.mrb[20].mxu0 %vm1184_vm0, %v5556_v21  ;;  %4351 = vmatmul.mubr.msk.f32.gmra.mrb[18].mxu1 %vm1184_vm0, %v5585_v23 }
  0x53   : > { %4308 = vmatprep.mubr.msk.f32.mxu0 %vm1184_vm0, %v5573_v16  ;;  %4353 = vmatprep.mubr.msk.f32.mxu1 %vm1184_vm0, %v5593_v48 }
  0x54   : > { %723 = vrot.lane.b32.xlu0 %v5181_v59, %s5004_s28 }
  0x55   : > { %725 = vrot.lane.b32.xlu1 %v5190_v63, %s5004_s28  ;;  %v2238_v63 = vld [vmem:[%s6711_s6] sm:$0xff] }
  0x56   : > { %4309 = vmatmul.mubr.msk.f32.gmra.mrb[22].mxu0 %vm1184_vm0, %v5581_v3  ;;  %4354 = vmatmul.mubr.msk.f32.gmra.mrb[20].mxu1 %vm1184_vm0, %v5601_v27 }
  0x57   : > { %4311 = vmatprep.mubr.msk.f32.mxu0 %vm1184_vm0, %v5589_v43  ;;  %4356 = vmatprep.mubr.msk.f32.mxu1 %vm1184_vm0, %v5425_v1 }
  0x58   : > { %727 = vrot.lane.b32.xlu0 %v5200_v5, %s5004_s28  ;;  %v2239_v5 = vld [vmem:[%s6711_s6 + $0x8] sm:$0xff] }
  0x59   : > { %729 = vrot.lane.b32.xlu1 %v5262_v26, %s5004_s28  ;;  %v2240_v26 = vld [vmem:[%s6711_s6 + $0x10] sm:$0xff] }
  0x5a   : > { %4312 = vmatmul.mubr.msk.f32.gmra.mrb[24].mxu0 %vm1184_vm0, %v5597_v44  ;;  %4357 = vmatmul.mubr.msk.f32.gmra.mrb[22].mxu1 %vm1184_vm0, %v5428_v61  ;;  %v4687_v14 = vpack.c.bf16 %v2241_v39, %v2240_v26  ;;  %v6763_v39 = vld [vmem:[#allocation16_spill] sm:$0xff] }
  0x5b   : > { %4314 = vmatprep.mubr.msk.f32.mxu0 %vm1184_vm0, %v5223_v28  ;;  %4359 = vmatprep.mubr.msk.f32.mxu1 %vm1184_vm0, %v5430_v60 }
  0x5c   : > { %731 = vrot.lane.b32.xlu0 %v5275_v32, %s5004_s28 }
  0x5d   : > { %733 = vrot.lane.b32.xlu1 %v5281_v35, %s5004_s28  ;;  %v4683_v35 = vpack.c.bf16 %v2239_v5, %v2238_v63  ;;  %v2246_v5 = vld [vmem:[%s6711_s6 + $0x40] sm:$0xff] }
  0x5e   : > { %4315 = vmatmul.mubr.msk.f32.gmra.mrb[26].mxu0 %vm1184_vm0, %v5230_v34  ;;  %4360 = vmatmul.mubr.msk.f32.gmra.mrb[24].mxu1 %vm1184_vm0, %v5434_v6 }
  0x5f   : > { %4317 = vmatprep.mubr.msk.f32.mxu0 %vm1184_vm0, %v5232_v37  ;;  %4362 = vmatprep.mubr.msk.f32.mxu1 %vm1184_vm0, %v5452_v45 }
  0x60   : > { %735 = vrot.lane.b32.xlu0 %v5292_v49, %s5004_s28  ;;  %4684 = vmatprep.subr.bf16.mxu0 %v4683_v35  ;;  %v2242_v49 = vld [vmem:[%s6711_s6 + $0x20] sm:$0xff] }
  0x61   : > { %737 = vrot.lane.b32.xlu1 %v5312_v12, %s5004_s28  ;;  %v2243_v12 = vld [vmem:[%s6711_s6 + $0x28] sm:$0xff]  ;;  %4686 = vmatpush3.bf16.msra.mxu0 %v4683_v35  ;;  %v6762_v35 = vld [vmem:[#allocation9_spill] sm:$0xff] }
  0x62   : > { %4318 = vmatmul.mubr.msk.f32.gmra.mrb[28].mxu0 %vm1184_vm0, %v5236_v41  ;;  %4363 = vmatmul.mubr.msk.f32.gmra.mrb[26].mxu1 %vm1184_vm0, %v5458_v54  ;;  %v4691_v38 = vpack.c.bf16 %v2243_v12, %v2242_v49  ;;  %v2248_v49 = vld [vmem:[%s6711_s6 + $0x50] sm:$0xff]  ;;  %v2249_v12 = vld [vmem:[%s6711_s6 + $0x58] sm:$0xff] }
  0x63   : > { %4320 = vmatprep.mubr.msk.f32.mxu0 %vm1184_vm0, %v5240_v47  ;;  %4365 = vmatprep.mubr.msk.f32.mxu1 %vm1184_vm0, %v5460_v30 }
  0x64   : > { %739 = vrot.lane.b32.xlu0 %v5318_v13, %s5004_s28  ;;  %4688 = vmatprep.subr.bf16.mxu0 %v4687_v14  ;;  %v2245_v13 = vld [vmem:[%s6711_s6 + $0x38] sm:$0xff] }
  0x65   : > { %741 = vrot.lane.b32.xlu1 %v5327_v40, %s5004_s28  ;;  %4690 = vmatpush3.bf16.msra.mxu0 %v4687_v14 }
  0x66   : > { %4321 = vmatmul.mubr.msk.f32.gmra.mrb[30].mxu0 %vm1184_vm0, %v5244_v4  ;;  %4366 = vmatmul.mubr.msk.f32.gmra.mrb[28].mxu1 %vm1184_vm0, %v5474_v20 }
  0x67   : > { %4368 = vmatprep.mubr.msk.f32.mxu1 %vm1184_vm0, %v5479_v15  ;;  %4692 = vmatprep.subr.bf16.mxu0 %v4691_v38 }
  0x68   : > { %743 = vrot.lane.b32.xlu0 %v5362_v24, %s5004_s28  ;;  %v2247_v24 = vld [vmem:[%s6711_s6 + $0x48] sm:$0xff] }
  0x69   : > { %745 = vrot.lane.b32.xlu1 %v5377_v33, %s5004_s28  ;;  %4694 = vmatpush3.bf16.msra.mxu0 %v4691_v38  ;;  %v4699_v14 = vpack.c.bf16 %v2247_v24, %v2246_v5  ;;  %v6765_v38 = vld [vmem:[#allocation20_spill] sm:$0xff] }
  0x6a   : > { %4369 = vmatmul.mubr.msk.f32.gmra.mrb[30].mxu1 %vm1184_vm0, %v5502_v22 }
  0x6c   : > { %747 = vrot.lane.b32.xlu0 %v6762_v35, %s5004_s28 }
  0x6d   : > { %749 = vrot.lane.b32.xlu1 %v6763_v39, %s5004_s28  ;;  %v2252_v39 = vld [vmem:[%s6711_s6 + $0x70] sm:$0xff] }
  0x71   : > { %753 = vrot.lane.b32.xlu1 %v6765_v38, %s5004_s28 }
  0x75   : > { %757 = vrot.lane.b32.xlu1 %v5556_v21, %s5004_s28 }
  0x79   : > { %761 = vrot.lane.b32.xlu1 %v5581_v3, %s5004_s28 }
  0x7d   : > { %765 = vrot.lane.b32.xlu1 %v5597_v44, %s5004_s28 }
  0x81   : > { %769 = vrot.lane.b32.xlu1 %v5230_v34, %s5004_s28 }
  0x85   : > { %773 = vrot.lane.b32.xlu1 %v5236_v41, %s5004_s28 }
  0x89   : > { %777 = vrot.lane.b32.xlu1 %v5244_v4, %s5004_s28 }
  0xfd   : > { %v4277_v56 = vpop.f32.mrb[0].mxu0 }
  0xfe   : > { %v1389_v57 = vadd.f32 %v4277_v56, %v5662_v18  ;;  %v1383_v58 = vpop.f32.mrb[1].mxu0 }
  0xff   : > { %v1384_v59 = vadd.f32 %v5662_v18, %v1383_v58 }
 0x100   : > { %v1703_v62 = vmax.f32 %v1389_v57, 0.0 }
 0x101   : > { %v1702_v32 = vmax.f32 %v1384_v59, 0.0  ;;  %v4280_v53 = vpop.f32.mrb[2].mxu0  ;;  %v5694_v36 = vpop.f32.mrb[0].mxu1  ;;  %v4695_v59 = vpack.c.bf16 %v2245_v13, %v2244_v50 }
 0x102   : > { %v1399_v8 = vadd.f32 %v4280_v53, %v5662_v18  ;;  %v1393_v55 = vpop.f32.mrb[3].mxu0  ;;  %v5701_v31 = vpop.f32.mrb[1].mxu1 }
 0x103   : > { %v1394_v2 = vadd.f32 %v5662_v18, %v1393_v55  ;;  %4403 = vmatprep.mubr.f32.mxu1 %v1702_v32  ;;  %4696 = vmatprep.subr.bf16.mxu0 %v4695_v59 }
 0x104   : > { %v1705_v10 = vmax.f32 %v1399_v8, 0.0  ;;  %4404 = vmatmul.mubr.f32.vlgmr.msra.gmra.mrb[32].mxu1 %v1703_v62  ;;  %4698 = vmatpush3.bf16.msra.mxu0 %v4695_v59 }
 0x105   : > { %v1704_v25 = vmax.f32 %v1394_v2, 0.0  ;;  %v4283_v46 = vpop.f32.mrb[4].mxu0  ;;  %v5710_v11 = vpop.f32.mrb[2].mxu1  ;;  %4700 = vmatprep.subr.bf16.mxu0 %v4699_v14 }
 0x106   : > { %v1409_v0 = vadd.f32 %v4283_v46, %v5662_v18  ;;  %v1403_v19 = vpop.f32.mrb[5].mxu0  ;;  %v5717_v58 = vpop.f32.mrb[3].mxu1 }
 0x107   : > { %v1404_v17 = vadd.f32 %v5662_v18, %v1403_v19  ;;  %4406 = vmatprep.mubr.f32.mxu1 %v1704_v25  ;;  %v6764_v19 = vld [vmem:[#allocation18_spill] sm:$0xff] }
 0x108   : > { %v1707_v51 = vmax.f32 %v1409_v0, 0.0  ;;  %4407 = vmatmul.mubr.f32.gmra.mrb[34].mxu1 %v1705_v10  ;;  %751 = vrot.lane.b32.xlu0 %v6764_v19, %s5004_s28 }
 0x109   : > { %v1706_v40 = vmax.f32 %v1404_v17, 0.0  ;;  %v4286_v9 = vpop.f32.mrb[6].mxu0  ;;  %v5726_v53 = vpop.f32.mrb[4].mxu1  ;;  %4702 = vmatpush3.bf16.msra.mxu0 %v4699_v14 }
 0x10a   : > { %v1419_v56 = vadd.f32 %v4286_v9, %v5662_v18  ;;  %v1413_v57 = vpop.f32.mrb[7].mxu0  ;;  %v5733_v55 = vpop.f32.mrb[5].mxu1  ;;  %v2250_v9 = vld [vmem:[%s6711_s6 + $0x60] sm:$0xff] }
 0x10b   : > { %v1414_v63 = vadd.f32 %v5662_v18, %v1413_v57  ;;  %4409 = vmatprep.mubr.f32.mxu1 %v1706_v40 }
 0x10c   : > { %v1709_v26 = vmax.f32 %v1419_v56, 0.0  ;;  %4410 = vmatmul.mubr.f32.gmra.mrb[36].mxu1 %v1707_v51  ;;  %v4703_v51 = vpack.c.bf16 %v2249_v12, %v2248_v49  ;;  %v2251_v56 = vld [vmem:[%s6711_s6 + $0x68] sm:$0xff]  ;;  %755 = vrot.lane.b32.xlu0 %v5538_v42, %s5004_s28  ;;  %v2253_v42 = vld [vmem:[%s6711_s6 + $0x78] sm:$0xff] }
 0x10d   : > { %v1708_v33 = vmax.f32 %v1414_v63, 0.0  ;;  %v4289_v32 = vpop.f32.mrb[8].mxu0  ;;  %v5742_v0 = vpop.f32.mrb[6].mxu1 }
 0x10e   : > { %v1429_v62 = vadd.f32 %v4289_v32, %v5662_v18  ;;  %v1423_v8 = vpop.f32.mrb[9].mxu0  ;;  %v5749_v13 = vpop.f32.mrb[7].mxu1  ;;  %4704 = vmatprep.subr.bf16.mxu0 %v4703_v51  ;;  %v4707_v32 = vpack.c.bf16 %v2251_v56, %v2250_v9 }
 0x10f   : > { %v1424_v2 = vadd.f32 %v5662_v18, %v1423_v8  ;;  %4412 = vmatprep.mubr.f32.mxu1 %v1708_v33  ;;  %4706 = vmatpush3.bf16.msra.mxu0 %v4703_v51 }
 0x110   : > { %v1711_v10 = vmax.f32 %v1429_v62, 0.0  ;;  %4413 = vmatmul.mubr.f32.gmra.mrb[38].mxu1 %v1709_v26  ;;  %759 = vrot.lane.b32.xlu0 %v5573_v16, %s5004_s28 }
 0x111   : > { %v1710_v25 = vmax.f32 %v1424_v2, 0.0  ;;  %v4292_v46 = vpop.f32.mrb[10].mxu0  ;;  %v5758_v5 = vpop.f32.mrb[8].mxu1  ;;  %4708 = vmatprep.subr.bf16.mxu0 %v4707_v32 }
 0x112   : > { %v1439_v17 = vadd.f32 %v4292_v46, %v5662_v18  ;;  %v1433_v50 = vpop.f32.mrb[11].mxu0  ;;  %v5765_v33 = vpop.f32.mrb[9].mxu1 }
 0x113   : > { %v1434_v40 = vadd.f32 %v5662_v18, %v1433_v50  ;;  %4415 = vmatprep.mubr.f32.mxu1 %v1710_v25  ;;  %4710 = vmatpush3.bf16.msra.mxu0 %v4707_v32 }
 0x114   : > { %v1713_v57 = vmax.f32 %v1439_v17, 0.0  ;;  %4416 = vmatmul.mubr.f32.gmra.mrb[40].mxu1 %v1711_v10  ;;  %v4711_v10 = vpack.c.bf16 %v2253_v42, %v2252_v39  ;;  %763 = vrot.lane.b32.xlu0 %v5589_v43, %s5004_s28 }
 0x115   : > { %v1712_v59 = vmax.f32 %v1434_v40, 0.0  ;;  %v4295_v63 = vpop.f32.mrb[12].mxu0  ;;  %v5774_v14 = vpop.f32.mrb[10].mxu1 }
 0x116   : > { %v1449_v24 = vadd.f32 %v4295_v63, %v5662_v18  ;;  %v1443_v26 = vpop.f32.mrb[13].mxu0  ;;  %v5781_v12 = vpop.f32.mrb[11].mxu1  ;;  %4712 = vmatprep.subr.bf16.mxu0 %v4711_v10 }
 0x117   : > { %v1444_v35 = vadd.f32 %v5662_v18, %v1443_v26  ;;  %4418 = vmatprep.mubr.f32.mxu1 %v1712_v59  ;;  %4714 = vmatpush3.bf16.msra.mxu0 %v4711_v10 }
 0x118   : > { %v1715_v62 = vmax.f32 %v1449_v24, 0.0  ;;  %4419 = vmatmul.mubr.f32.gmra.mrb[42].mxu1 %v1713_v57  ;;  %767 = vrot.lane.b32.xlu0 %v5223_v28, %s5004_s28 }
 0x119   : > { %v1714_v21 = vmax.f32 %v1444_v35, 0.0  ;;  %v4298_v8 = vpop.f32.mrb[14].mxu0  ;;  %v5784_v17 = vpop.f32.mrb[12].mxu1 }
 0x11a   : > { %v1459_v2 = vadd.f32 %v4298_v8, %v5662_v18  ;;  %v1453_v49 = vpop.f32.mrb[15].mxu0  ;;  %v5791_v50 = vpop.f32.mrb[13].mxu1 }
 0x11b   : > { %v1454_v25 = vadd.f32 %v5662_v18, %v1453_v49  ;;  %4421 = vmatprep.mubr.f32.mxu1 %v1714_v21 }
 0x11c   : > { %v1717_v46 = vmax.f32 %v1459_v2, 0.0  ;;  %4422 = vmatmul.mubr.f32.gmra.mrb[44].mxu1 %v1715_v62  ;;  %771 = vrot.lane.b32.xlu0 %v5232_v37, %s5004_s28 }
 0x11d   : > { %v1716_v19 = vmax.f32 %v1454_v25, 0.0  ;;  %v4301_v38 = vpop.f32.mrb[16].mxu0  ;;  %v5794_v57 = vpop.f32.mrb[14].mxu1 }
 0x11e   : > { %v1469_v16 = vadd.f32 %v4301_v38, %v5662_v18  ;;  %v1463_v3 = vpop.f32.mrb[17].mxu0  ;;  %v5801_v59 = vpop.f32.mrb[15].mxu1 }
 0x11f   : > { %v1464_v51 = vadd.f32 %v5662_v18, %v1463_v3  ;;  %4424 = vmatprep.mubr.f32.mxu1 %v1716_v19 }
 0x120   : > { %v1719_v40 = vmax.f32 %v1469_v16, 0.0  ;;  %4425 = vmatmul.mubr.f32.gmra.mrb[46].mxu1 %v1717_v46  ;;  %775 = vrot.lane.b32.xlu0 %v5240_v47, %s5004_s28  ;;  %v6766_v16 = vld [vmem:[#allocation2_spill] sm:$0xff]  ;;  %v6767_v47 = vld [vmem:[#allocation3_spill] sm:$0xff] }
 0x121   : > { %v1718_v9 = vmax.f32 %v1464_v51, 0.0  ;;  %v4304_v56 = vpop.f32.mrb[18].mxu0  ;;  %v5804_v35 = vpop.f32.mrb[16].mxu1  ;;  %781 = vrot.lane.b32.xlu1 %v6767_v47, %s5004_s28 }
 0x122   : > { %v1479_v43 = vadd.f32 %v4304_v56, %v5662_v18  ;;  %v1473_v44 = vpop.f32.mrb[19].mxu0  ;;  %v5811_v39 = vpop.f32.mrb[17].mxu1 }
 0x123   : > { %v1474_v63 = vadd.f32 %v5662_v18, %v1473_v44  ;;  %4427 = vmatprep.mubr.f32.mxu1 %v1718_v9 }
 0x124   : > { %v1721_v24 = vmax.f32 %v1479_v43, 0.0  ;;  %4428 = vmatmul.mubr.f32.gmra.mrb[48].mxu1 %v1719_v40  ;;  %779 = vrot.lane.b32.xlu0 %v6766_v16, %s5004_s28 }
 0x125   : > { %v1720_v26 = vmax.f32 %v1474_v63, 0.0  ;;  %v4307_v32 = vpop.f32.mrb[20].mxu0  ;;  %v5814_v2 = vpop.f32.mrb[18].mxu1  ;;  %v6768_v63 = vld [vmem:[#allocation4_spill] sm:$0xff] }
 0x126   : > { %v1489_v28 = vadd.f32 %v4307_v32, %v5662_v18  ;;  %v1483_v34 = vpop.f32.mrb[21].mxu0  ;;  %v5821_v49 = vpop.f32.mrb[19].mxu1 }
 0x127   : > { %v1484_v42 = vadd.f32 %v5662_v18, %v1483_v34  ;;  %4430 = vmatprep.mubr.f32.mxu1 %v1720_v26 }
 0x128   : > { %v1723_v62 = vmax.f32 %v1489_v28, 0.0  ;;  %4431 = vmatmul.mubr.f32.gmra.mrb[50].mxu1 %v1721_v24  ;;  %783 = vrot.lane.b32.xlu0 %v6768_v63, %s5004_s28  ;;  %v6769_v24 = vld [vmem:[#allocation5_spill] sm:$0xff] }
 0x129   : > { %v1722_v21 = vmax.f32 %v1484_v42, 0.0  ;;  %v4310_v8 = vpop.f32.mrb[22].mxu0  ;;  %v5824_v38 = vpop.f32.mrb[20].mxu1  ;;  %785 = vrot.lane.b32.xlu1 %v6769_v24, %s5004_s28 }
 0x12a   : > { %v1499_v37 = vadd.f32 %v4310_v8, %v5662_v18  ;;  %v1493_v41 = vpop.f32.mrb[23].mxu0  ;;  %v5831_v51 = vpop.f32.mrb[21].mxu1 }
 0x12b   : > { %v1494_v10 = vadd.f32 %v5662_v18, %v1493_v41  ;;  %4433 = vmatprep.mubr.f32.mxu1 %v1722_v21  ;;  %v6771_v41 = vld [vmem:[#allocation7_spill] sm:$0xff] }
 0x12c   : > { %v1725_v25 = vmax.f32 %v1499_v37, 0.0  ;;  %4434 = vmatmul.mubr.f32.gmra.mrb[52].mxu1 %v1723_v62  ;;  %v6770_v37 = vld [vmem:[#allocation6_spill] sm:$0xff] }
 0x12d   : > { %v1724_v46 = vmax.f32 %v1494_v10, 0.0  ;;  %v4313_v19 = vpop.f32.mrb[24].mxu0  ;;  %v5834_v44 = vpop.f32.mrb[22].mxu1  ;;  %787 = vrot.lane.b32.xlu0 %v6770_v37, %s5004_s28  ;;  %789 = vrot.lane.b32.xlu1 %v6771_v41, %s5004_s28  ;;  %v6774_v37 = vld [vmem:[#allocation11_spill] sm:$0xff]  ;;  %v6775_v41 = vld [vmem:[#allocation12_spill] sm:$0xff] }
 0x12e   : > { %v1509_v4 = vadd.f32 %v4313_v19, %v5662_v18  ;;  %v1503_v3 = vpop.f32.mrb[25].mxu0  ;;  %v5841_v28 = vpop.f32.mrb[23].mxu1 }
 0x12f   : > { %v1504_v40 = vadd.f32 %v5662_v18, %v1503_v3  ;;  %4436 = vmatprep.mubr.f32.mxu1 %v1724_v46  ;;  %v1544_v3 = vadd.f32 %v5662_v18, %v5701_v31  ;;  %v1549_v31 = vadd.f32 %v5694_v36, %v5662_v18  ;;  %v1559_v36 = vadd.f32 %v5710_v11, %v5662_v18 }
 0x130   : > { %v1727_v9 = vmax.f32 %v1509_v4, 0.0  ;;  %4437 = vmatmul.mubr.f32.gmra.mrb[54].mxu1 %v1725_v25  ;;  %v1569_v11 = vadd.f32 %v5726_v53, %v5662_v18  ;;  %v1584_v53 = vadd.f32 %v5662_v18, %v5765_v33 }
 0x131   : > { %v1726_v56 = vmax.f32 %v1504_v40, 0.0  ;;  %v4316_v43 = vpop.f32.mrb[26].mxu0  ;;  %v5844_v8 = vpop.f32.mrb[24].mxu1 }
 0x132   : > { %v1519_v26 = vadd.f32 %v4316_v43, %v5662_v18  ;;  %v1513_v32 = vpop.f32.mrb[27].mxu0  ;;  %v5851_v46 = vpop.f32.mrb[25].mxu1 }
 0x133   : > { %v1514_v34 = vadd.f32 %v5662_v18, %v1513_v32  ;;  %4439 = vmatprep.mubr.f32.mxu1 %v1726_v56  ;;  %v6773_v56 = vld [vmem:[#allocation10_spill] sm:$0xff] }
 0x134   : > { %v1729_v42 = vmax.f32 %v1519_v26, 0.0  ;;  %4440 = vmatmul.mubr.f32.gmra.mrb[56].mxu1 %v1727_v9  ;;  %v6772_v9 = vld [vmem:[#allocation8_spill] sm:$0xff]  ;;  %793 = vrot.lane.b32.xlu1 %v6773_v56, %s5004_s28 }
 0x135   : > { %v1728_v62 = vmax.f32 %v1514_v34, 0.0  ;;  %v4319_v21 = vpop.f32.mrb[28].mxu0  ;;  %v5856_v40 = vpop.f32.mrb[26].mxu1  ;;  %791 = vrot.lane.b32.xlu0 %v6772_v9, %s5004_s28  ;;  %v1737_v9 = vmax.f32 %v1559_v36, 0.0 }
 0x136   : > { %v1529_v10 = vadd.f32 %v4319_v21, %v5662_v18  ;;  %v1523_v25 = vpop.f32.mrb[29].mxu0  ;;  %v5863_v24 = vpop.f32.mrb[27].mxu1 }
 0x137   : > { %v1524_v19 = vadd.f32 %v5662_v18, %v1523_v25  ;;  %4442 = vmatprep.mubr.f32.mxu1 %v1728_v62  ;;  %v1554_v62 = vadd.f32 %v5662_v18, %v5717_v58  ;;  %v1735_v25 = vmax.f32 %v1549_v31, 0.0  ;;  %v1564_v58 = vadd.f32 %v5662_v18, %v5733_v55 }
 0x138   : > { %v1731_v16 = vmax.f32 %v1529_v10, 0.0  ;;  %4443 = vmatmul.mubr.f32.gmra.mrb[58].mxu1 %v1729_v42  ;;  %v1734_v42 = vmax.f32 %v1544_v3, 0.0  ;;  %797 = vrot.lane.b32.xlu1 %v6775_v41, %s5004_s28  ;;  %v6777_v3 = vld [vmem:[#allocation14_spill] sm:$0xff]  ;;  %v1574_v55 = vadd.f32 %v5662_v18, %v5749_v13  ;;  %v6781_v13 = vld [vmem:[#allocation21_spill] sm:$0xff]  ;;  %v1599_v41 = vadd.f32 %v5774_v14, %v5662_v18 }
 0x139   : > { %v1730_v47 = vmax.f32 %v1524_v19, 0.0  ;;  %v4322_v4 = vpop.f32.mrb[30].mxu0  ;;  %v5870_v21 = vpop.f32.mrb[28].mxu1  ;;  %795 = vrot.lane.b32.xlu0 %v6774_v37, %s5004_s28  ;;  %v1736_v19 = vmax.f32 %v1554_v62, 0.0  ;;  %v1738_v56 = vmax.f32 %v1564_v58, 0.0  ;;  %v1589_v62 = vadd.f32 %v5758_v5, %v5662_v18 }
 0x13a   : > { %v1539_v43 = vadd.f32 %v4322_v4, %v5662_v18  ;;  %v1533_v63 = vpop.f32.mrb[31].mxu0  ;;  %v5876_v10 = vpop.f32.mrb[29].mxu1  ;;  %v1740_v31 = vmax.f32 %v1574_v55, 0.0  ;;  %v1742_v37 = vmax.f32 %v1584_v53, 0.0  ;;  %v1604_v5 = vadd.f32 %v5662_v18, %v5791_v50 }
 0x13b   : > { %v1534_v26 = vadd.f32 %v5662_v18, %v1533_v63  ;;  %4445 = vmatprep.mubr.f32.mxu1 %v1730_v47  ;;  %v6776_v47 = vld [vmem:[#allocation13_spill] sm:$0xff]  ;;  %v1743_v33 = vmax.f32 %v1589_v62, 0.0  ;;  %v1614_v14 = vadd.f32 %v5662_v18, %v5801_v59 }
 0x13c   : > { %v1733_v32 = vmax.f32 %v1539_v43, 0.0  ;;  %4446 = vmatmul.mubr.f32.gmra.mrb[60].mxu1 %v1731_v16  ;;  %801 = vrot.lane.b32.xlu1 %v6777_v3, %s5004_s28  ;;  %v6778_v43 = vld [vmem:[#allocation15_spill] sm:$0xff]  ;;  %v6779_v63 = vld [vmem:[#allocation17_spill] sm:$0xff] }
 0x13d   : > { %v1732_v34 = vmax.f32 %v1534_v26, 0.0  ;;  %v5882_v16 = vpop.f32.mrb[30].mxu1  ;;  %799 = vrot.lane.b32.xlu0 %v6776_v47, %s5004_s28  ;;  %v1739_v26 = vmax.f32 %v1569_v11, 0.0  ;;  %v1748_v50 = vmax.f32 %v1614_v14, 0.0  ;;  %v720_v11 = vpop.permute.xlu1 %719 }
 0x13e   : > { %v5886_v4 = vpop.f32.mrb[31].mxu1 }
 0x13f   : > { %4448 = vmatprep.mubr.f32.mxu1 %v1732_v34  ;;  %v6780_v34 = vld [vmem:[#allocation19_spill] sm:$0xff] }
 0x140   : > { %4449 = vmatmul.mubr.f32.gmra.mrb[62].mxu1 %v1733_v32  ;;  %805 = vrot.lane.b32.xlu1 %v6779_v63, %s5004_s28  ;;  %v1579_v32 = vadd.f32 %v5742_v0, %v5662_v18  ;;  %v1594_v0 = vadd.f32 %v5662_v18, %v5781_v12  ;;  %v1746_v12 = vmax.f32 %v1604_v5, 0.0 }
 0x141   : > { %4451 = vmatprep.mubr.f32.mxu1 %v1734_v42  ;;  %803 = vrot.lane.b32.xlu0 %v6778_v43, %s5004_s28 }
 0x142   : > { %v1741_v42 = vmax.f32 %v1579_v32, 0.0 }
 0x144   : > { %4452 = vmatmul.mubr.f32.gmra.mrb[64].mxu1 %v1735_v25  ;;  %809 = vrot.lane.b32.xlu1 %v6781_v13, %s5004_s28  ;;  %v1744_v25 = vmax.f32 %v1594_v0, 0.0 }
 0x145   : > { %4454 = vmatprep.mubr.f32.mxu1 %v1736_v19  ;;  %807 = vrot.lane.b32.xlu0 %v6780_v34, %s5004_s28 }
 0x148   : > { %4455 = vmatmul.mubr.f32.gmra.mrb[66].mxu1 %v1737_v9  ;;  %813 = vrot.lane.b32.xlu1 %v5569_v52, %s5004_s28  ;;  %v1609_v52 = vadd.f32 %v5784_v17, %v5662_v18  ;;  %v1624_v17 = vadd.f32 %v5662_v18, %v5811_v39 }
 0x149   : > { %4457 = vmatprep.mubr.f32.mxu1 %v1738_v56  ;;  %811 = vrot.lane.b32.xlu0 %v5552_v29, %s5004_s28  ;;  %v1745_v29 = vmax.f32 %v1599_v41, 0.0  ;;  %v914_v56 = vsel %vm907_vm2, %v720_v11, 0.0 }
 0x14a   : > { %v1750_v59 = vmax.f32 %v1624_v17, 0.0 }
 0x14c   : > { %4458 = vmatmul.mubr.f32.gmra.mrb[68].mxu1 %v1739_v26  ;;  %817 = vrot.lane.b32.xlu1 %v5585_v23, %s5004_s28  ;;  %v1619_v23 = vadd.f32 %v5794_v57, %v5662_v18  ;;  %v1634_v57 = vadd.f32 %v5662_v18, %v5821_v49 }
 0x14d   : > { %4460 = vmatprep.mubr.f32.mxu1 %v1740_v31  ;;  %815 = vrot.lane.b32.xlu0 %v5577_v7, %s5004_s28  ;;  %v1747_v7 = vmax.f32 %v1609_v52, 0.0 }
 0x14e   : > { %v1752_v39 = vmax.f32 %v1634_v57, 0.0 }
 0x150   : > { %4461 = vmatmul.mubr.f32.gmra.mrb[70].mxu1 %v1741_v42  ;;  %821 = vrot.lane.b32.xlu1 %v5601_v27, %s5004_s28  ;;  %v1629_v27 = vadd.f32 %v5804_v35, %v5662_v18  ;;  %v1644_v35 = vadd.f32 %v5662_v18, %v5831_v51 }
 0x151   : > { %4463 = vmatprep.mubr.f32.mxu1 %v1742_v37  ;;  %819 = vrot.lane.b32.xlu0 %v5593_v48, %s5004_s28  ;;  %v1749_v48 = vmax.f32 %v1619_v23, 0.0 }
 0x152   : > { %v1754_v49 = vmax.f32 %v1644_v35, 0.0 }
 0x154   : > { %4464 = vmatmul.mubr.f32.gmra.mrb[72].mxu1 %v1743_v33  ;;  %825 = vrot.lane.b32.xlu1 %v5428_v61, %s5004_s28  ;;  %v1639_v61 = vadd.f32 %v5814_v2, %v5662_v18  ;;  %v1654_v2 = vadd.f32 %v5662_v18, %v5841_v28 }
 0x155   : > { %4466 = vmatprep.mubr.f32.mxu1 %v1744_v25  ;;  %823 = vrot.lane.b32.xlu0 %v5425_v1, %s5004_s28  ;;  %v1751_v1 = vmax.f32 %v1629_v27, 0.0 }
 0x156   : > { %v1756_v51 = vmax.f32 %v1654_v2, 0.0 }
 0x158   : > { %4467 = vmatmul.mubr.f32.gmra.mrb[74].mxu1 %v1745_v29  ;;  %829 = vrot.lane.b32.xlu1 %v5434_v6, %s5004_s28  ;;  %v1649_v6 = vadd.f32 %v5824_v38, %v5662_v18  ;;  %v1664_v38 = vadd.f32 %v5662_v18, %v5851_v46  ;;  %v1679_v46 = vadd.f32 %v5856_v40, %v5662_v18 }
 0x159   : > { %4469 = vmatprep.mubr.f32.mxu1 %v1746_v12  ;;  %827 = vrot.lane.b32.xlu0 %v5430_v60, %s5004_s28  ;;  %v1753_v60 = vmax.f32 %v1639_v61, 0.0  ;;  %v1699_v40 = vadd.f32 %v5882_v16, %v5662_v18 }
 0x15a   : > { %v1758_v28 = vmax.f32 %v1664_v38, 0.0 }
 0x15b   : > { %v1765_v9 = vmax.f32 %v1699_v40, 0.0 }
 0x15c   : > { %4470 = vmatmul.mubr.f32.gmra.mrb[76].mxu1 %v1747_v7  ;;  %833 = vrot.lane.b32.xlu1 %v5458_v54, %s5004_s28  ;;  %v1659_v54 = vadd.f32 %v5834_v44, %v5662_v18  ;;  %v1674_v44 = vadd.f32 %v5662_v18, %v5863_v24  ;;  %v1694_v24 = vadd.f32 %v5662_v18, %v5886_v4  ;;  %v722_v4 = vpop.permute.xlu1 %721 }
 0x15d   : > { %4472 = vmatprep.mubr.f32.mxu1 %v1748_v50  ;;  %831 = vrot.lane.b32.xlu0 %v5452_v45, %s5004_s28  ;;  %v1755_v45 = vmax.f32 %v1649_v6, 0.0  ;;  %v917_v55 = vsel %vm907_vm2, %v722_v4, 0.0 }
 0x15e   : > { %v1760_v19 = vmax.f32 %v1674_v44, 0.0  ;;  %v1764_v3 = vmax.f32 %v1694_v24, 0.0 }
 0x160   : > { %4473 = vmatmul.mubr.f32.gmra.mrb[78].mxu1 %v1749_v48  ;;  %837 = vrot.lane.b32.xlu1 %v5474_v20, %s5004_s28  ;;  %v1669_v20 = vadd.f32 %v5844_v8, %v5662_v18  ;;  %v1689_v8 = vadd.f32 %v5870_v21, %v5662_v18 }
 0x161   : > { %4475 = vmatprep.mubr.f32.mxu1 %v1750_v59  ;;  %835 = vrot.lane.b32.xlu0 %v5460_v30, %s5004_s28  ;;  %v1757_v30 = vmax.f32 %v1659_v54, 0.0 }
 0x162   : > { %v1759_v36 = vmax.f32 %v1669_v20, 0.0  ;;  %v1763_v47 = vmax.f32 %v1689_v8, 0.0 }
 0x164   : > { %4476 = vmatmul.mubr.f32.gmra.mrb[80].mxu1 %v1751_v1  ;;  %841 = vrot.lane.b32.xlu1 %v5502_v22, %s5004_s28  ;;  %v1761_v22 = vmax.f32 %v1679_v46, 0.0 }
 0x165   : > { %4478 = vmatprep.mubr.f32.mxu1 %v1752_v39  ;;  %839 = vrot.lane.b32.xlu0 %v5479_v15, %s5004_s28  ;;  %v1684_v15 = vadd.f32 %v5662_v18, %v5876_v10  ;;  %v716_v10 = vpop.permute.xlu0 %715  ;;  %v726_v18 = vpop.permute.xlu1 %725 }
 0x166   : > { %v908_v21 = vsel %vm907_vm2, %v716_v10, 0.0  ;;  %v923_v43 = vsel %vm907_vm2, %v726_v18, 0.0 }
 0x167   : > { %v1762_v58 = vmax.f32 %v1684_v15, 0.0 }
 0x168   : > { %4479 = vmatmul.mubr.f32.gmra.mrb[82].mxu1 %v1753_v60 }
 0x169   : > { %4481 = vmatprep.mubr.f32.mxu1 %v1754_v49  ;;  %v718_v16 = vpop.permute.xlu0 %717  ;;  %v730_v26 = vpop.permute.xlu1 %729 }
 0x16a   : > { %v911_v63 = vsel %vm907_vm2, %v718_v16, 0.0  ;;  %v929_v31 = vsel %vm907_vm2, %v730_v26, 0.0  ;;  %v6024_v26 = vld [vmem:[%s6710_s5] ss:$0 sm:$0xff] }
 0x16c   : > { %4482 = vmatmul.mubr.f32.gmra.mrb[84].mxu1 %v1755_v45 }
 0x16d   : > { %4484 = vmatprep.mubr.f32.mxu1 %v1756_v51  ;;  %v724_v32 = vpop.permute.xlu0 %723  ;;  %v734_v34 = vpop.permute.xlu1 %733 }
 0x16e   : > { %v920_v53 = vsel %vm907_vm2, %v724_v32, 0.0  ;;  %v935_v42 = vsel %vm907_vm2, %v734_v34, 0.0 }
 0x170   : > { %4485 = vmatmul.mubr.f32.gmra.mrb[86].mxu1 %v1757_v30 }
 0x171   : > { %4487 = vmatprep.mubr.f32.mxu1 %v1758_v28  ;;  %v728_v13 = vpop.permute.xlu0 %727  ;;  %v738_v37 = vpop.permute.xlu1 %737 }
 0x172   : > { %v926_v62 = vsel %vm907_vm2, %v728_v13, 0.0  ;;  %v941_v33 = vsel %vm907_vm2, %v738_v37, 0.0 }
 0x174   : > { %4488 = vmatmul.mubr.f32.gmra.mrb[88].mxu1 %v1759_v36 }
 0x175   : > { %4490 = vmatprep.mubr.f32.mxu1 %v1760_v19  ;;  %v732_v0 = vpop.permute.xlu0 %731  ;;  %v742_v25 = vpop.permute.xlu1 %741 }
 0x176   : > { %v932_v41 = vsel %vm907_vm2, %v732_v0, 0.0  ;;  %v947_v29 = vsel %vm907_vm2, %v742_v25, 0.0 }
 0x178   : > { %4491 = vmatmul.mubr.f32.gmra.mrb[90].mxu1 %v1761_v22 }
 0x179   : > { %4493 = vmatprep.mubr.f32.mxu1 %v1762_v58  ;;  %v736_v5 = vpop.permute.xlu0 %735  ;;  %v746_v12 = vpop.permute.xlu1 %745 }
 0x17a   : > { %v938_v52 = vsel %vm907_vm2, %v736_v5, 0.0  ;;  %v953_v7 = vsel %vm907_vm2, %v746_v12, 0.0 }
 0x17c   : > { %4494 = vmatmul.mubr.f32.gmra.mrb[92].mxu1 %v1763_v47 }
 0x17d   : > { %4496 = vmatprep.mubr.f32.mxu1 %v1764_v3  ;;  %v740_v14 = vpop.permute.xlu0 %739  ;;  %v750_v50 = vpop.permute.xlu1 %749 }
 0x17e   : > { %v944_v23 = vsel %vm907_vm2, %v740_v14, 0.0  ;;  %v959_v48 = vsel %vm907_vm2, %v750_v50, 0.0 }
 0x180   : > { %4497 = vmatmul.mubr.f32.gmra.mrb[94].mxu1 %v1765_v9 }
 0x181   : > { %v744_v17 = vpop.permute.xlu0 %743  ;;  %v754_v59 = vpop.permute.xlu1 %753 }
 0x182   : > { %v950_v27 = vsel %vm907_vm2, %v744_v17, 0.0  ;;  %v965_v1 = vsel %vm907_vm2, %v754_v59, 0.0 }
 0x184   : > { %909 = vadd.xlane.f32.xlu0 %v908_v21 }
 0x185   : > { %v748_v57 = vpop.permute.xlu0 %747  ;;  %v758_v39 = vpop.permute.xlu1 %757 }
 0x186   : > { %v956_v61 = vsel %vm907_vm2, %v748_v57, 0.0  ;;  %v971_v60 = vsel %vm907_vm2, %v758_v39, 0.0 }
 0x188   : > { %915 = vadd.xlane.f32.xlu0 %v914_v56  ;;  %912 = vadd.xlane.f32.xlu1 %v911_v63 }
 0x189   : > { %v752_v35 = vpop.permute.xlu0 %751  ;;  %v762_v49 = vpop.permute.xlu1 %761 }
 0x18a   : > { %v962_v6 = vsel %vm907_vm2, %v752_v35, 0.0  ;;  %v977_v45 = vsel %vm907_vm2, %v762_v49, 0.0 }
 0x18c   : > { %918 = vadd.xlane.f32.xlu0 %v917_v55  ;;  %921 = vadd.xlane.f32.xlu1 %v920_v53 }
 0x18d   : > { %v756_v2 = vpop.permute.xlu0 %755  ;;  %v766_v51 = vpop.permute.xlu1 %765 }
 0x18e   : > { %v968_v54 = vsel %vm907_vm2, %v756_v2, 0.0  ;;  %v983_v30 = vsel %vm907_vm2, %v766_v51, 0.0 }
 0x190   : > { %924 = vadd.xlane.f32.xlu0 %v923_v43  ;;  %927 = vadd.xlane.f32.xlu1 %v926_v62 }
 0x191   : > { %v760_v38 = vpop.permute.xlu0 %759  ;;  %v770_v28 = vpop.permute.xlu1 %769 }
 0x192   : > { %v974_v20 = vsel %vm907_vm2, %v760_v38, 0.0  ;;  %v989_v36 = vsel %vm907_vm2, %v770_v28, 0.0 }
 0x194   : > { %930 = vadd.xlane.f32.xlu0 %v929_v31  ;;  %933 = vadd.xlane.f32.xlu1 %v932_v41 }
 0x195   : > { %v764_v44 = vpop.permute.xlu0 %763  ;;  %v774_v19 = vpop.permute.xlu1 %773 }
 0x196   : > { %v980_v46 = vsel %vm907_vm2, %v764_v44, 0.0  ;;  %v995_v22 = vsel %vm907_vm2, %v774_v19, 0.0 }
 0x198   : > { %936 = vadd.xlane.f32.xlu0 %v935_v42  ;;  %939 = vadd.xlane.f32.xlu1 %v938_v52 }
 0x199   : > { %v768_v15 = vpop.permute.xlu0 %767  ;;  %v778_v58 = vpop.permute.xlu1 %777 }
 0x19a   : > { %v986_v8 = vsel %vm907_vm2, %v768_v15, 0.0  ;;  %v1001_v47 = vsel %vm907_vm2, %v778_v58, 0.0 }
 0x19c   : > { %942 = vadd.xlane.f32.xlu0 %v941_v33  ;;  %945 = vadd.xlane.f32.xlu1 %v944_v23 }
 0x19d   : > { %v772_v24 = vpop.permute.xlu0 %771  ;;  %v782_v3 = vpop.permute.xlu1 %781 }
 0x19e   : > { %v992_v40 = vsel %vm907_vm2, %v772_v24, 0.0  ;;  %v1007_v10 = vsel %vm907_vm2, %v782_v3, 0.0 }
 0x1a0   : > { %948 = vadd.xlane.f32.xlu0 %v947_v29  ;;  %951 = vadd.xlane.f32.xlu1 %v950_v27 }
 0x1a1   : > { %v776_v9 = vpop.permute.xlu0 %775  ;;  %v786_v11 = vpop.permute.xlu1 %785 }
 0x1a2   : > { %v998_v21 = vsel %vm907_vm2, %v776_v9, 0.0  ;;  %v1013_v4 = vsel %vm907_vm2, %v786_v11, 0.0 }
 0x1a4   : > { %954 = vadd.xlane.f32.xlu0 %v953_v7  ;;  %957 = vadd.xlane.f32.xlu1 %v956_v61 }
 0x1a5   : > { %v780_v56 = vpop.permute.xlu0 %779  ;;  %v790_v18 = vpop.permute.xlu1 %789 }
 0x1a6   : > { %v1004_v55 = vsel %vm907_vm2, %v780_v56, 0.0  ;;  %v1019_v43 = vsel %vm907_vm2, %v790_v18, 0.0 }
 0x1a8   : > { %960 = vadd.xlane.f32.xlu0 %v959_v48  ;;  %963 = vadd.xlane.f32.xlu1 %v962_v6 }
 0x1a9   : > { %v784_v16 = vpop.permute.xlu0 %783  ;;  %v794_v32 = vpop.permute.xlu1 %793 }
 0x1aa   : > { %v1010_v63 = vsel %vm907_vm2, %v784_v16, 0.0  ;;  %v1025_v34 = vsel %vm907_vm2, %v794_v32, 0.0 }
 0x1ac   : > { %966 = vadd.xlane.f32.xlu0 %v965_v1  ;;  %969 = vadd.xlane.f32.xlu1 %v968_v54 }
 0x1ad   : > { %v788_v53 = vpop.permute.xlu0 %787  ;;  %v798_v0 = vpop.permute.xlu1 %797 }
 0x1ae   : > { %v1016_v62 = vsel %vm907_vm2, %v788_v53, 0.0  ;;  %v1031_v5 = vsel %vm907_vm2, %v798_v0, 0.0 }
 0x1b0   : > { %972 = vadd.xlane.f32.xlu0 %v971_v60  ;;  %975 = vadd.xlane.f32.xlu1 %v974_v20 }
 0x1b1   : > { %v792_v25 = vpop.permute.xlu0 %791  ;;  %v802_v23 = vpop.permute.xlu1 %801 }
 0x1b2   : > { %v1022_v14 = vsel %vm907_vm2, %v792_v25, 0.0  ;;  %v1037_v27 = vsel %vm907_vm2, %v802_v23, 0.0 }
 0x1b4   : > { %978 = vadd.xlane.f32.xlu0 %v977_v45  ;;  %981 = vadd.xlane.f32.xlu1 %v980_v46 }
 0x1b5   : > { %v796_v48 = vpop.permute.xlu0 %795  ;;  %v806_v60 = vpop.permute.xlu1 %805 }
 0x1b6   : > { %v1028_v61 = vsel %vm907_vm2, %v796_v48, 0.0  ;;  %v1043_v45 = vsel %vm907_vm2, %v806_v60, 0.0 }
 0x1b8   : > { %984 = vadd.xlane.f32.xlu0 %v983_v30  ;;  %987 = vadd.xlane.f32.xlu1 %v986_v8 }
 0x1b9   : > { %v800_v2 = vpop.permute.xlu0 %799  ;;  %v810_v28 = vpop.permute.xlu1 %809 }
 0x1ba   : > { %v1034_v38 = vsel %vm907_vm2, %v800_v2, 0.0  ;;  %v1049_v19 = vsel %vm907_vm2, %v810_v28, 0.0 }
 0x1bc   : > { %990 = vadd.xlane.f32.xlu0 %v989_v36  ;;  %993 = vadd.xlane.f32.xlu1 %v992_v40 }
 0x1bd   : > { %v804_v46 = vpop.permute.xlu0 %803 }
 0x1be   : > { %v1040_v8 = vsel %vm907_vm2, %v804_v46, 0.0 }
 0x1c0   : > { %996 = vadd.xlane.f32.xlu0 %v995_v22  ;;  %999 = vadd.xlane.f32.xlu1 %v998_v21 }
 0x1c1   : > { %v808_v9 = vpop.permute.xlu0 %807 }
 0x1c2   : > { %v1046_v56 = vsel %vm907_vm2, %v808_v9, 0.0 }
 0x1c4   : > { %1002 = vadd.xlane.f32.xlu0 %v1001_v47  ;;  %1005 = vadd.xlane.f32.xlu1 %v1004_v55  ;;  %v814_v47 = vpop.permute.xlu1 %813 }
 0x1c8   : > { %1008 = vadd.xlane.f32.xlu0 %v1007_v10  ;;  %1011 = vadd.xlane.f32.xlu1 %v1010_v63  ;;  %v1055_v10 = vsel %vm907_vm2, %v814_v47, 0.0  ;;  %v818_v18 = vpop.permute.xlu1 %817  ;;  %v812_v63 = vpop.permute.xlu0 %811 }
 0x1c9   : > { %v1061_v32 = vsel %vm907_vm2, %v818_v18, 0.0 }
 0x1cc   : > { %1014 = vadd.xlane.f32.xlu0 %v1013_v4  ;;  %1017 = vadd.xlane.f32.xlu1 %v1016_v62  ;;  %v822_v62 = vpop.permute.xlu1 %821 }
 0x1d0   : > { %1020 = vadd.xlane.f32.xlu0 %v1019_v43  ;;  %1023 = vadd.xlane.f32.xlu1 %v1022_v14  ;;  %v826_v14 = vpop.permute.xlu1 %825 }
 0x1d4   : > { %1026 = vadd.xlane.f32.xlu0 %v1025_v34  ;;  %1029 = vadd.xlane.f32.xlu1 %v1028_v61  ;;  %v1052_v34 = vsel %vm907_vm2, %v812_v63, 0.0  ;;  %v830_v61 = vpop.permute.xlu1 %829 }
 0x1d7   : > { %v4405_v31 = vpop.f32.mrb[32].mxu1 }
 0x1d8   : > { %v1861_v13 = vadd.f32 %v4405_v31, %v6024_v26  ;;  %v1855_v42 = vpop.f32.mrb[33].mxu1  ;;  %1032 = vadd.xlane.f32.xlu0 %v1031_v5  ;;  %1035 = vadd.xlane.f32.xlu1 %v1034_v38  ;;  %v834_v38 = vpop.permute.xlu1 %833 }
 0x1d9   : > { %v1856_v37 = vadd.f32 %v6024_v26, %v1855_v42 }
 0x1da   : > { %v2175_v29 = vmax.f32 %v1861_v13, 0.0 }
 0x1db   : > { %v2174_v33 = vmax.f32 %v1856_v37, 0.0  ;;  %v4408_v41 = vpop.f32.mrb[34].mxu1 }
 0x1dc   : > { %v1871_v52 = vadd.f32 %v4408_v41, %v6024_v26  ;;  %v1865_v12 = vpop.f32.mrb[35].mxu1  ;;  %1038 = vadd.xlane.f32.xlu0 %v1037_v27  ;;  %1041 = vadd.xlane.f32.xlu1 %v1040_v8  ;;  %v1067_v41 = vsel %vm907_vm2, %v822_v62, 0.0  ;;  %v838_v8 = vpop.permute.xlu1 %837 }
 0x1dd   : > { %v1866_v7 = vadd.f32 %v6024_v26, %v1865_v12  ;;  %4531 = vmatprep.mubr.f32.mxu0 %v2174_v33  ;;  %v816_v33 = vpop.permute.xlu0 %815 }
 0x1de   : > { %4532 = vmatmul.mubr.f32.vlgmr.msra.gmra.mrb[32].mxu0 %v2175_v29  ;;  %v2177_v59 = vmax.f32 %v1871_v52, 0.0  ;;  %v1058_v29 = vsel %vm907_vm2, %v816_v33, 0.0 }
 0x1df   : > { %v2176_v50 = vmax.f32 %v1866_v7, 0.0  ;;  %v4411_v17 = vpop.f32.mrb[36].mxu1 }
 0x1e0   : > { %v1881_v57 = vadd.f32 %v4411_v17, %v6024_v26  ;;  %v1875_v1 = vpop.f32.mrb[37].mxu1  ;;  %1044 = vadd.xlane.f32.xlu0 %v1043_v45  ;;  %1047 = vadd.xlane.f32.xlu1 %v1046_v56  ;;  %v1073_v17 = vsel %vm907_vm2, %v826_v14, 0.0  ;;  %v842_v56 = vpop.permute.xlu1 %841 }
 0x1e1   : > { %v1876_v39 = vadd.f32 %v6024_v26, %v1875_v1  ;;  %4534 = vmatprep.mubr.f32.mxu0 %v2176_v50  ;;  %v820_v50 = vpop.permute.xlu0 %819 }
 0x1e2   : > { %v2179_v35 = vmax.f32 %v1881_v57, 0.0  ;;  %4535 = vmatmul.mubr.f32.gmra.mrb[34].mxu0 %v2177_v59  ;;  %v1064_v59 = vsel %vm907_vm2, %v820_v50, 0.0 }
 0x1e3   : > { %v2178_v6 = vmax.f32 %v1876_v39, 0.0  ;;  %v4414_v49 = vpop.f32.mrb[38].mxu1 }
 0x1e4   : > { %v1891_v54 = vadd.f32 %v4414_v49, %v6024_v26  ;;  %v1885_v51 = vpop.f32.mrb[39].mxu1  ;;  %1050 = vadd.xlane.f32.xlu0 %v1049_v19  ;;  %1053 = vadd.xlane.f32.xlu1 %v1052_v34 }
 0x1e5   : > { %v1886_v30 = vadd.f32 %v6024_v26, %v1885_v51  ;;  %4537 = vmatprep.mubr.f32.mxu0 %v2178_v6  ;;  %v824_v60 = vpop.permute.xlu0 %823  ;;  %v1079_v6 = vsel %vm907_vm2, %v830_v61, 0.0 }
 0x1e6   : > { %v2181_v20 = vmax.f32 %v1891_v54, 0.0  ;;  %4538 = vmatmul.mubr.f32.gmra.mrb[36].mxu0 %v2179_v35  ;;  %v1070_v45 = vsel %vm907_vm2, %v824_v60, 0.0 }
 0x1e7   : > { %v2180_v44 = vmax.f32 %v1886_v30, 0.0  ;;  %v4417_v36 = vpop.f32.mrb[40].mxu1 }
 0x1e8   : > { %v1901_v15 = vadd.f32 %v4417_v36, %v6024_v26  ;;  %v1895_v22 = vpop.f32.mrb[41].mxu1  ;;  %1056 = vadd.xlane.f32.xlu0 %v1055_v10  ;;  %1059 = vadd.xlane.f32.xlu1 %v1058_v29 }
 0x1e9   : > { %v1896_v58 = vadd.f32 %v6024_v26, %v1895_v22  ;;  %4540 = vmatprep.mubr.f32.mxu0 %v2180_v44  ;;  %v828_v28 = vpop.permute.xlu0 %827  ;;  %v1085_v44 = vsel %vm907_vm2, %v834_v38, 0.0 }
 0x1ea   : > { %v2183_v24 = vmax.f32 %v1901_v15, 0.0  ;;  %4541 = vmatmul.mubr.f32.gmra.mrb[38].mxu0 %v2181_v20  ;;  %v1076_v19 = vsel %vm907_vm2, %v828_v28, 0.0 }
 0x1eb   : > { %v2182_v40 = vmax.f32 %v1896_v58, 0.0  ;;  %v4420_v3 = vpop.f32.mrb[42].mxu1 }
 0x1ec   : > { %v1911_v21 = vadd.f32 %v4420_v3, %v6024_v26  ;;  %v1905_v11 = vpop.f32.mrb[43].mxu1  ;;  %1062 = vadd.xlane.f32.xlu0 %v1061_v32  ;;  %1065 = vadd.xlane.f32.xlu1 %v1064_v59 }
 0x1ed   : > { %v1906_v4 = vadd.f32 %v6024_v26, %v1905_v11  ;;  %4543 = vmatprep.mubr.f32.mxu0 %v2182_v40  ;;  %v832_v47 = vpop.permute.xlu0 %831  ;;  %v1091_v40 = vsel %vm907_vm2, %v838_v8, 0.0 }
 0x1ee   : > { %v2185_v55 = vmax.f32 %v1911_v21, 0.0  ;;  %4544 = vmatmul.mubr.f32.gmra.mrb[40].mxu0 %v2183_v24  ;;  %v1082_v10 = vsel %vm907_vm2, %v832_v47, 0.0 }
 0x1ef   : > { %v2184_v16 = vmax.f32 %v1906_v4, 0.0  ;;  %v4423_v43 = vpop.f32.mrb[44].mxu1 }
 0x1f0   : > { %v1921_v31 = vadd.f32 %v4423_v43, %v6024_v26  ;;  %v1915_v53 = vpop.f32.mrb[45].mxu1  ;;  %1068 = vadd.xlane.f32.xlu0 %v1067_v41  ;;  %1071 = vadd.xlane.f32.xlu1 %v1070_v45 }
 0x1f1   : > { %v1916_v13 = vadd.f32 %v6024_v26, %v1915_v53  ;;  %4546 = vmatprep.mubr.f32.mxu0 %v2184_v16  ;;  %v836_v18 = vpop.permute.xlu0 %835  ;;  %v1097_v16 = vsel %vm907_vm2, %v842_v56, 0.0 }
 0x1f2   : > { %v2187_v42 = vmax.f32 %v1921_v31, 0.0  ;;  %4547 = vmatmul.mubr.f32.gmra.mrb[42].mxu0 %v2185_v55  ;;  %v1088_v32 = vsel %vm907_vm2, %v836_v18, 0.0 }
 0x1f3   : > { %v2186_v37 = vmax.f32 %v1916_v13, 0.0  ;;  %v4426_v0 = vpop.f32.mrb[46].mxu1 }
 0x1f4   : > { %v1931_v25 = vadd.f32 %v4426_v0, %v6024_v26  ;;  %v1925_v5 = vpop.f32.mrb[47].mxu1  ;;  %1074 = vadd.xlane.f32.xlu0 %v1073_v17  ;;  %1077 = vadd.xlane.f32.xlu1 %v1076_v19 }
 0x1f5   : > { %v1926_v52 = vadd.f32 %v6024_v26, %v1925_v5  ;;  %4549 = vmatprep.mubr.f32.mxu0 %v2186_v37 }
 0x1f6   : > { %v2189_v12 = vmax.f32 %v1931_v25, 0.0  ;;  %4550 = vmatmul.mubr.f32.gmra.mrb[44].mxu0 %v2187_v42  ;;  %v840_v42 = vpop.permute.xlu0 %839 }
 0x1f7   : > { %v2188_v7 = vmax.f32 %v1926_v52, 0.0  ;;  %v4429_v23 = vpop.f32.mrb[48].mxu1  ;;  %v1094_v0 = vsel %vm907_vm2, %v840_v42, 0.0 }
 0x1f8   : > { %v1941_v48 = vadd.f32 %v4429_v23, %v6024_v26  ;;  %v1935_v27 = vpop.f32.mrb[49].mxu1  ;;  %1080 = vadd.xlane.f32.xlu0 %v1079_v6  ;;  %1083 = vadd.xlane.f32.xlu1 %v1082_v10 }
 0x1f9   : > { %v1936_v57 = vadd.f32 %v6024_v26, %v1935_v27  ;;  %4552 = vmatprep.mubr.f32.mxu0 %v2188_v7 }
 0x1fa   : > { %v2191_v1 = vmax.f32 %v1941_v48, 0.0  ;;  %4553 = vmatmul.mubr.f32.gmra.mrb[46].mxu0 %v2189_v12 }
 0x1fb   : > { %v2190_v39 = vmax.f32 %v1936_v57, 0.0  ;;  %v4432_v35 = vpop.f32.mrb[50].mxu1 }
 0x1fc   : > { %v1951_v49 = vadd.f32 %v4432_v35, %v6024_v26  ;;  %v1945_v2 = vpop.f32.mrb[51].mxu1  ;;  %1086 = vadd.xlane.f32.xlu0 %v1085_v44  ;;  %1089 = vadd.xlane.f32.xlu1 %v1088_v32 }
 0x1fd   : > { %v1946_v54 = vadd.f32 %v6024_v26, %v1945_v2  ;;  %4555 = vmatprep.mubr.f32.mxu0 %v2190_v39 }
 0x1fe   : > { %v2193_v51 = vmax.f32 %v1951_v49, 0.0  ;;  %4556 = vmatmul.mubr.f32.gmra.mrb[48].mxu0 %v2191_v1 }
 0x1ff   : > { %v2192_v30 = vmax.f32 %v1946_v54, 0.0  ;;  %v4435_v20 = vpop.f32.mrb[52].mxu1 }
 0x200   : > { %v1961_v36 = vadd.f32 %v4435_v20, %v6024_v26  ;;  %v1955_v46 = vpop.f32.mrb[53].mxu1  ;;  %1092 = vadd.xlane.f32.xlu0 %v1091_v40  ;;  %1095 = vadd.xlane.f32.xlu1 %v1094_v0 }
 0x201   : > { %v1956_v15 = vadd.f32 %v6024_v26, %v1955_v46  ;;  %4558 = vmatprep.mubr.f32.mxu0 %v2192_v30 }
 0x202   : > { %v2195_v22 = vmax.f32 %v1961_v36, 0.0  ;;  %4559 = vmatmul.mubr.f32.gmra.mrb[50].mxu0 %v2193_v51 }
 0x203   : > { %v2194_v58 = vmax.f32 %v1956_v15, 0.0  ;;  %v4438_v24 = vpop.f32.mrb[54].mxu1 }
 0x204   : > { %v1971_v3 = vadd.f32 %v4438_v24, %v6024_v26  ;;  %v1965_v9 = vpop.f32.mrb[55].mxu1  ;;  %1098 = vadd.xlane.f32.xlu0 %v1097_v16 }
 0x205   : > { %v1966_v21 = vadd.f32 %v6024_v26, %v1965_v9  ;;  %4561 = vmatprep.mubr.f32.mxu0 %v2194_v58 }
 0x206   : > { %v2197_v11 = vmax.f32 %v1971_v3, 0.0  ;;  %4562 = vmatmul.mubr.f32.gmra.mrb[52].mxu0 %v2195_v22 }
 0x207   : > { %v2196_v4 = vmax.f32 %v1966_v21, 0.0  ;;  %v4441_v55 = vpop.f32.mrb[56].mxu1 }
 0x208   : > { %v1981_v43 = vadd.f32 %v4441_v55, %v6024_v26  ;;  %v1975_v63 = vpop.f32.mrb[57].mxu1 }
 0x209   : > { %v1976_v31 = vadd.f32 %v6024_v26, %v1975_v63  ;;  %4564 = vmatprep.mubr.f32.mxu0 %v2196_v4 }
 0x20a   : > { %v2199_v53 = vmax.f32 %v1981_v43, 0.0  ;;  %4565 = vmatmul.mubr.f32.gmra.mrb[54].mxu0 %v2197_v11 }
 0x20b   : > { %v2198_v34 = vmax.f32 %v1976_v31, 0.0  ;;  %v4444_v13 = vpop.f32.mrb[58].mxu1 }
 0x20c   : > { %v1991_v62 = vadd.f32 %v4444_v13, %v6024_v26  ;;  %v1985_v37 = vpop.f32.mrb[59].mxu1 }
 0x20d   : > { %v1986_v33 = vadd.f32 %v6024_v26, %v1985_v37  ;;  %4567 = vmatprep.mubr.f32.mxu0 %v2198_v34 }
 0x20e   : > { %v2201_v41 = vmax.f32 %v1991_v62, 0.0  ;;  %4568 = vmatmul.mubr.f32.gmra.mrb[56].mxu0 %v2199_v53 }
 0x20f   : > { %v2200_v25 = vmax.f32 %v1986_v33, 0.0  ;;  %v4447_v5 = vpop.f32.mrb[60].mxu1 }
 0x210   : > { %v2001_v29 = vadd.f32 %v4447_v5, %v6024_v26  ;;  %v1995_v52 = vpop.f32.mrb[61].mxu1 }
 0x211   : > { %v1996_v12 = vadd.f32 %v6024_v26, %v1995_v52  ;;  %4570 = vmatprep.mubr.f32.mxu0 %v2200_v25 }
 0x212   : > { %v2203_v14 = vmax.f32 %v2001_v29, 0.0  ;;  %4571 = vmatmul.mubr.f32.gmra.mrb[58].mxu0 %v2201_v41 }
 0x213   : > { %v2202_v7 = vmax.f32 %v1996_v12, 0.0  ;;  %v4450_v23 = vpop.f32.mrb[62].mxu1 }
 0x214   : > { %v2011_v50 = vadd.f32 %v4450_v23, %v6024_v26  ;;  %v2005_v17 = vpop.f32.mrb[63].mxu1 }
 0x215   : > { %v2006_v48 = vadd.f32 %v6024_v26, %v2005_v17  ;;  %4573 = vmatprep.mubr.f32.mxu0 %v2202_v7 }
 0x216   : > { %v2205_v27 = vmax.f32 %v2011_v50, 0.0  ;;  %4574 = vmatmul.mubr.f32.gmra.mrb[60].mxu0 %v2203_v14 }
 0x217   : > { %v2204_v59 = vmax.f32 %v2006_v48, 0.0  ;;  %v4453_v57 = vpop.f32.mrb[64].mxu1 }
 0x218   : > { %v2021_v1 = vadd.f32 %v4453_v57, %v6024_v26  ;;  %v2015_v61 = vpop.f32.mrb[65].mxu1 }
 0x219   : > { %v2016_v39 = vadd.f32 %v6024_v26, %v2015_v61  ;;  %4576 = vmatprep.mubr.f32.mxu0 %v2204_v59 }
 0x21a   : > { %v2207_v35 = vmax.f32 %v2021_v1, 0.0  ;;  %4577 = vmatmul.mubr.f32.gmra.mrb[62].mxu0 %v2205_v27 }
 0x21b   : > { %v2206_v60 = vmax.f32 %v2016_v39, 0.0  ;;  %v4456_v6 = vpop.f32.mrb[66].mxu1 }
 0x21c   : > { %v2031_v49 = vadd.f32 %v4456_v6, %v6024_v26  ;;  %v2025_v2 = vpop.f32.mrb[67].mxu1 }
 0x21d   : > { %v2026_v45 = vadd.f32 %v6024_v26, %v2025_v2  ;;  %4579 = vmatprep.mubr.f32.mxu0 %v2206_v60 }
 0x21e   : > { %v2209_v54 = vmax.f32 %v2031_v49, 0.0  ;;  %4580 = vmatmul.mubr.f32.gmra.mrb[64].mxu0 %v2207_v35 }
 0x21f   : > { %v2208_v51 = vmax.f32 %v2026_v45, 0.0  ;;  %v4459_v38 = vpop.f32.mrb[68].mxu1 }
 0x220   : > { %v2041_v30 = vadd.f32 %v4459_v38, %v6024_v26  ;;  %v2035_v20 = vpop.f32.mrb[69].mxu1 }
 0x221   : > { %v2036_v28 = vadd.f32 %v6024_v26, %v2035_v20  ;;  %4582 = vmatprep.mubr.f32.mxu0 %v2208_v51 }
 0x222   : > { %v2211_v44 = vmax.f32 %v2041_v30, 0.0  ;;  %4583 = vmatmul.mubr.f32.gmra.mrb[66].mxu0 %v2209_v54 }
 0x223   : > { %v2210_v36 = vmax.f32 %v2036_v28, 0.0  ;;  %v4462_v46 = vpop.f32.mrb[70].mxu1 }
 0x224   : > { %v2051_v19 = vadd.f32 %v4462_v46, %v6024_v26  ;;  %v2045_v15 = vpop.f32.mrb[71].mxu1 }
 0x225   : > { %v2046_v22 = vadd.f32 %v6024_v26, %v2045_v15  ;;  %4585 = vmatprep.mubr.f32.mxu0 %v2210_v36 }
 0x226   : > { %v2213_v8 = vmax.f32 %v2051_v19, 0.0  ;;  %4586 = vmatmul.mubr.f32.gmra.mrb[68].mxu0 %v2211_v44 }
 0x227   : > { %v2212_v58 = vmax.f32 %v2046_v22, 0.0  ;;  %v4465_v24 = vpop.f32.mrb[72].mxu1 }
 0x228   : > { %v2061_v47 = vadd.f32 %v4465_v24, %v6024_v26  ;;  %v2055_v40 = vpop.f32.mrb[73].mxu1 }
 0x229   : > { %v2056_v3 = vadd.f32 %v6024_v26, %v2055_v40  ;;  %4588 = vmatprep.mubr.f32.mxu0 %v2212_v58 }
 0x22a   : > { %v2215_v9 = vmax.f32 %v2061_v47, 0.0  ;;  %4589 = vmatmul.mubr.f32.gmra.mrb[70].mxu0 %v2213_v8 }
 0x22b   : > { %v2214_v10 = vmax.f32 %v2056_v3, 0.0  ;;  %v4468_v21 = vpop.f32.mrb[74].mxu1 }
 0x22c   : > { %v2071_v11 = vadd.f32 %v4468_v21, %v6024_v26  ;;  %v2065_v56 = vpop.f32.mrb[75].mxu1 }
 0x22d   : > { %v2066_v4 = vadd.f32 %v6024_v26, %v2065_v56  ;;  %4591 = vmatprep.mubr.f32.mxu0 %v2214_v10 }
 0x22e   : > { %v2217_v55 = vmax.f32 %v2071_v11, 0.0  ;;  %4592 = vmatmul.mubr.f32.gmra.mrb[72].mxu0 %v2215_v9 }
 0x22f   : > { %v2216_v18 = vmax.f32 %v2066_v4, 0.0  ;;  %v4471_v16 = vpop.f32.mrb[76].mxu1  ;;  %v6117_v4 = vpop.xlane.xlu0 %909 }
 0x230   : > { %v2081_v43 = vadd.f32 %v4471_v16, %v6024_v26  ;;  %v2075_v63 = vpop.f32.mrb[77].mxu1  ;;  %v6123_v16 = vpop.xlane.xlu1 %912 }
 0x231   : > { %v2076_v32 = vadd.f32 %v6024_v26, %v2075_v63  ;;  %4594 = vmatprep.mubr.f32.mxu0 %v2216_v18 }
 0x232   : > { %v2219_v31 = vmax.f32 %v2081_v43, 0.0  ;;  %4595 = vmatmul.mubr.f32.gmra.mrb[74].mxu0 %v2217_v55 }
 0x233   : > { %v2218_v53 = vmax.f32 %v2076_v32, 0.0  ;;  %v4474_v34 = vpop.f32.mrb[78].mxu1  ;;  %v6119_v55 = vpop.xlane.xlu0 %915 }
 0x234   : > { %v2091_v13 = vadd.f32 %v4474_v34, %v6024_v26  ;;  %v2085_v42 = vpop.f32.mrb[79].mxu1  ;;  %v6127_v63 = vpop.xlane.xlu1 %921 }
 0x235   : > { %v2086_v62 = vadd.f32 %v6024_v26, %v2085_v42  ;;  %4597 = vmatprep.mubr.f32.mxu0 %v2218_v53 }
 0x236   : > { %v2221_v37 = vmax.f32 %v2091_v13, 0.0  ;;  %4598 = vmatmul.mubr.f32.gmra.mrb[76].mxu0 %v2219_v31 }
 0x237   : > { %v2220_v0 = vmax.f32 %v2086_v62, 0.0  ;;  %v4477_v33 = vpop.f32.mrb[80].mxu1  ;;  %v6121_v18 = vpop.xlane.xlu0 %918 }
 0x238   : > { %v2101_v41 = vadd.f32 %v4477_v33, %v6024_v26  ;;  %v2095_v25 = vpop.f32.mrb[81].mxu1  ;;  %v6152_v33 = vld [vmem:[%s6712_s7] ss:$0 sm:$0xff] }
 0x239   : > { %v2096_v5 = vadd.f32 %v6024_v26, %v2095_v25  ;;  %4600 = vmatprep.mubr.f32.mxu0 %v2220_v0 }
 0x23a   : > { %v2223_v29 = vmax.f32 %v2101_v41, 0.0  ;;  %4601 = vmatmul.mubr.f32.gmra.mrb[78].mxu0 %v2221_v37 }
 0x23b   : > { %v2222_v52 = vmax.f32 %v2096_v5, 0.0  ;;  %v4480_v12 = vpop.f32.mrb[82].mxu1  ;;  %v6125_v43 = vpop.xlane.xlu0 %924 }
 0x23c   : > { %v2111_v14 = vadd.f32 %v4480_v12, %v6024_v26  ;;  %v2105_v7 = vpop.f32.mrb[83].mxu1 }
 0x23d   : > { %v2106_v23 = vadd.f32 %v6024_v26, %v2105_v7  ;;  %4603 = vmatprep.mubr.f32.mxu0 %v2222_v52 }
 0x23e   : > { %v2225_v50 = vmax.f32 %v2111_v14, 0.0  ;;  %4604 = vmatmul.mubr.f32.gmra.mrb[80].mxu0 %v2223_v29 }
 0x23f   : > { %v2224_v17 = vmax.f32 %v2106_v23, 0.0  ;;  %v4483_v48 = vpop.f32.mrb[84].mxu1  ;;  %v6129_v32 = vpop.xlane.xlu0 %930 }
 0x240   : > { %v2121_v27 = vadd.f32 %v4483_v48, %v6024_v26  ;;  %v2115_v59 = vpop.f32.mrb[85].mxu1 }
 0x241   : > { %v2116_v57 = vadd.f32 %v6024_v26, %v2115_v59  ;;  %4606 = vmatprep.mubr.f32.mxu0 %v2224_v17 }
 0x242   : > { %v2227_v1 = vmax.f32 %v2121_v27, 0.0  ;;  %4607 = vmatmul.mubr.f32.gmra.mrb[82].mxu0 %v2225_v50 }
 0x243   : > { %v2226_v61 = vmax.f32 %v2116_v57, 0.0  ;;  %v4486_v39 = vpop.f32.mrb[86].mxu1  ;;  %v6133_v31 = vpop.xlane.xlu0 %936 }
 0x244   : > { %v2131_v35 = vadd.f32 %v4486_v39, %v6024_v26  ;;  %v2125_v60 = vpop.f32.mrb[87].mxu1 }
 0x245   : > { %v2126_v6 = vadd.f32 %v6024_v26, %v2125_v60  ;;  %4609 = vmatprep.mubr.f32.mxu0 %v2226_v61 }
 0x246   : > { %v2229_v49 = vmax.f32 %v2131_v35, 0.0  ;;  %4610 = vmatmul.mubr.f32.gmra.mrb[84].mxu0 %v2227_v1 }
 0x247   : > { %v2228_v2 = vmax.f32 %v2126_v6, 0.0  ;;  %v4489_v45 = vpop.f32.mrb[88].mxu1  ;;  %v6137_v34 = vpop.xlane.xlu0 %942 }
 0x248   : > { %v2141_v54 = vadd.f32 %v4489_v45, %v6024_v26  ;;  %v2135_v51 = vpop.f32.mrb[89].mxu1 }
 0x249   : > { %v2136_v38 = vadd.f32 %v6024_v26, %v2135_v51  ;;  %4612 = vmatprep.mubr.f32.mxu0 %v2228_v2 }
 0x24a   : > { %v2231_v30 = vmax.f32 %v2141_v54, 0.0  ;;  %4613 = vmatmul.mubr.f32.gmra.mrb[86].mxu0 %v2229_v49 }
 0x24b   : > { %v2230_v20 = vmax.f32 %v2136_v38, 0.0  ;;  %v4492_v28 = vpop.f32.mrb[90].mxu1  ;;  %v6141_v42 = vpop.xlane.xlu0 %948 }
 0x24c   : > { %v2151_v44 = vadd.f32 %v4492_v28, %v6024_v26  ;;  %v2145_v36 = vpop.f32.mrb[91].mxu1 }
 0x24d   : > { %v2146_v46 = vadd.f32 %v6024_v26, %v2145_v36  ;;  %4615 = vmatprep.mubr.f32.mxu0 %v2230_v20 }
 0x24e   : > { %v2233_v19 = vmax.f32 %v2151_v44, 0.0  ;;  %4616 = vmatmul.mubr.f32.gmra.mrb[88].mxu0 %v2231_v30 }
 0x24f   : > { %v2232_v15 = vmax.f32 %v2146_v46, 0.0  ;;  %v4495_v22 = vpop.f32.mrb[92].mxu1  ;;  %v6145_v37 = vpop.xlane.xlu0 %954 }
 0x250   : > { %v2161_v8 = vadd.f32 %v4495_v22, %v6024_v26  ;;  %v2155_v58 = vpop.f32.mrb[93].mxu1 }
 0x251   : > { %v2156_v24 = vadd.f32 %v6024_v26, %v2155_v58  ;;  %4618 = vmatprep.mubr.f32.mxu0 %v2232_v15 }
 0x252   : > { %v2235_v47 = vmax.f32 %v2161_v8, 0.0  ;;  %4619 = vmatmul.mubr.f32.gmra.mrb[90].mxu0 %v2233_v19 }
 0x253   : > { %v2234_v40 = vmax.f32 %v2156_v24, 0.0  ;;  %v4498_v3 = vpop.f32.mrb[94].mxu1  ;;  %v6155_v29 = vpop.xlane.xlu0 %960 }
 0x254   : > { %v2171_v9 = vadd.f32 %v4498_v3, %v6024_v26  ;;  %v2165_v10 = vpop.f32.mrb[95].mxu1 }
 0x255   : > { %v2166_v21 = vadd.f32 %v6024_v26, %v2165_v10  ;;  %4621 = vmatprep.mubr.f32.mxu0 %v2234_v40  ;;  %v6131_v26 = vpop.xlane.xlu1 %927 }
 0x256   : > { %v2237_v11 = vmax.f32 %v2171_v9, 0.0  ;;  %4622 = vmatmul.mubr.f32.gmra.mrb[92].mxu0 %v2235_v47 }
 0x257   : > { %v2236_v56 = vmax.f32 %v2166_v21, 0.0  ;;  %v6162_v59 = vpop.xlane.xlu0 %966 }
 0x259   : > { %4624 = vmatprep.mubr.f32.mxu0 %v2236_v56  ;;  %v6135_v53 = vpop.xlane.xlu1 %933 }
 0x25a   : > { %4625 = vmatmul.mubr.f32.gmra.mrb[94].mxu0 %v2237_v11 }
 0x25b   : > { %v6169_v51 = vpop.xlane.xlu0 %972 }
 0x25d   : > { %v6139_v13 = vpop.xlane.xlu1 %939 }
 0x25f   : > { %v6176_v40 = vpop.xlane.xlu0 %978 }
 0x261   : > { %v6143_v62 = vpop.xlane.xlu1 %945 }
 0x265   : > { %v6147_v0 = vpop.xlane.xlu1 %951 }
 0x269   : > { %v6158_v12 = vpop.xlane.xlu1 %957 }
 0x26d   : > { %v6164_v61 = vpop.xlane.xlu1 %963 }
 0x271   : > { %v6172_v30 = vpop.xlane.xlu1 %969 }
 0x275   : > { %v6178_v11 = vpop.xlane.xlu1 %975 }
 0x2b1   : > { %v4533_v41 = vpop.f32.mrb[32].mxu0 }
 0x2b2   : > { %v2333_v25 = vadd.f32 %v4533_v41, %v6152_v33  ;;  %v2327_v5 = vpop.f32.mrb[33].mxu0 }
 0x2b3   : > { %v2328_v52 = vadd.f32 %v6152_v33, %v2327_v5 }
 0x2b4   : > { %v3629_v14 = vmul.f32 -1.442695, %v2333_v25 }
 0x2b5   : > { %v3628_v7 = vmul.f32 -1.442695, %v2328_v52  ;;  %v4536_v23 = vpop.f32.mrb[34].mxu0 }
 0x2b6   : > { %4739 = vpow2.f32 %v3629_v14  ;;  %v2343_v50 = vadd.f32 %v4536_v23, %v6152_v33  ;;  %v2337_v17 = vpop.f32.mrb[35].mxu0 }
 0x2b7   : > { %4741 = vpow2.f32 %v3628_v7  ;;  %v2338_v48 = vadd.f32 %v6152_v33, %v2337_v17 }
 0x2b8   : > { %v3631_v27 = vmul.f32 -1.442695, %v2343_v50 }
 0x2b9   : > { %v3630_v57 = vmul.f32 -1.442695, %v2338_v48  ;;  %v4539_v1 = vpop.f32.mrb[36].mxu0  ;;  %v6182_v48 = vpop.xlane.xlu0 %984 }
 0x2ba   : > { %4743 = vpow2.f32 %v3631_v27  ;;  %v2353_v39 = vadd.f32 %v4539_v1, %v6152_v33  ;;  %v2347_v35 = vpop.f32.mrb[37].mxu0 }
 0x2bb   : > { %4745 = vpow2.f32 %v3630_v57  ;;  %v2348_v60 = vadd.f32 %v6152_v33, %v2347_v35  ;;  %v6186_v35 = vpop.xlane.xlu1 %981 }
 0x2bc   : > { %v3633_v6 = vmul.f32 -1.442695, %v2353_v39 }
 0x2bd   : > { %v3632_v49 = vmul.f32 -1.442695, %v2348_v60  ;;  %v4542_v2 = vpop.f32.mrb[38].mxu0 }
 0x2be   : > { %4747 = vpow2.f32 %v3633_v6  ;;  %v2363_v45 = vadd.f32 %v4542_v2, %v6152_v33  ;;  %v2357_v54 = vpop.f32.mrb[39].mxu0 }
 0x2bf   : > { %4749 = vpow2.f32 %v3632_v49  ;;  %v2358_v38 = vadd.f32 %v6152_v33, %v2357_v54 }
 0x2c0   : > { %v4740_v20 = vpop.eup %4739  ;;  %v3635_v28 = vmul.f32 -1.442695, %v2363_v45 }
 0x2c1   : > { %v4742_v44 = vpop.eup %4741  ;;  %v2839_v36 = vadd.f32 1.0, %v4740_v20  ;;  %v3634_v46 = vmul.f32 -1.442695, %v2358_v38  ;;  %v4545_v19 = vpop.f32.mrb[40].mxu0 }
 0x2c2   : > { %v2838_v15 = vadd.f32 1.0, %v4742_v44  ;;  %4751 = vpow2.f32 %v3635_v28  ;;  %v2373_v22 = vadd.f32 %v4545_v19, %v6152_v33  ;;  %v2367_v8 = vpop.f32.mrb[41].mxu0 }
 0x2c3   : > { %4753 = vrcp.f32 %v2839_v36  ;;  %v2368_v58 = vadd.f32 %v6152_v33, %v2367_v8 }
 0x2c4   : > { %v4744_v24 = vpop.eup %4743  ;;  %4755 = vrcp.f32 %v2838_v15  ;;  %v3637_v47 = vmul.f32 -1.442695, %v2373_v22  ;;  %v6192_v15 = vpop.xlane.xlu0 %990 }
 0x2c5   : > { %v4746_v3 = vpop.eup %4745  ;;  %v2841_v9 = vadd.f32 1.0, %v4744_v24  ;;  %4757 = vpow2.f32 %v3634_v46  ;;  %v3636_v10 = vmul.f32 -1.442695, %v2368_v58  ;;  %v4548_v21 = vpop.f32.mrb[42].mxu0 }
 0x2c6   : > { %4759 = vpow2.f32 %v3637_v47  ;;  %v2383_v56 = vadd.f32 %v4548_v21, %v6152_v33  ;;  %v2377_v41 = vpop.f32.mrb[43].mxu0  ;;  %v2840_v25 = vadd.f32 1.0, %v4746_v3  ;;  %v6194_v3 = vpop.xlane.xlu1 %987 }
 0x2c7   : > { %4761 = vrcp.f32 %v2841_v9  ;;  %v2378_v5 = vadd.f32 %v6152_v33, %v2377_v41 }
 0x2c8   : > { %v4748_v52 = vpop.eup %4747  ;;  %v3639_v14 = vmul.f32 -1.442695, %v2383_v56  ;;  %4763 = vpow2.f32 %v3636_v10 }
 0x2c9   : > { %v4750_v7 = vpop.eup %4749  ;;  %v3638_v23 = vmul.f32 -1.442695, %v2378_v5  ;;  %v4551_v50 = vpop.f32.mrb[44].mxu0  ;;  %v2843_v1 = vadd.f32 1.0, %v4748_v52 }
 0x2ca   : > { %v2842_v17 = vadd.f32 1.0, %v4750_v7  ;;  %4765 = vpow2.f32 %v3639_v14  ;;  %v2393_v27 = vadd.f32 %v4551_v50, %v6152_v33  ;;  %v2387_v57 = vpop.f32.mrb[45].mxu0 }
 0x2cb   : > { %4767 = vrcp.f32 %v2840_v25  ;;  %v2388_v39 = vadd.f32 %v6152_v33, %v2387_v57 }
 0x2cc   : > { %v4752_v60 = vpop.eup %4751  ;;  %4769 = vrcp.f32 %v2842_v17  ;;  %v3641_v6 = vmul.f32 -1.442695, %v2393_v27  ;;  %v6199_v17 = vpop.xlane.xlu0 %996 }
 0x2cd   : > { %v4754_v49 = vpop.eup %4753  ;;  %v2845_v2 = vadd.f32 1.0, %v4752_v60  ;;  %4771 = vpow2.f32 %v3638_v23  ;;  %v3640_v45 = vmul.f32 -1.442695, %v2388_v39  ;;  %v4554_v54 = vpop.f32.mrb[46].mxu0 }
 0x2ce   : > { %v4756_v38 = vpop.eup %4755  ;;  %4773 = vpow2.f32 %v3641_v6  ;;  %v2403_v20 = vadd.f32 %v4554_v54, %v6152_v33  ;;  %3096 = vrot.lane.b32.xlu0 %v4754_v49, %s5005_s16  ;;  %v2397_v28 = vpop.f32.mrb[47].mxu0 }
 0x2cf   : > { %v4758_v44 = vpop.eup %4757  ;;  %4775 = vrcp.f32 %v2843_v1  ;;  %v2398_v36 = vadd.f32 %v6152_v33, %v2397_v28  ;;  %3094 = vrot.lane.b32.xlu1 %v4756_v38, %s5005_s16  ;;  %v6202_v39 = vpop.xlane.xlu1 %993 }
 0x2d0   : > { %v4760_v46 = vpop.eup %4759  ;;  %v2844_v19 = vadd.f32 1.0, %v4758_v44  ;;  %4777 = vpow2.f32 %v3640_v45  ;;  %v3643_v22 = vmul.f32 -1.442695, %v2403_v20 }
 0x2d1   : > { %v4762_v8 = vpop.eup %4761  ;;  %4779 = vrcp.f32 %v2845_v2  ;;  %v2847_v58 = vadd.f32 1.0, %v4760_v46  ;;  %v3642_v24 = vmul.f32 -1.442695, %v2398_v36  ;;  %v4557_v47 = vpop.f32.mrb[48].mxu0 }
 0x2d2   : > { %4781 = vrcp.f32 %v2844_v19  ;;  %v2413_v9 = vadd.f32 %v4557_v47, %v6152_v33  ;;  %v2407_v10 = vpop.f32.mrb[49].mxu0  ;;  %v4764_v21 = vpop.eup %4763 }
 0x2d3   : > { %4783 = vrcp.f32 %v2847_v58  ;;  %v2408_v56 = vadd.f32 %v6152_v33, %v2407_v10  ;;  %3100 = vrot.lane.b32.xlu1 %v4762_v8, %s5005_s16  ;;  %v2846_v25 = vadd.f32 1.0, %v4764_v21  ;;  %v6210_v58 = vpop.xlane.xlu0 %1002 }
 0x2d4   : > { %v4766_v41 = vpop.eup %4765  ;;  %4785 = vpow2.f32 %v3643_v22  ;;  %v3645_v5 = vmul.f32 -1.442695, %v2413_v9  ;;  %v6212_v9 = vpop.xlane.xlu1 %999 }
 0x2d5   : > { %v4768_v52 = vpop.eup %4767  ;;  %v2849_v14 = vadd.f32 1.0, %v4766_v41  ;;  %4787 = vpow2.f32 %v3642_v24  ;;  %v3644_v7 = vmul.f32 -1.442695, %v2408_v56  ;;  %v4560_v23 = vpop.f32.mrb[50].mxu0 }
 0x2d6   : > { %v4770_v50 = vpop.eup %4769  ;;  %4789 = vrcp.f32 %v2846_v25  ;;  %v2423_v27 = vadd.f32 %v4560_v23, %v6152_v33  ;;  %v2417_v57 = vpop.f32.mrb[51].mxu0 }
 0x2d7   : > { %v4772_v1 = vpop.eup %4771  ;;  %4791 = vrcp.f32 %v2849_v14  ;;  %v2418_v60 = vadd.f32 %v6152_v33, %v2417_v57  ;;  %3102 = vrot.lane.b32.xlu0 %v4770_v50, %s5005_s16  ;;  %3098 = vrot.lane.b32.xlu1 %v4768_v52, %s5005_s16 }
 0x2d8   : > { %v4774_v6 = vpop.eup %4773  ;;  %v2848_v49 = vadd.f32 1.0, %v4772_v1  ;;  %4793 = vpow2.f32 %v3645_v5  ;;  %v3647_v2 = vmul.f32 -1.442695, %v2423_v27 }
 0x2d9   : > { %v4776_v45 = vpop.eup %4775  ;;  %v2851_v54 = vadd.f32 1.0, %v4774_v6  ;;  %4795 = vpow2.f32 %v3644_v7  ;;  %v4563_v38 = vpop.f32.mrb[52].mxu0  ;;  %v3646_v28 = vmul.f32 -1.442695, %v2418_v60 }
 0x2da   : > { %v4778_v20 = vpop.eup %4777  ;;  %4797 = vrcp.f32 %v2848_v49  ;;  %v2433_v44 = vadd.f32 %v4563_v38, %v6152_v33  ;;  %v2427_v36 = vpop.f32.mrb[53].mxu0 }
 0x2db   : > { %v4780_v46 = vpop.eup %4779  ;;  %4799 = vrcp.f32 %v2851_v54  ;;  %v2850_v19 = vadd.f32 1.0, %v4778_v20  ;;  %v2428_v22 = vadd.f32 %v6152_v33, %v2427_v36  ;;  %3104 = vrot.lane.b32.xlu1 %v4776_v45, %s5005_s16  ;;  %v6219_v6 = vpop.xlane.xlu0 %1008 }
 0x2dc   : > { %v4782_v8 = vpop.eup %4781  ;;  %4801 = vpow2.f32 %v3647_v2  ;;  %v3649_v24 = vmul.f32 -1.442695, %v2433_v44  ;;  %v6222_v38 = vpop.xlane.xlu1 %1005 }
 0x2dd   : > { %v4784_v47 = vpop.eup %4783  ;;  %4803 = vrcp.f32 %v2850_v19  ;;  %v3648_v10 = vmul.f32 -1.442695, %v2428_v22  ;;  %3106 = vrot.lane.b32.xlu0 %v4782_v8, %s5005_s16  ;;  %v4566_v21 = vpop.f32.mrb[54].mxu0 }
 0x2de   : > { %v4786_v56 = vpop.eup %4785  ;;  %4805 = vpow2.f32 %v3646_v28  ;;  %v2443_v41 = vadd.f32 %v4566_v21, %v6152_v33  ;;  %v2437_v25 = vpop.f32.mrb[55].mxu0 }
 0x2df   : > { %v4788_v5 = vpop.eup %4787  ;;  %v2853_v52 = vadd.f32 1.0, %v4786_v56  ;;  %4807 = vpow2.f32 %v3649_v24  ;;  %v2438_v14 = vadd.f32 %v6152_v33, %v2437_v25  ;;  %3108 = vrot.lane.b32.xlu1 %v4780_v46, %s5005_s16  ;;  %v6230_v25 = vpop.xlane.xlu0 %1014 }
 0x2e0   : > { %v4790_v7 = vpop.eup %4789  ;;  %v2852_v23 = vadd.f32 1.0, %v4788_v5  ;;  %4809 = vpow2.f32 %v3648_v10  ;;  %v3651_v50 = vmul.f32 -1.442695, %v2443_v41 }
 0x2e1   : > { %v4792_v27 = vpop.eup %4791  ;;  %4811 = vrcp.f32 %v2853_v52  ;;  %v3650_v57 = vmul.f32 -1.442695, %v2438_v14  ;;  %3110 = vrot.lane.b32.xlu0 %v4790_v7, %s5005_s16  ;;  %v4569_v1 = vpop.f32.mrb[56].mxu0 }
 0x2e2   : > { %v4794_v60 = vpop.eup %4793  ;;  %4813 = vrcp.f32 %v2852_v23  ;;  %v2453_v49 = vadd.f32 %v4569_v1, %v6152_v33  ;;  %v2447_v2 = vpop.f32.mrb[57].mxu0 }
 0x2e3   : > { %v4796_v45 = vpop.eup %4795  ;;  %v2855_v54 = vadd.f32 1.0, %v4794_v60  ;;  %4815 = vpow2.f32 %v3651_v50  ;;  %v2448_v20 = vadd.f32 %v6152_v33, %v2447_v2  ;;  %3112 = vrot.lane.b32.xlu1 %v4784_v47, %s5005_s16  ;;  %v6232_v7 = vpop.xlane.xlu1 %1011 }
 0x2e4   : > { %v4798_v28 = vpop.eup %4797  ;;  %v2854_v44 = vadd.f32 1.0, %v4796_v45  ;;  %4817 = vpow2.f32 %v3650_v57  ;;  %v3653_v36 = vmul.f32 -1.442695, %v2453_v49 }
 0x2e5   : > { %v4800_v46 = vpop.eup %4799  ;;  %4819 = vrcp.f32 %v2855_v54  ;;  %v3652_v19 = vmul.f32 -1.442695, %v2448_v20  ;;  %3114 = vrot.lane.b32.xlu0 %v4798_v28, %s5005_s16  ;;  %v4572_v22 = vpop.f32.mrb[58].mxu0 }
 0x2e6   : > { %v4802_v8 = vpop.eup %4801  ;;  %4821 = vrcp.f32 %v2854_v44  ;;  %v2463_v24 = vadd.f32 %v4572_v22, %v6152_v33  ;;  %v2457_v10 = vpop.f32.mrb[59].mxu0 }
 0x2e7   : > { %v4804_v21 = vpop.eup %4803  ;;  %v2857_v56 = vadd.f32 1.0, %v4802_v8  ;;  %4823 = vpow2.f32 %v3653_v36  ;;  %v2458_v47 = vadd.f32 %v6152_v33, %v2457_v10  ;;  %3116 = vrot.lane.b32.xlu1 %v4792_v27, %s5005_s16  ;;  %v6239_v22 = vpop.xlane.xlu0 %1020 }
 0x2e8   : > { %v4806_v41 = vpop.eup %4805  ;;  %4825 = vpow2.f32 %v3652_v19  ;;  %v3655_v5 = vmul.f32 -1.442695, %v2463_v24 }
 0x2e9   : > { %v4808_v52 = vpop.eup %4807  ;;  %4827 = vrcp.f32 %v2857_v56  ;;  %v2856_v14 = vadd.f32 1.0, %v4806_v41  ;;  %3118 = vrot.lane.b32.xlu0 %v4804_v21, %s5005_s16  ;;  %v4575_v23 = vpop.f32.mrb[60].mxu0  ;;  %v3654_v1 = vmul.f32 -1.442695, %v2458_v47 }
 0x2ea   : > { %v4810_v50 = vpop.eup %4809  ;;  %v2859_v57 = vadd.f32 1.0, %v4808_v52  ;;  %4829 = vpow2.f32 %v3655_v5  ;;  %v2473_v60 = vadd.f32 %v4575_v23, %v6152_v33  ;;  %v2467_v27 = vpop.f32.mrb[61].mxu0 }
 0x2eb   : > { %v4812_v49 = vpop.eup %4811  ;;  %4831 = vrcp.f32 %v2856_v14  ;;  %v2858_v2 = vadd.f32 1.0, %v4810_v50  ;;  %v2468_v45 = vadd.f32 %v6152_v33, %v2467_v27  ;;  %3120 = vrot.lane.b32.xlu1 %v4800_v46, %s5005_s16  ;;  %v6242_v46 = vpop.xlane.xlu1 %1017 }
 0x2ec   : > { %v4814_v54 = vpop.eup %4813  ;;  %4833 = vrcp.f32 %v2859_v57  ;;  %v3657_v20 = vmul.f32 -1.442695, %v2473_v60 }
 0x2ed   : > { %v4816_v28 = vpop.eup %4815  ;;  %4835 = vrcp.f32 %v2858_v2  ;;  %3122 = vrot.lane.b32.xlu0 %v4814_v54, %s5005_s16  ;;  %v4578_v44 = vpop.f32.mrb[62].mxu0  ;;  %v3656_v8 = vmul.f32 -1.442695, %v2468_v45 }
 0x2ee   : > { %v4818_v36 = vpop.eup %4817  ;;  %v2861_v19 = vadd.f32 1.0, %v4816_v28  ;;  %4837 = vpow2.f32 %v3654_v1  ;;  %v2483_v24 = vadd.f32 %v4578_v44, %v6152_v33  ;;  %v2477_v10 = vpop.f32.mrb[63].mxu0 }
 0x2ef   : > { %v4820_v21 = vpop.eup %4819  ;;  %v2860_v56 = vadd.f32 1.0, %v4818_v36  ;;  %4839 = vpow2.f32 %v3657_v20  ;;  %v2478_v47 = vadd.f32 %v6152_v33, %v2477_v10  ;;  %3124 = vrot.lane.b32.xlu1 %v4812_v49, %s5005_s16  ;;  %v6250_v54 = vpop.xlane.xlu0 %1026 }
 0x2f0   : > { %v4822_v41 = vpop.eup %4821  ;;  %4841 = vrcp.f32 %v2861_v19  ;;  %v3659_v5 = vmul.f32 -1.442695, %v2483_v24  ;;  %v6252_v36 = vpop.xlane.xlu1 %1023 }
 0x2f1   : > { %v4824_v52 = vpop.eup %4823  ;;  %4843 = vrcp.f32 %v2860_v56  ;;  %3126 = vrot.lane.b32.xlu0 %v4822_v41, %s5005_s16  ;;  %v4581_v14 = vpop.f32.mrb[64].mxu0  ;;  %v3658_v57 = vmul.f32 -1.442695, %v2478_v47 }
 0x2f2   : > { %v4826_v23 = vpop.eup %4825  ;;  %v2863_v50 = vadd.f32 1.0, %v4824_v52  ;;  %4845 = vpow2.f32 %v3656_v8  ;;  %v2493_v1 = vadd.f32 %v4581_v14, %v6152_v33  ;;  %v2487_v60 = vpop.f32.mrb[65].mxu0 }
 0x2f3   : > { %v4828_v27 = vpop.eup %4827  ;;  %v2862_v2 = vadd.f32 1.0, %v4826_v23  ;;  %4847 = vpow2.f32 %v3659_v5  ;;  %v2488_v49 = vadd.f32 %v6152_v33, %v2487_v60  ;;  %3128 = vrot.lane.b32.xlu1 %v4820_v21, %s5005_s16 }
 0x2f4   : > { %v4830_v45 = vpop.eup %4829  ;;  %4849 = vrcp.f32 %v2863_v50  ;;  %v3661_v20 = vmul.f32 -1.442695, %v2493_v1  ;;  %v6258_v1 = vpop.xlane.xlu0 %1032 }
 0x2f5   : > { %v4832_v28 = vpop.eup %4831  ;;  %4851 = vrcp.f32 %v2862_v2  ;;  %v2865_v44 = vadd.f32 1.0, %v4830_v45  ;;  %v3660_v19 = vmul.f32 -1.442695, %v2488_v49  ;;  %v4584_v8 = vpop.f32.mrb[66].mxu0 }
 0x2f6   : > { %v4834_v24 = vpop.eup %4833  ;;  %4853 = vpow2.f32 %v3658_v57  ;;  %3130 = vrot.lane.b32.xlu0 %v4832_v28, %s5005_s16  ;;  %v2503_v10 = vadd.f32 %v4584_v8, %v6152_v33  ;;  %v2497_v56 = vpop.f32.mrb[67].mxu0 }
 0x2f7   : > { %v4836_v21 = vpop.eup %4835  ;;  %4855 = vrcp.f32 %v2865_v44  ;;  %v2498_v47 = vadd.f32 %v6152_v33, %v2497_v56  ;;  %3132 = vrot.lane.b32.xlu1 %v4828_v27, %s5005_s16  ;;  %v6262_v27 = vpop.xlane.xlu1 %1029 }
 0x2f8   : > { %v4838_v41 = vpop.eup %4837  ;;  %4857 = vpow2.f32 %v3661_v20  ;;  %v3663_v5 = vmul.f32 -1.442695, %v2503_v10 }
 0x2f9   : > { %v4840_v52 = vpop.eup %4839  ;;  %v2864_v14 = vadd.f32 1.0, %v4838_v41  ;;  %4859 = vpow2.f32 %v3660_v19  ;;  %v3662_v23 = vmul.f32 -1.442695, %v2498_v47  ;;  %v4587_v50 = vpop.f32.mrb[68].mxu0 }
 0x2fa   : > { %v4842_v57 = vpop.eup %4841  ;;  %v2867_v60 = vadd.f32 1.0, %v4840_v52  ;;  %4861 = vpow2.f32 %v3663_v5  ;;  %3134 = vrot.lane.b32.xlu0 %v4836_v21, %s5005_s16  ;;  %v2513_v2 = vadd.f32 %v4587_v50, %v6152_v33  ;;  %v2507_v49 = vpop.f32.mrb[69].mxu0 }
 0x2fb   : > { %v4844_v45 = vpop.eup %4843  ;;  %4863 = vrcp.f32 %v2864_v14  ;;  %v2508_v20 = vadd.f32 %v6152_v33, %v2507_v49  ;;  %3136 = vrot.lane.b32.xlu1 %v4834_v24, %s5005_s16  ;;  %v6270_v50 = vpop.xlane.xlu0 %1038 }
 0x2fc   : > { %v4846_v28 = vpop.eup %4845  ;;  %4865 = vrcp.f32 %v2867_v60  ;;  %v3665_v44 = vmul.f32 -1.442695, %v2513_v2  ;;  %6782 = vst [vmem:[#allocation9_spill] sm:$0xff] %v6270_v50  ;;  %v6272_v49 = vpop.xlane.xlu1 %1035 }
 0x2fd   : > { %v4848_v19 = vpop.eup %4847  ;;  %v2866_v8 = vadd.f32 1.0, %v4846_v28  ;;  %4867 = vpow2.f32 %v3662_v23  ;;  %v3664_v10 = vmul.f32 -1.442695, %v2508_v20  ;;  %v4590_v56 = vpop.f32.mrb[70].mxu0 }
 0x2fe   : > { %v4850_v21 = vpop.eup %4849  ;;  %v2869_v47 = vadd.f32 1.0, %v4848_v19  ;;  %4869 = vpow2.f32 %v3665_v44  ;;  %3138 = vrot.lane.b32.xlu0 %v4844_v45, %s5005_s16  ;;  %v2523_v41 = vadd.f32 %v4590_v56, %v6152_v33  ;;  %v2517_v5 = vpop.f32.mrb[71].mxu0 }
 0x2ff   : > { %v4852_v52 = vpop.eup %4851  ;;  %4871 = vrcp.f32 %v2866_v8  ;;  %v2518_v24 = vadd.f32 %v6152_v33, %v2517_v5  ;;  %3140 = vrot.lane.b32.xlu1 %v4842_v57, %s5005_s16  ;;  %v6278_v50 = vpop.xlane.xlu0 %1044 }
 0x300   : > { %v4854_v14 = vpop.eup %4853  ;;  %4873 = vrcp.f32 %v2869_v47  ;;  %v3667_v23 = vmul.f32 -1.442695, %v2523_v41  ;;  %6783 = vst [vmem:[#allocation16_spill] sm:$0xff] %v6278_v50 }
 0x301   : > { %v4856_v60 = vpop.eup %4855  ;;  %v2868_v2 = vadd.f32 1.0, %v4854_v14  ;;  %4875 = vpow2.f32 %v3664_v10  ;;  %v3666_v45 = vmul.f32 -1.442695, %v2518_v24  ;;  %v4593_v20 = vpop.f32.mrb[72].mxu0 }
 0x302   : > { %v4858_v28 = vpop.eup %4857  ;;  %4877 = vpow2.f32 %v3667_v23  ;;  %3142 = vrot.lane.b32.xlu0 %v4852_v52, %s5005_s16  ;;  %v2533_v44 = vadd.f32 %v4593_v20, %v6152_v33  ;;  %v2527_v19 = vpop.f32.mrb[73].mxu0 }
 0x303   : > { %v4860_v57 = vpop.eup %4859  ;;  %4879 = vrcp.f32 %v2868_v2  ;;  %v2871_v8 = vadd.f32 1.0, %v4858_v28  ;;  %v2528_v56 = vadd.f32 %v6152_v33, %v2527_v19  ;;  %3144 = vrot.lane.b32.xlu1 %v4850_v21, %s5005_s16  ;;  %v6282_v21 = vpop.xlane.xlu1 %1041 }
 0x304   : > { %v4862_v47 = vpop.eup %4861  ;;  %v2870_v41 = vadd.f32 1.0, %v4860_v57  ;;  %4881 = vpow2.f32 %v3666_v45  ;;  %v3669_v10 = vmul.f32 -1.442695, %v2533_v44  ;;  %6784 = vst [vmem:[#allocation18_spill] sm:$0xff] %v6282_v21 }
 0x305   : > { %v4864_v5 = vpop.eup %4863  ;;  %4883 = vrcp.f32 %v2871_v8  ;;  %v2873_v24 = vadd.f32 1.0, %v4862_v47  ;;  %v3668_v14 = vmul.f32 -1.442695, %v2528_v56  ;;  %v4596_v23 = vpop.f32.mrb[74].mxu0 }
 0x306   : > { %v4866_v52 = vpop.eup %4865  ;;  %4885 = vrcp.f32 %v2870_v41  ;;  %3146 = vrot.lane.b32.xlu0 %v4864_v5, %s5005_s16  ;;  %v2543_v2 = vadd.f32 %v4596_v23, %v6152_v33  ;;  %v2537_v20 = vpop.f32.mrb[75].mxu0 }
 0x307   : > { %v4868_v28 = vpop.eup %4867  ;;  %4887 = vrcp.f32 %v2873_v24  ;;  %v2538_v45 = vadd.f32 %v6152_v33, %v2537_v20  ;;  %3148 = vrot.lane.b32.xlu1 %v4856_v60, %s5005_s16 }
 0x308   : > { %v4870_v44 = vpop.eup %4869  ;;  %v2872_v19 = vadd.f32 1.0, %v4868_v28  ;;  %4889 = vpow2.f32 %v3669_v10  ;;  %v3671_v57 = vmul.f32 -1.442695, %v2543_v2  ;;  %v6290_v2 = vpop.xlane.xlu0 %1050 }
 0x309   : > { %v4872_v8 = vpop.eup %4871  ;;  %v2875_v56 = vadd.f32 1.0, %v4870_v44  ;;  %4891 = vpow2.f32 %v3668_v14  ;;  %v3670_v47 = vmul.f32 -1.442695, %v2538_v45  ;;  %v4599_v41 = vpop.f32.mrb[76].mxu0  ;;  %6785 = vst [vmem:[#allocation20_spill] sm:$0xff] %v6290_v2 }
 0x30a   : > { %v4874_v5 = vpop.eup %4873  ;;  %4893 = vrcp.f32 %v2872_v19  ;;  %3150 = vrot.lane.b32.xlu0 %v4872_v8, %s5005_s16  ;;  %v2553_v24 = vadd.f32 %v4599_v41, %v6152_v33  ;;  %v2547_v23 = vpop.f32.mrb[77].mxu0 }
 0x30b   : > { %v4876_v50 = vpop.eup %4875  ;;  %4895 = vrcp.f32 %v2875_v56  ;;  %v2548_v60 = vadd.f32 %v6152_v33, %v2547_v23  ;;  %3152 = vrot.lane.b32.xlu1 %v4866_v52, %s5005_s16  ;;  %v6292_v45 = vpop.xlane.xlu1 %1047 }
 0x30c   : > { %v4878_v10 = vpop.eup %4877  ;;  %v2874_v20 = vadd.f32 1.0, %v4876_v50  ;;  %4897 = vpow2.f32 %v3671_v57  ;;  %v3673_v14 = vmul.f32 -1.442695, %v2553_v24  ;;  %6786 = vst [vmem:[#allocation2_spill] sm:$0xff] %v6292_v45  ;;  %v6298_v45 = vpop.xlane.xlu0 %1056 }
 0x30d   : > { %v4880_v28 = vpop.eup %4879  ;;  %v2877_v44 = vadd.f32 1.0, %v4878_v10  ;;  %4899 = vpow2.f32 %v3670_v47  ;;  %v4602_v19 = vpop.f32.mrb[78].mxu0  ;;  %v3672_v41 = vmul.f32 -1.442695, %v2548_v60  ;;  %6787 = vst [vmem:[#allocation3_spill] sm:$0xff] %v6298_v45 }
 0x30e   : > { %v4882_v8 = vpop.eup %4881  ;;  %4901 = vrcp.f32 %v2874_v20  ;;  %3154 = vrot.lane.b32.xlu0 %v4880_v28, %s5005_s16  ;;  %v2563_v56 = vadd.f32 %v4602_v19, %v6152_v33  ;;  %v2557_v52 = vpop.f32.mrb[79].mxu0 }
 0x30f   : > { %v4884_v23 = vpop.eup %4883  ;;  %4903 = vrcp.f32 %v2877_v44  ;;  %v2876_v2 = vadd.f32 1.0, %v4882_v8  ;;  %v2558_v50 = vadd.f32 %v6152_v33, %v2557_v52  ;;  %3156 = vrot.lane.b32.xlu1 %v4874_v5, %s5005_s16  ;;  %v6302_v8 = vpop.xlane.xlu1 %1053 }
 0x310   : > { %v4886_v57 = vpop.eup %4885  ;;  %4905 = vpow2.f32 %v3673_v14  ;;  %v3675_v24 = vmul.f32 -1.442695, %v2563_v56  ;;  %6788 = vst [vmem:[#allocation4_spill] sm:$0xff] %v6302_v8 }
 0x311   : > { %v4888_v47 = vpop.eup %4887  ;;  %4907 = vrcp.f32 %v2876_v2  ;;  %v3674_v10 = vmul.f32 -1.442695, %v2558_v50  ;;  %v4605_v20 = vpop.f32.mrb[80].mxu0 }
 0x312   : > { %v4890_v60 = vpop.eup %4889  ;;  %4909 = vpow2.f32 %v3672_v41  ;;  %3158 = vrot.lane.b32.xlu0 %v4886_v57, %s5005_s16  ;;  %v2573_v28 = vadd.f32 %v4605_v20, %v6152_v33  ;;  %v2567_v44 = vpop.f32.mrb[81].mxu0 }
 0x313   : > { %v4892_v19 = vpop.eup %4891  ;;  %v2879_v5 = vadd.f32 1.0, %v4890_v60  ;;  %4911 = vpow2.f32 %v3675_v24  ;;  %v2568_v14 = vadd.f32 %v6152_v33, %v2567_v44  ;;  %3160 = vrot.lane.b32.xlu1 %v4884_v23, %s5005_s16 }
 0x314   : > { %v4894_v2 = vpop.eup %4893  ;;  %v2878_v56 = vadd.f32 1.0, %v4892_v19  ;;  %4913 = vpow2.f32 %v3674_v10  ;;  %v3677_v52 = vmul.f32 -1.442695, %v2573_v28  ;;  %v6310_v28 = vpop.xlane.xlu0 %1062 }
 0x315   : > { %v4896_v50 = vpop.eup %4895  ;;  %4915 = vrcp.f32 %v2879_v5  ;;  %v3676_v41 = vmul.f32 -1.442695, %v2568_v14  ;;  %v4608_v57 = vpop.f32.mrb[82].mxu0  ;;  %6789 = vst [vmem:[#allocation5_spill] sm:$0xff] %v6310_v28 }
 0x316   : > { %v4898_v45 = vpop.eup %4897  ;;  %4917 = vrcp.f32 %v2878_v56  ;;  %3162 = vrot.lane.b32.xlu0 %v4894_v2, %s5005_s16  ;;  %v2583_v20 = vadd.f32 %v4608_v57, %v6152_v33  ;;  %v2577_v60 = vpop.f32.mrb[83].mxu0 }
 0x317   : > { %v4900_v24 = vpop.eup %4899  ;;  %v2881_v8 = vadd.f32 1.0, %v4898_v45  ;;  %4919 = vpow2.f32 %v3677_v52  ;;  %v2578_v23 = vadd.f32 %v6152_v33, %v2577_v60  ;;  %3164 = vrot.lane.b32.xlu1 %v4888_v47, %s5005_s16  ;;  %v6312_v14 = vpop.xlane.xlu1 %1059 }
 0x318   : > { %v4902_v10 = vpop.eup %4901  ;;  %v2880_v44 = vadd.f32 1.0, %v4900_v24  ;;  %4921 = vpow2.f32 %v3676_v41  ;;  %v3679_v19 = vmul.f32 -1.442695, %v2583_v20  ;;  %6790 = vst [vmem:[#allocation6_spill] sm:$0xff] %v6312_v14 }
 0x319   : > { %v4904_v5 = vpop.eup %4903  ;;  %4923 = vrcp.f32 %v2881_v8  ;;  %v3678_v2 = vmul.f32 -1.442695, %v2578_v23  ;;  %v4611_v56 = vpop.f32.mrb[84].mxu0 }
 0x31a   : > { %v4906_v57 = vpop.eup %4905  ;;  %4925 = vrcp.f32 %v2880_v44  ;;  %3166 = vrot.lane.b32.xlu0 %v4902_v10, %s5005_s16  ;;  %v2593_v45 = vadd.f32 %v4611_v56, %v6152_v33  ;;  %v2587_v52 = vpop.f32.mrb[85].mxu0 }
 0x31b   : > { %v4908_v47 = vpop.eup %4907  ;;  %4927 = vpow2.f32 %v3679_v19  ;;  %v2588_v60 = vadd.f32 %v6152_v33, %v2587_v52  ;;  %3168 = vrot.lane.b32.xlu1 %v4896_v50, %s5005_s16  ;;  %v2883_v20 = vadd.f32 1.0, %v4906_v57  ;;  %v6318_v44 = vpop.xlane.xlu0 %1068 }
 0x31c   : > { %v4910_v41 = vpop.eup %4909  ;;  %4929 = vpow2.f32 %v3678_v2  ;;  %v3681_v24 = vmul.f32 -1.442695, %v2593_v45  ;;  %6791 = vst [vmem:[#allocation7_spill] sm:$0xff] %v6318_v44  ;;  %v6322_v21 = vpop.xlane.xlu1 %1065 }
 0x31d   : > { %v4912_v8 = vpop.eup %4911  ;;  %v2882_v23 = vadd.f32 1.0, %v4910_v41  ;;  %v4614_v28 = vpop.f32.mrb[86].mxu0  ;;  %v3680_v10 = vmul.f32 -1.442695, %v2588_v60  ;;  %6792 = vst [vmem:[#allocation8_spill] sm:$0xff] %v6322_v21 }
 0x31e   : > { %v4914_v14 = vpop.eup %4913  ;;  %4931 = vpow2.f32 %v3681_v24  ;;  %3170 = vrot.lane.b32.xlu0 %v4908_v47, %s5005_s16  ;;  %v2603_v19 = vadd.f32 %v4614_v28, %v6152_v33  ;;  %v2597_v56 = vpop.f32.mrb[87].mxu0  ;;  %v2885_v45 = vadd.f32 1.0, %v4912_v8 }
 0x31f   : > { %v4916_v52 = vpop.eup %4915  ;;  %4933 = vrcp.f32 %v2882_v23  ;;  %v2884_v50 = vadd.f32 1.0, %v4914_v14  ;;  %v2598_v2 = vadd.f32 %v6152_v33, %v2597_v56  ;;  %3172 = vrot.lane.b32.xlu1 %v4904_v5, %s5005_s16  ;;  %v6330_v8 = vpop.xlane.xlu0 %1074 }
 0x320   : > { %v4918_v57 = vpop.eup %4917  ;;  %4935 = vrcp.f32 %v2883_v20  ;;  %v3683_v41 = vmul.f32 -1.442695, %v2603_v19  ;;  %6793 = vst [vmem:[#allocation10_spill] sm:$0xff] %v6330_v8 }
 0x321   : > { %v4920_v24 = vpop.eup %4919  ;;  %4937 = vrcp.f32 %v2884_v50  ;;  %v4617_v60 = vpop.f32.mrb[88].mxu0  ;;  %v3682_v28 = vmul.f32 -1.442695, %v2598_v2 }
 0x322   : > { %v4922_v47 = vpop.eup %4921  ;;  %4939 = vpow2.f32 %v3680_v10  ;;  %3174 = vrot.lane.b32.xlu0 %v4918_v57, %s5005_s16  ;;  %v2613_v44 = vadd.f32 %v4617_v60, %v6152_v33  ;;  %v2607_v23 = vpop.f32.mrb[89].mxu0  ;;  %v2887_v19 = vadd.f32 1.0, %v4920_v24 }
 0x323   : > { %v4924_v14 = vpop.eup %4923  ;;  %v2886_v21 = vadd.f32 1.0, %v4922_v47  ;;  %4941 = vpow2.f32 %v3683_v41  ;;  %v2608_v5 = vadd.f32 %v6152_v33, %v2607_v23  ;;  %3176 = vrot.lane.b32.xlu1 %v4916_v52, %s5005_s16  ;;  %v6332_v50 = vpop.xlane.xlu1 %1071 }
 0x324   : > { %v4926_v20 = vpop.eup %4925  ;;  %4943 = vrcp.f32 %v2885_v45  ;;  %v3685_v56 = vmul.f32 -1.442695, %v2613_v44  ;;  %6794 = vst [vmem:[#allocation11_spill] sm:$0xff] %v6332_v50  ;;  %v4995_v44 = vld [vmem:[%s6712_s7] ss:$0 sm:$0xff] }
 0x325   : > { %v4928_v10 = vpop.eup %4927  ;;  %4945 = vrcp.f32 %v2886_v21  ;;  %v4620_v2 = vpop.f32.mrb[90].mxu0  ;;  %v3684_v60 = vmul.f32 -1.442695, %v2608_v5 }
 0x326   : > { %v4930_v57 = vpop.eup %4929  ;;  %4947 = vpow2.f32 %v3682_v28  ;;  %3178 = vrot.lane.b32.xlu0 %v4926_v20, %s5005_s16  ;;  %v2623_v41 = vadd.f32 %v4620_v2, %v6152_v33  ;;  %v2617_v47 = vpop.f32.mrb[91].mxu0  ;;  %v2889_v52 = vadd.f32 1.0, %v4928_v10 }
 0x327   : > { %v2888_v23 = vadd.f32 1.0, %v4930_v57  ;;  %4949 = vpow2.f32 %v3685_v56  ;;  %v2618_v45 = vadd.f32 %v4995_v44, %v2617_v47  ;;  %3180 = vrot.lane.b32.xlu1 %v4924_v14, %s5005_s16  ;;  %v6340_v33 = vpop.xlane.xlu0 %1080  ;;  %v6343_v57 = vpop.xlane.xlu1 %1077 }
 0x328   : > { %v4932_v21 = vpop.eup %4931  ;;  %4951 = vrcp.f32 %v2887_v19  ;;  %v3687_v24 = vmul.f32 -1.442695, %v2623_v41  ;;  %6795 = vst [vmem:[#allocation12_spill] sm:$0xff] %v6340_v33  ;;  %6796 = vst [vmem:[#allocation13_spill] sm:$0xff] %v6343_v57 }
 0x329   : > { %v4934_v28 = vpop.eup %4933  ;;  %4953 = vrcp.f32 %v2888_v23  ;;  %v3686_v5 = vmul.f32 -1.442695, %v2618_v45  ;;  %v4623_v20 = vpop.f32.mrb[92].mxu0  ;;  %v2891_v41 = vadd.f32 1.0, %v4932_v21 }
 0x32a   : > { %v4936_v8 = vpop.eup %4935  ;;  %4955 = vpow2.f32 %v3684_v60  ;;  %3182 = vrot.lane.b32.xlu0 %v4934_v28, %s5005_s16  ;;  %v2633_v56 = vadd.f32 %v4995_v44, %v4623_v20  ;;  %v2627_v10 = vpop.f32.mrb[93].mxu0 }
 0x32b   : > { %v4938_v2 = vpop.eup %4937  ;;  %4957 = vrcp.f32 %v2889_v52  ;;  %v2628_v14 = vadd.f32 %v4995_v44, %v2627_v10  ;;  %3184 = vrot.lane.b32.xlu1 %v4936_v8, %s5005_s16  ;;  %v6348_v21 = vpop.xlane.xlu0 %1086 }
 0x32c   : > { %v4940_v19 = vpop.eup %4939  ;;  %4959 = vpow2.f32 %v3687_v24  ;;  %v3689_v47 = vmul.f32 -1.442695, %v2633_v56  ;;  %v6350_v10 = vpop.xlane.xlu1 %1083 }
 0x32d   : > { %v4942_v23 = vpop.eup %4941  ;;  %v2890_v45 = vadd.f32 1.0, %v4940_v19  ;;  %4961 = vpow2.f32 %v3686_v5  ;;  %v3688_v33 = vmul.f32 -1.442695, %v2628_v14  ;;  %v4626_v60 = vpop.f32.mrb[94].mxu0 }
 0x32e   : > { %v4944_v50 = vpop.eup %4943  ;;  %4963 = vpow2.f32 %v3689_v47  ;;  %3186 = vrot.lane.b32.xlu0 %v4938_v2, %s5005_s16  ;;  %v2643_v28 = vadd.f32 %v4995_v44, %v4626_v60  ;;  %v2637_v20 = vpop.f32.mrb[95].mxu0  ;;  %v2893_v24 = vadd.f32 1.0, %v4942_v23 }
 0x32f   : > { %v4946_v57 = vpop.eup %4945  ;;  %4965 = vrcp.f32 %v2890_v45  ;;  %v2638_v52 = vadd.f32 %v4995_v44, %v2637_v20  ;;  %3188 = vrot.lane.b32.xlu1 %v4944_v50, %s5005_s16  ;;  %v6354_v60 = vpop.xlane.xlu0 %1092 }
 0x330   : > { %v4948_v8 = vpop.eup %4947  ;;  %4967 = vrcp.f32 %v2891_v41  ;;  %v3691_v56 = vmul.f32 -1.442695, %v2643_v28  ;;  %v6357_v28 = vpop.xlane.xlu1 %1089 }
 0x331   : > { %v4950_v5 = vpop.eup %4949  ;;  %v2892_v14 = vadd.f32 1.0, %v4948_v8  ;;  %4969 = vpow2.f32 %v3688_v33  ;;  %v3690_v19 = vmul.f32 -1.442695, %v2638_v52 }
 0x332   : > { %v4952_v2 = vpop.eup %4951  ;;  %4971 = vpow2.f32 %v3691_v56  ;;  %3190 = vrot.lane.b32.xlu0 %v4946_v57, %s5005_s16  ;;  %v2895_v44 = vadd.f32 1.0, %v4950_v5 }
 0x333   : > { %v4954_v47 = vpop.eup %4953  ;;  %4973 = vrcp.f32 %v2892_v14  ;;  %3192 = vrot.lane.b32.xlu1 %v4952_v2, %s5005_s16  ;;  %v6362_v14 = vpop.xlane.xlu0 %1098 }
 0x334   : > { %v4956_v50 = vpop.eup %4955  ;;  %4975 = vrcp.f32 %v2893_v24 }
 0x335   : > { %v4958_v41 = vpop.eup %4957  ;;  %v2894_v23 = vadd.f32 1.0, %v4956_v50  ;;  %4977 = vpow2.f32 %v3690_v19  ;;  %v6365_v50 = vpop.xlane.xlu1 %1095 }
 0x336   : > { %v4960_v45 = vpop.eup %4959  ;;  %3194 = vrot.lane.b32.xlu0 %v4954_v47, %s5005_s16 }
 0x337   : > { %v4962_v33 = vpop.eup %4961  ;;  %4979 = vrcp.f32 %v2894_v23  ;;  %3196 = vrot.lane.b32.xlu1 %v4958_v41, %s5005_s16  ;;  %v2897_v20 = vadd.f32 1.0, %v4960_v45  ;;  %v1100_v23 = vmax.f32 %v6117_v4, 0.0  ;;  %v1101_v45 = vmax.f32 %v6123_v16, 0.0 }
 0x338   : > { %v4964_v57 = vpop.eup %4963  ;;  %4981 = vrcp.f32 %v2895_v44  ;;  %v2896_v52 = vadd.f32 1.0, %v4962_v33 }
 0x339   : > { %v4966_v8 = vpop.eup %4965  ;;  %v2899_v19 = vadd.f32 1.0, %v4964_v57 }
 0x33a   : > { %v4968_v24 = vpop.eup %4967  ;;  %4983 = vrcp.f32 %v2896_v52  ;;  %3198 = vrot.lane.b32.xlu0 %v4966_v8, %s5005_s16 }
 0x33b   : > { %v4970_v56 = vpop.eup %4969  ;;  %3200 = vrot.lane.b32.xlu1 %v4968_v24, %s5005_s16  ;;  %4985 = vrcp.f32 %v2897_v20 }
 0x33c   : > { %v4972_v5 = vpop.eup %4971  ;;  %v2898_v2 = vadd.f32 1.0, %v4970_v56 }
 0x33d   : > { %v4974_v47 = vpop.eup %4973  ;;  %v2901_v33 = vadd.f32 1.0, %v4972_v5 }
 0x33e   : > { %v4976_v44 = vpop.eup %4975  ;;  %4987 = vrcp.f32 %v2898_v2  ;;  %3202 = vrot.lane.b32.xlu0 %v4974_v47, %s5005_s16  ;;  %v1103_v2 = vmax.f32 %v6121_v18, 0.0  ;;  %v1104_v18 = vmax.f32 %v6127_v63, 0.0  ;;  %v1105_v63 = vmax.f32 %v6125_v43, 0.0 }
 0x33f   : > { %v4978_v41 = vpop.eup %4977  ;;  %3204 = vrot.lane.b32.xlu1 %v4976_v44, %s5005_s16  ;;  %4989 = vrcp.f32 %v2899_v19  ;;  %v1107_v43 = vmax.f32 %v6129_v32, 0.0  ;;  %v1109_v32 = vmax.f32 %v6133_v31, 0.0  ;;  %v1111_v31 = vmax.f32 %v6137_v34, 0.0 }
 0x340   : > { %v2900_v57 = vadd.f32 1.0, %v4978_v41  ;;  %v3097_v20 = vpop.permute.xlu0 %3096  ;;  %v1113_v34 = vmax.f32 %v6141_v42, 0.0  ;;  %v1115_v42 = vmax.f32 %v6145_v37, 0.0 }
 0x341   : > { %v4980_v52 = vpop.eup %4979  ;;  %v3288_v4 = vsel %vm3286_vm3, %v1101_v45, %v3097_v20  ;;  %v3095_v8 = vpop.permute.xlu1 %3094 }
 0x342   : > { %v4982_v16 = vpop.eup %4981  ;;  %4991 = vrcp.f32 %v2900_v57  ;;  %3206 = vrot.lane.b32.xlu0 %v4980_v52, %s5005_s16  ;;  %v3353_v24 = vsel %vm3351_vm4, %v3288_v4, 0.0  ;;  %v3287_v56 = vsel %vm3286_vm3, %v1100_v23, %v3095_v8  ;;  %v1102_v57 = vmax.f32 %v6119_v55, 0.0 }
 0x343   : > { %3418 = vst.msk [vmem:[%s6374_s21 + $0x8] sm:$0xff] %vm3416_vm5, %v3353_v24  ;;  %v3352_v5 = vsel %vm3351_vm4, %v3287_v56, 0.0  ;;  %3208 = vrot.lane.b32.xlu1 %v4982_v16, %s5005_s16  ;;  %4993 = vrcp.f32 %v2901_v33 }
 0x344   : > { %v4984_v19 = vpop.eup %4983  ;;  %3417 = vst.msk [vmem:[%s6374_s21] sm:$0xff] %vm3416_vm5, %v3352_v5 }
 0x345   : > { %v3101_v47 = vpop.permute.xlu1 %3100  ;;  %v4986_v44 = vpop.eup %4985 }
 0x346   : > { %3210 = vrot.lane.b32.xlu0 %v4984_v19, %s5005_s16  ;;  %v3290_v41 = vsel %vm3286_vm3, %v1103_v2, %v3101_v47  ;;  %v1106_v19 = vmax.f32 %v6131_v26, 0.0 }
 0x347   : > { %v3355_v23 = vsel %vm3351_vm4, %v3290_v41, 0.0  ;;  %3212 = vrot.lane.b32.xlu1 %v4986_v44, %s5005_s16 }
 0x348   : > { %v4988_v45 = vpop.eup %4987  ;;  %3420 = vst.msk [vmem:[%s6374_s21 + $0x18] sm:$0xff] %vm3416_vm5, %v3355_v23 }
 0x349   : > { %v3103_v33 = vpop.permute.xlu0 %3102  ;;  %v3099_v20 = vpop.permute.xlu1 %3098 }
 0x34a   : > { %v4990_v52 = vpop.eup %4989  ;;  %3214 = vrot.lane.b32.xlu0 %v4988_v45, %s5005_s16  ;;  %v3291_v4 = vsel %vm3286_vm3, %v1104_v18, %v3103_v33  ;;  %v3289_v8 = vsel %vm3286_vm3, %v1102_v57, %v3099_v20  ;;  %v1108_v45 = vmax.f32 %v6135_v53, 0.0  ;;  %v1110_v53 = vmax.f32 %v6139_v13, 0.0 }
 0x34b   : > { %v3356_v16 = vsel %vm3351_vm4, %v3291_v4, 0.0  ;;  %v3354_v24 = vsel %vm3351_vm4, %v3289_v8, 0.0  ;;  %3216 = vrot.lane.b32.xlu1 %v4990_v52, %s5005_s16  ;;  %v1112_v13 = vmax.f32 %v6143_v62, 0.0  ;;  %v1114_v62 = vmax.f32 %v6147_v0, 0.0 }
 0x34c   : > { %v4992_v55 = vpop.eup %4991  ;;  %3421 = vst.msk [vmem:[%s6374_s21 + $0x20] sm:$0xff] %vm3416_vm5, %v3356_v16  ;;  %3419 = vst.msk [vmem:[%s6374_s21 + $0x10] sm:$0xff] %vm3416_vm5, %v3354_v24  ;;  %v1116_v0 = vmax.f32 %v6158_v12, 0.0 }
 0x34d   : > { %v3105_v56 = vpop.permute.xlu1 %3104  ;;  %v4994_v5 = vpop.eup %4993 }
 0x34e   : > { %3218 = vrot.lane.b32.xlu0 %v4992_v55, %s5005_s16  ;;  %v3292_v2 = vsel %vm3286_vm3, %v1105_v63, %v3105_v56 }
 0x34f   : > { %v3107_v47 = vpop.permute.xlu0 %3106  ;;  %v3357_v44 = vsel %vm3351_vm4, %v3292_v2, 0.0  ;;  %3220 = vrot.lane.b32.xlu1 %v4994_v5, %s5005_s16 }
 0x350   : > { %v3293_v41 = vsel %vm3286_vm3, %v1106_v19, %v3107_v47  ;;  %3422 = vst.msk [vmem:[%s6374_s21 + $0x28] sm:$0xff] %vm3416_vm5, %v3357_v44 }
 0x351   : > { %v3358_v23 = vsel %vm3351_vm4, %v3293_v41, 0.0  ;;  %v3109_v26 = vpop.permute.xlu1 %3108 }
 0x352   : > { %3423 = vst.msk [vmem:[%s6374_s21 + $0x30] sm:$0xff] %vm3416_vm5, %v3358_v23  ;;  %v3294_v57 = vsel %vm3286_vm3, %v1107_v43, %v3109_v26 }
 0x353   : > { %v3111_v18 = vpop.permute.xlu0 %3110  ;;  %v3359_v33 = vsel %vm3351_vm4, %v3294_v57, 0.0 }
 0x354   : > { %v3295_v20 = vsel %vm3286_vm3, %v1108_v45, %v3111_v18  ;;  %3424 = vst.msk [vmem:[%s6374_s21 + $0x38] sm:$0xff] %vm3416_vm5, %v3359_v33 }
 0x355   : > { %v3360_v52 = vsel %vm3351_vm4, %v3295_v20, 0.0  ;;  %v3113_v4 = vpop.permute.xlu1 %3112 }
 0x356   : > { %3425 = vst.msk [vmem:[%s6374_s21 + $0x40] sm:$0xff] %vm3416_vm5, %v3360_v52  ;;  %v3296_v8 = vsel %vm3286_vm3, %v1109_v32, %v3113_v4  ;;  %v1117_v52 = vmax.f32 %v6155_v29, 0.0 }
 0x357   : > { %v3115_v16 = vpop.permute.xlu0 %3114  ;;  %v3361_v24 = vsel %vm3351_vm4, %v3296_v8, 0.0  ;;  %v1118_v8 = vmax.f32 %v6164_v61, 0.0 }
 0x358   : > { %v3297_v55 = vsel %vm3286_vm3, %v1110_v53, %v3115_v16  ;;  %3426 = vst.msk [vmem:[%s6374_s21 + $0x48] sm:$0xff] %vm3416_vm5, %v3361_v24  ;;  %v1119_v24 = vmax.f32 %v6162_v59, 0.0  ;;  %v1121_v59 = vmax.f32 %v6169_v51, 0.0  ;;  %v1123_v51 = vmax.f32 %v6176_v40, 0.0 }
 0x359   : > { %v3362_v63 = vsel %vm3351_vm4, %v3297_v55, 0.0  ;;  %v3117_v56 = vpop.permute.xlu1 %3116  ;;  %v1125_v40 = vmax.f32 %v6182_v48, 0.0  ;;  %v1127_v48 = vmax.f32 %v6192_v15, 0.0  ;;  %v1129_v15 = vmax.f32 %v6199_v17, 0.0 }
 0x35a   : > { %3427 = vst.msk [vmem:[%s6374_s21 + $0x50] sm:$0xff] %vm3416_vm5, %v3362_v63  ;;  %v3298_v5 = vsel %vm3286_vm3, %v1111_v31, %v3117_v56  ;;  %v1131_v17 = vmax.f32 %v6210_v58, 0.0  ;;  %v1133_v58 = vmax.f32 %v6219_v6, 0.0  ;;  %v1135_v6 = vmax.f32 %v6230_v25, 0.0 }
 0x35b   : > { %v3119_v19 = vpop.permute.xlu0 %3118  ;;  %v3363_v2 = vsel %vm3351_vm4, %v3298_v5, 0.0  ;;  %v1137_v25 = vmax.f32 %v6239_v22, 0.0  ;;  %v1139_v22 = vmax.f32 %v6250_v54, 0.0  ;;  %v1141_v54 = vmax.f32 %v6258_v1, 0.0 }
 0x35c   : > { %v3299_v47 = vsel %vm3286_vm3, %v1112_v13, %v3119_v19  ;;  %3428 = vst.msk [vmem:[%s6374_s21 + $0x58] sm:$0xff] %vm3416_vm5, %v3363_v2  ;;  %v1120_v13 = vmax.f32 %v6172_v30, 0.0  ;;  %v1122_v30 = vmax.f32 %v6178_v11, 0.0  ;;  %v1124_v11 = vmax.f32 %v6186_v35, 0.0 }
 0x35d   : > { %v3364_v44 = vsel %vm3351_vm4, %v3299_v47, 0.0  ;;  %v3121_v43 = vpop.permute.xlu1 %3120  ;;  %v1126_v35 = vmax.f32 %v6194_v3, 0.0  ;;  %v1128_v3 = vmax.f32 %v6202_v39, 0.0  ;;  %v1130_v39 = vmax.f32 %v6212_v9, 0.0 }
 0x35e   : > { %3429 = vst.msk [vmem:[%s6374_s21 + $0x60] sm:$0xff] %vm3416_vm5, %v3364_v44  ;;  %v3300_v41 = vsel %vm3286_vm3, %v1113_v34, %v3121_v43  ;;  %v1132_v9 = vmax.f32 %v6222_v38, 0.0  ;;  %v1134_v38 = vmax.f32 %v6232_v7, 0.0  ;;  %v1136_v7 = vmax.f32 %v6242_v46, 0.0 }
 0x35f   : > { %v3123_v23 = vpop.permute.xlu0 %3122  ;;  %v3365_v26 = vsel %vm3351_vm4, %v3300_v41, 0.0  ;;  %v1138_v46 = vmax.f32 %v6252_v36, 0.0  ;;  %v1140_v36 = vmax.f32 %v6262_v27, 0.0  ;;  %v1142_v27 = vmax.f32 %v6272_v49, 0.0 }
 0x360   : > { %v3301_v45 = vsel %vm3286_vm3, %v1114_v62, %v3123_v23  ;;  %3430 = vst.msk [vmem:[%s6374_s21 + $0x68] sm:$0xff] %vm3416_vm5, %v3365_v26 }
 0x361   : > { %v3366_v57 = vsel %vm3351_vm4, %v3301_v45, 0.0  ;;  %v3125_v18 = vpop.permute.xlu1 %3124 }
 0x362   : > { %3431 = vst.msk [vmem:[%s6374_s21 + $0x70] sm:$0xff] %vm3416_vm5, %v3366_v57  ;;  %v3302_v33 = vsel %vm3286_vm3, %v1115_v42, %v3125_v18 }
 0x363   : > { %v3127_v32 = vpop.permute.xlu0 %3126  ;;  %v3367_v20 = vsel %vm3351_vm4, %v3302_v33, 0.0 }
 0x364   : > { %v3303_v37 = vsel %vm3286_vm3, %v1116_v0, %v3127_v32  ;;  %3432 = vst.msk [vmem:[%s6374_s21 + $0x78] sm:$0xff] %vm3416_vm5, %v3367_v20 }
 0x365   : > { %v3368_v4 = vsel %vm3351_vm4, %v3303_v37, 0.0  ;;  %v3129_v53 = vpop.permute.xlu1 %3128 }
 0x366   : > { %3433 = vst.msk [vmem:[%s6374_s21 + $0x80] sm:$0xff] %vm3416_vm5, %v3368_v4  ;;  %v3304_v12 = vsel %vm3286_vm3, %v1117_v52, %v3129_v53 }
 0x367   : > { %v3369_v16 = vsel %vm3351_vm4, %v3304_v12, 0.0 }
 0x368   : > { %v3131_v29 = vpop.permute.xlu0 %3130  ;;  %3434 = vst.msk [vmem:[%s6374_s21 + $0x88] sm:$0xff] %vm3416_vm5, %v3369_v16 }
 0x369   : > { %v3305_v31 = vsel %vm3286_vm3, %v1118_v8, %v3131_v29  ;;  %v3133_v55 = vpop.permute.xlu1 %3132 }
 0x36a   : > { %v3370_v63 = vsel %vm3351_vm4, %v3305_v31, 0.0  ;;  %v3306_v56 = vsel %vm3286_vm3, %v1119_v24, %v3133_v55 }
 0x36b   : > { %3435 = vst.msk [vmem:[%s6374_s21 + $0x90] sm:$0xff] %vm3416_vm5, %v3370_v63  ;;  %v3371_v61 = vsel %vm3351_vm4, %v3306_v56, 0.0 }
 0x36c   : > { %v3135_v5 = vpop.permute.xlu0 %3134  ;;  %3436 = vst.msk [vmem:[%s6374_s21 + $0x98] sm:$0xff] %vm3416_vm5, %v3371_v61 }
 0x36d   : > { %v3307_v19 = vsel %vm3286_vm3, %v1120_v13, %v3135_v5  ;;  %v3137_v2 = vpop.permute.xlu1 %3136 }
 0x36e   : > { %v3372_v34 = vsel %vm3351_vm4, %v3307_v19, 0.0  ;;  %v3308_v47 = vsel %vm3286_vm3, %v1121_v59, %v3137_v2 }
 0x36f   : > { %3437 = vst.msk [vmem:[%s6374_s21 + $0xa0] sm:$0xff] %vm3416_vm5, %v3372_v34  ;;  %v3373_v44 = vsel %vm3351_vm4, %v3308_v47, 0.0 }
 0x370   : > { %v3139_v43 = vpop.permute.xlu0 %3138  ;;  %3438 = vst.msk [vmem:[%s6374_s21 + $0xa8] sm:$0xff] %vm3416_vm5, %v3373_v44 }
 0x371   : > { %v3309_v62 = vsel %vm3286_vm3, %v1122_v30, %v3139_v43  ;;  %v3141_v41 = vpop.permute.xlu1 %3140 }
 0x372   : > { %v3374_v23 = vsel %vm3351_vm4, %v3309_v62, 0.0  ;;  %v3310_v26 = vsel %vm3286_vm3, %v1123_v51, %v3141_v41 }
 0x373   : > { %3439 = vst.msk [vmem:[%s6374_s21 + $0xb0] sm:$0xff] %vm3416_vm5, %v3374_v23  ;;  %v3375_v42 = vsel %vm3351_vm4, %v3310_v26, 0.0 }
 0x374   : > { %v3143_v45 = vpop.permute.xlu0 %3142  ;;  %3440 = vst.msk [vmem:[%s6374_s21 + $0xb8] sm:$0xff] %vm3416_vm5, %v3375_v42 }
 0x375   : > { %v3311_v57 = vsel %vm3286_vm3, %v1124_v11, %v3143_v45  ;;  %v3145_v18 = vpop.permute.xlu1 %3144 }
 0x376   : > { %v3376_v0 = vsel %vm3351_vm4, %v3311_v57, 0.0  ;;  %v3312_v33 = vsel %vm3286_vm3, %v1125_v40, %v3145_v18 }
 0x377   : > { %3441 = vst.msk [vmem:[%s6374_s21 + $0xc0] sm:$0xff] %vm3416_vm5, %v3376_v0  ;;  %v3377_v32 = vsel %vm3351_vm4, %v3312_v33, 0.0 }
 0x378   : > { %v3147_v20 = vpop.permute.xlu0 %3146  ;;  %3442 = vst.msk [vmem:[%s6374_s21 + $0xc8] sm:$0xff] %vm3416_vm5, %v3377_v32 }
 0x379   : > { %v3313_v52 = vsel %vm3286_vm3, %v1126_v35, %v3147_v20  ;;  %v3149_v37 = vpop.permute.xlu1 %3148 }
 0x37a   : > { %v3378_v4 = vsel %vm3351_vm4, %v3313_v52, 0.0  ;;  %v3314_v53 = vsel %vm3286_vm3, %v1127_v48, %v3149_v37 }
 0x37b   : > { %3443 = vst.msk [vmem:[%s6374_s21 + $0xd0] sm:$0xff] %vm3416_vm5, %v3378_v4  ;;  %v3379_v12 = vsel %vm3351_vm4, %v3314_v53, 0.0 }
 0x37c   : > { %v3151_v8 = vpop.permute.xlu0 %3150  ;;  %3444 = vst.msk [vmem:[%s6374_s21 + $0xd8] sm:$0xff] %vm3416_vm5, %v3379_v12 }
 0x37d   : > { %v3315_v16 = vsel %vm3286_vm3, %v1128_v3, %v3151_v8  ;;  %v3153_v24 = vpop.permute.xlu1 %3152 }
 0x37e   : > { %v3380_v29 = vsel %vm3351_vm4, %v3315_v16, 0.0  ;;  %v3316_v31 = vsel %vm3286_vm3, %v1129_v15, %v3153_v24  ;;  %v6797_v15 = vld [vmem:[#allocation9_spill] sm:$0xff] }
 0x37f   : > { %3445 = vst.msk [vmem:[%s6374_s21 + $0xe0] sm:$0xff] %vm3416_vm5, %v3380_v29  ;;  %v3381_v55 = vsel %vm3351_vm4, %v3316_v31, 0.0  ;;  %v1143_v1 = vmax.f32 %v6797_v15, 0.0 }
 0x380   : > { %v3155_v63 = vpop.permute.xlu0 %3154  ;;  %3446 = vst.msk [vmem:[%s6374_s21 + $0xe8] sm:$0xff] %vm3416_vm5, %v3381_v55 }
 0x381   : > { %v3317_v56 = vsel %vm3286_vm3, %v1130_v39, %v3155_v63  ;;  %v3157_v13 = vpop.permute.xlu1 %3156  ;;  %v6798_v39 = vld [vmem:[#allocation18_spill] sm:$0xff] }
 0x382   : > { %v3382_v61 = vsel %vm3351_vm4, %v3317_v56, 0.0  ;;  %v3318_v59 = vsel %vm3286_vm3, %v1131_v17, %v3157_v13  ;;  %v1144_v49 = vmax.f32 %v6798_v39, 0.0  ;;  %v6799_v17 = vld [vmem:[#allocation16_spill] sm:$0xff] }
 0x383   : > { %3447 = vst.msk [vmem:[%s6374_s21 + $0xf0] sm:$0xff] %vm3416_vm5, %v3382_v61  ;;  %v3383_v5 = vsel %vm3351_vm4, %v3318_v59, 0.0  ;;  %v1145_v63 = vmax.f32 %v6799_v17, 0.0 }
 0x384   : > { %v3159_v19 = vpop.permute.xlu0 %3158  ;;  %3448 = vst.msk [vmem:[%s6374_s21 + $0xf8] sm:$0xff] %vm3416_vm5, %v3383_v5  ;;  %v6800_v5 = vld [vmem:[#allocation2_spill] sm:$0xff] }
 0x385   : > { %v3319_v2 = vsel %vm3286_vm3, %v1132_v9, %v3159_v19  ;;  %v3161_v34 = vpop.permute.xlu1 %3160 }
 0x386   : > { %v3384_v47 = vsel %vm3351_vm4, %v3319_v2, 0.0  ;;  %v3320_v30 = vsel %vm3286_vm3, %v1133_v58, %v3161_v34  ;;  %v1146_v58 = vmax.f32 %v6800_v5, 0.0  ;;  %v6801_v2 = vld [vmem:[#allocation20_spill] sm:$0xff] }
 0x387   : > { %3449 = vst.msk [vmem:[%s6374_s21 + $0x100] sm:$0xff] %vm3416_vm5, %v3384_v47  ;;  %v3385_v44 = vsel %vm3351_vm4, %v3320_v30, 0.0  ;;  %v1147_v34 = vmax.f32 %v6801_v2, 0.0 }
 0x388   : > { %v3163_v51 = vpop.permute.xlu0 %3162  ;;  %3450 = vst.msk [vmem:[%s6374_s21 + $0x108] sm:$0xff] %vm3416_vm5, %v3385_v44 }
 0x389   : > { %v3321_v43 = vsel %vm3286_vm3, %v1134_v38, %v3163_v51  ;;  %v3165_v62 = vpop.permute.xlu1 %3164  ;;  %v6802_v51 = vld [vmem:[#allocation4_spill] sm:$0xff] }
 0x38a   : > { %v3386_v41 = vsel %vm3351_vm4, %v3321_v43, 0.0  ;;  %v3322_v23 = vsel %vm3286_vm3, %v1135_v6, %v3165_v62  ;;  %v1148_v43 = vmax.f32 %v6802_v51, 0.0 }
 0x38b   : > { %3451 = vst.msk [vmem:[%s6374_s21 + $0x110] sm:$0xff] %vm3416_vm5, %v3386_v41  ;;  %v3387_v26 = vsel %vm3351_vm4, %v3322_v23, 0.0  ;;  %v6803_v41 = vld [vmem:[#allocation3_spill] sm:$0xff] }
 0x38c   : > { %v3167_v11 = vpop.permute.xlu0 %3166  ;;  %3452 = vst.msk [vmem:[%s6374_s21 + $0x118] sm:$0xff] %vm3416_vm5, %v3387_v26  ;;  %v1149_v23 = vmax.f32 %v6803_v41, 0.0 }
 0x38d   : > { %v3323_v42 = vsel %vm3286_vm3, %v1136_v7, %v3167_v11  ;;  %v3169_v40 = vpop.permute.xlu1 %3168 }
 0x38e   : > { %v3388_v45 = vsel %vm3351_vm4, %v3323_v42, 0.0  ;;  %v3324_v57 = vsel %vm3286_vm3, %v1137_v25, %v3169_v40  ;;  %v6804_v40 = vld [vmem:[#allocation6_spill] sm:$0xff] }
 0x38f   : > { %3453 = vst.msk [vmem:[%s6374_s21 + $0x120] sm:$0xff] %vm3416_vm5, %v3388_v45  ;;  %v3389_v18 = vsel %vm3351_vm4, %v3324_v57, 0.0  ;;  %v1150_v45 = vmax.f32 %v6804_v40, 0.0 }
 0x390   : > { %v3171_v0 = vpop.permute.xlu0 %3170  ;;  %3454 = vst.msk [vmem:[%s6374_s21 + $0x128] sm:$0xff] %vm3416_vm5, %v3389_v18 }
 0x391   : > { %v3325_v33 = vsel %vm3286_vm3, %v1138_v46, %v3171_v0  ;;  %v3173_v35 = vpop.permute.xlu1 %3172  ;;  %v6805_v46 = vld [vmem:[#allocation5_spill] sm:$0xff] }
 0x392   : > { %v3390_v32 = vsel %vm3351_vm4, %v3325_v33, 0.0  ;;  %v3326_v48 = vsel %vm3286_vm3, %v1139_v22, %v3173_v35  ;;  %v1151_v18 = vmax.f32 %v6805_v46, 0.0 }
 0x393   : > { %3455 = vst.msk [vmem:[%s6374_s21 + $0x130] sm:$0xff] %vm3416_vm5, %v3390_v32  ;;  %v3391_v20 = vsel %vm3351_vm4, %v3326_v48, 0.0  ;;  %v6806_v48 = vld [vmem:[#allocation8_spill] sm:$0xff] }
 0x394   : > { %v3175_v52 = vpop.permute.xlu0 %3174  ;;  %3456 = vst.msk [vmem:[%s6374_s21 + $0x138] sm:$0xff] %vm3416_vm5, %v3391_v20 }
 0x395   : > { %v3327_v37 = vsel %vm3286_vm3, %v1140_v36, %v3175_v52  ;;  %v3177_v4 = vpop.permute.xlu1 %3176  ;;  %v1152_v36 = vmax.f32 %v6806_v48, 0.0 }
 0x396   : > { %v3392_v53 = vsel %vm3351_vm4, %v3327_v37, 0.0  ;;  %v3328_v3 = vsel %vm3286_vm3, %v1141_v54, %v3177_v4  ;;  %v6807_v54 = vld [vmem:[#allocation7_spill] sm:$0xff] }
 0x397   : > { %3457 = vst.msk [vmem:[%s6374_s21 + $0x140] sm:$0xff] %vm3416_vm5, %v3392_v53  ;;  %v3393_v12 = vsel %vm3351_vm4, %v3328_v3, 0.0  ;;  %v1153_v52 = vmax.f32 %v6807_v54, 0.0 }
 0x398   : > { %v3179_v8 = vpop.permute.xlu0 %3178  ;;  %3458 = vst.msk [vmem:[%s6374_s21 + $0x148] sm:$0xff] %vm3416_vm5, %v3393_v12  ;;  %v6808_v12 = vld [vmem:[#allocation11_spill] sm:$0xff] }
 0x399   : > { %v3329_v16 = vsel %vm3286_vm3, %v1142_v27, %v3179_v8  ;;  %v3181_v24 = vpop.permute.xlu1 %3180  ;;  %v1154_v15 = vmax.f32 %v6808_v12, 0.0  ;;  %v6809_v8 = vld [vmem:[#allocation10_spill] sm:$0xff] }
 0x39a   : > { %v3394_v29 = vsel %vm3351_vm4, %v3329_v16, 0.0  ;;  %v3330_v31 = vsel %vm3286_vm3, %v1143_v1, %v3181_v24  ;;  %v1155_v16 = vmax.f32 %v6809_v8, 0.0 }
 0x39b   : > { %3459 = vst.msk [vmem:[%s6374_s21 + $0x150] sm:$0xff] %vm3416_vm5, %v3394_v29  ;;  %v3395_v55 = vsel %vm3351_vm4, %v3330_v31, 0.0 }
 0x39c   : > { %v3183_v56 = vpop.permute.xlu0 %3182  ;;  %3460 = vst.msk [vmem:[%s6374_s21 + $0x158] sm:$0xff] %vm3416_vm5, %v3395_v55  ;;  %v6810_v55 = vld [vmem:[#allocation13_spill] sm:$0xff] }
 0x39d   : > { %v3331_v13 = vsel %vm3286_vm3, %v1144_v49, %v3183_v56  ;;  %v3185_v61 = vpop.permute.xlu1 %3184  ;;  %v1156_v17 = vmax.f32 %v6810_v55, 0.0  ;;  %v6811_v56 = vld [vmem:[#allocation12_spill] sm:$0xff] }
 0x39e   : > { %v3396_v59 = vsel %vm3351_vm4, %v3331_v13, 0.0  ;;  %v3332_v9 = vsel %vm3286_vm3, %v1145_v63, %v3185_v61  ;;  %v1157_v13 = vmax.f32 %v6811_v56, 0.0 }
 0x39f   : > { %3461 = vst.msk [vmem:[%s6374_s21 + $0x160] sm:$0xff] %vm3416_vm5, %v3396_v59  ;;  %v3397_v19 = vsel %vm3351_vm4, %v3332_v9, 0.0 }
 0x3a0   : > { %v3187_v47 = vpop.permute.xlu0 %3186  ;;  %3462 = vst.msk [vmem:[%s6374_s21 + $0x168] sm:$0xff] %vm3416_vm5, %v3397_v19  ;;  %v1158_v19 = vmax.f32 %v6350_v10, 0.0  ;;  %v1160_v10 = vmax.f32 %v6357_v28, 0.0  ;;  %v1162_v28 = vmax.f32 %v6365_v50, 0.0 }
 0x3a1   : > { %v3333_v30 = vsel %vm3286_vm3, %v1146_v58, %v3187_v47  ;;  %v3189_v38 = vpop.permute.xlu1 %3188 }
 0x3a2   : > { %v3398_v44 = vsel %vm3351_vm4, %v3333_v30, 0.0  ;;  %v3334_v6 = vsel %vm3286_vm3, %v1147_v34, %v3189_v38  ;;  %v1159_v34 = vmax.f32 %v6348_v21, 0.0  ;;  %v1161_v21 = vmax.f32 %v6354_v60, 0.0 }
 0x3a3   : > { %3463 = vst.msk [vmem:[%s6374_s21 + $0x170] sm:$0xff] %vm3416_vm5, %v3398_v44  ;;  %v3399_v62 = vsel %vm3351_vm4, %v3334_v6, 0.0  ;;  %v1163_v60 = vmax.f32 %v6362_v14, 0.0 }
 0x3a4   : > { %v3191_v7 = vpop.permute.xlu0 %3190  ;;  %3464 = vst.msk [vmem:[%s6374_s21 + $0x178] sm:$0xff] %vm3416_vm5, %v3399_v62 }
 0x3a5   : > { %v3335_v26 = vsel %vm3286_vm3, %v1148_v43, %v3191_v7  ;;  %v3193_v25 = vpop.permute.xlu1 %3192 }
 0x3a6   : > { %v3400_v11 = vsel %vm3351_vm4, %v3335_v26, 0.0  ;;  %v3336_v42 = vsel %vm3286_vm3, %v1149_v23, %v3193_v25 }
 0x3a7   : > { %3465 = vst.msk [vmem:[%s6374_s21 + $0x180] sm:$0xff] %vm3416_vm5, %v3400_v11  ;;  %v3401_v57 = vsel %vm3351_vm4, %v3336_v42, 0.0 }
 0x3a8   : > { %v3195_v22 = vpop.permute.xlu0 %3194  ;;  %3466 = vst.msk [vmem:[%s6374_s21 + $0x188] sm:$0xff] %vm3416_vm5, %v3401_v57 }
 0x3a9   : > { %v3337_v0 = vsel %vm3286_vm3, %v1150_v45, %v3195_v22  ;;  %v3197_v33 = vpop.permute.xlu1 %3196 }
 0x3aa   : > { %v3402_v35 = vsel %vm3351_vm4, %v3337_v0, 0.0  ;;  %v3338_v32 = vsel %vm3286_vm3, %v1151_v18, %v3197_v33 }
 0x3ab   : > { %3467 = vst.msk [vmem:[%s6374_s21 + $0x190] sm:$0xff] %vm3416_vm5, %v3402_v35  ;;  %v3403_v20 = vsel %vm3351_vm4, %v3338_v32, 0.0 }
 0x3ac   : > { %v3199_v37 = vpop.permute.xlu0 %3198  ;;  %3468 = vst.msk [vmem:[%s6374_s21 + $0x198] sm:$0xff] %vm3416_vm5, %v3403_v20 }
 0x3ad   : > { %v3339_v4 = vsel %vm3286_vm3, %v1152_v36, %v3199_v37  ;;  %v3201_v53 = vpop.permute.xlu1 %3200 }
 0x3ae   : > { %v3404_v3 = vsel %vm3351_vm4, %v3339_v4, 0.0  ;;  %v3340_v27 = vsel %vm3286_vm3, %v1153_v52, %v3201_v53 }
 0x3af   : > { %3469 = vst.msk [vmem:[%s6374_s21 + $0x1a0] sm:$0xff] %vm3416_vm5, %v3404_v3  ;;  %v3405_v1 = vsel %vm3351_vm4, %v3340_v27, 0.0 }
 0x3b0   : > { %v3203_v24 = vpop.permute.xlu0 %3202  ;;  %3470 = vst.msk [vmem:[%s6374_s21 + $0x1a8] sm:$0xff] %vm3416_vm5, %v3405_v1 }
 0x3b1   : > { %v3341_v29 = vsel %vm3286_vm3, %v1154_v15, %v3203_v24  ;;  %v3205_v31 = vpop.permute.xlu1 %3204 }
 0x3b2   : > { %v3406_v39 = vsel %vm3351_vm4, %v3341_v29, 0.0  ;;  %v3342_v49 = vsel %vm3286_vm3, %v1155_v16, %v3205_v31 }
 0x3b3   : > { %3471 = vst.msk [vmem:[%s6374_s21 + $0x1b0] sm:$0xff] %vm3416_vm5, %v3406_v39  ;;  %v3407_v63 = vsel %vm3351_vm4, %v3342_v49, 0.0 }
 0x3b4   : > { %v3207_v61 = vpop.permute.xlu0 %3206  ;;  %3472 = vst.msk [vmem:[%s6374_s21 + $0x1b8] sm:$0xff] %vm3416_vm5, %v3407_v63 }
 0x3b5   : > { %v3343_v59 = vsel %vm3286_vm3, %v1156_v17, %v3207_v61  ;;  %v3209_v9 = vpop.permute.xlu1 %3208 }
 0x3b6   : > { %v3408_v5 = vsel %vm3351_vm4, %v3343_v59, 0.0  ;;  %v3344_v58 = vsel %vm3286_vm3, %v1157_v13, %v3209_v9 }
 0x3b7   : > { %3473 = vst.msk [vmem:[%s6374_s21 + $0x1c0] sm:$0xff] %vm3416_vm5, %v3408_v5  ;;  %v3409_v2 = vsel %vm3351_vm4, %v3344_v58, 0.0 }
 0x3b8   : > { %v3211_v47 = vpop.permute.xlu0 %3210  ;;  %3474 = vst.msk [vmem:[%s6374_s21 + $0x1c8] sm:$0xff] %vm3416_vm5, %v3409_v2 }
 0x3b9   : > { %v3345_v30 = vsel %vm3286_vm3, %v1158_v19, %v3211_v47  ;;  %v3213_v38 = vpop.permute.xlu1 %3212 }
 0x3ba   : > { %v3410_v44 = vsel %vm3351_vm4, %v3345_v30, 0.0  ;;  %v3346_v6 = vsel %vm3286_vm3, %v1159_v34, %v3213_v38 }
 0x3bb   : > { %3475 = vst.msk [vmem:[%s6374_s21 + $0x1d0] sm:$0xff] %vm3416_vm5, %v3410_v44  ;;  %v3411_v51 = vsel %vm3351_vm4, %v3346_v6, 0.0 }
 0x3bc   : > { %v3215_v43 = vpop.permute.xlu0 %3214  ;;  %3476 = vst.msk [vmem:[%s6374_s21 + $0x1d8] sm:$0xff] %vm3416_vm5, %v3411_v51 }
 0x3bd   : > { %v3347_v62 = vsel %vm3286_vm3, %v1160_v10, %v3215_v43  ;;  %v3217_v41 = vpop.permute.xlu1 %3216 }
 0x3be   : > { %v3412_v23 = vsel %vm3351_vm4, %v3347_v62, 0.0  ;;  %v3348_v7 = vsel %vm3286_vm3, %v1161_v21, %v3217_v41 }
 0x3bf   : > { %3477 = vst.msk [vmem:[%s6374_s21 + $0x1e0] sm:$0xff] %vm3416_vm5, %v3412_v23  ;;  %v3413_v26 = vsel %vm3351_vm4, %v3348_v7, 0.0 }
 0x3c0   : > { %v3219_v25 = vpop.permute.xlu0 %3218  ;;  %3478 = vst.msk [vmem:[%s6374_s21 + $0x1e8] sm:$0xff] %vm3416_vm5, %v3413_v26 }
 0x3c1   : > { %v3349_v11 = vsel %vm3286_vm3, %v1162_v28, %v3219_v25  ;;  %v3221_v42 = vpop.permute.xlu1 %3220 }
 0x3c2   : > { %v3414_v40 = vsel %vm3351_vm4, %v3349_v11, 0.0  ;;  %v3350_v45 = vsel %vm3286_vm3, %v1163_v60, %v3221_v42 }
 0x3c3   : > { %3479 = vst.msk [vmem:[%s6374_s21 + $0x1f0] sm:$0xff] %vm3416_vm5, %v3414_v40  ;;  %v3415_v50 = vsel %vm3351_vm4, %v3350_v45, 0.0 }
 0x3c4   : > { %3480 = vst.msk [vmem:[%s6374_s21 + $0x1f8] sm:$0xff] %vm3416_vm5, %v3415_v50 }
 0x3c5 PF: > { %s18_s27 = sadd.s32 1, %s5002_s27  }
 0x3c6   : > { %p15_p4 = scmp.ge.s32.totalorder %s18_s27, 6  }
 0x3c8   :  { %17 = sbr.rel (!%p15_p4) target bundleno = 1 (0x1), region = 85 }

</bundles_post_ra>
